<compile_context>
chip_gen: v5e
topology: v5e:2x2
jax: 0.10.0
libtpu: 0.0.40
codegen_flags: <defaults>
</compile_context>

<pallas_src>
import functools

import jax
import jax.numpy as jnp
from jax.experimental import pallas as pl
from jax.experimental.pallas import tpu as pltpu

BN_EPS = 1e-5


def _vmem_spec():
    return pl.BlockSpec(memory_space=pltpu.MemorySpace.VMEM)


def _pick_tile(m, target=2048):
    """Largest lane tile <= target that divides m and is a multiple of 128.
    Falls back to the full extent (always a legal full-dim block)."""
    if m <= target:
        return m
    t = (target // 128) * 128
    while t >= 128:
        if m % t == 0:
            return t
        t -= 128
    return m


# --------------------------------------------------------------------------
# Pallas kernels
# --------------------------------------------------------------------------

def _conv_bn_relu_kernel(p_ref, w_ref, g_ref, beta_ref, o_ref, y_ref, s1_ref,
                         *, n_phase):
    """Transposed conv-as-matmul: (Ctot, K) @ (K, tile) per lane tile, per-channel
    training-mode BatchNorm (two-pass) across all tiles and the n_phase row-blocks,
    then ReLU.  Output (Ctot, M) is lane-dense and VMEM-resident for the whole grid."""
    i = pl.program_id(0)
    nt = pl.num_programs(0)
    tile = p_ref.shape[1]

    @pl.when(i == 0)
    def _():
        s1_ref[...] = jnp.zeros_like(s1_ref)

    # bf16 operands -> f32 accumulate on the MXU; lane-dense (Ctot, tile) result.
    y = jnp.dot(w_ref[...], p_ref[...], preferred_element_type=jnp.float32)
    s1_ref[...] += jnp.sum(y, axis=1, keepdims=True)
    off = pl.multiple_of(i * tile, 128)
    y_ref[:, pl.ds(off, tile)] = y

    @pl.when(i == nt - 1)
    def _():
        c_tot, m_tot = y_ref.shape
        c = c_tot // n_phase
        count = float(m_tot * n_phase)

        def phase_sum(v):      # (Ctot, 1) -> (C, 1): combine phase row-blocks
            if n_phase == 1:
                return v
            acc = v[0:c]
            for k in range(1, n_phase):
                acc = acc + v[k * c:(k + 1) * c]
            return acc

        def phase_tile(v):     # (C, 1) -> (Ctot, 1)
            if n_phase == 1:
                return v
            return jnp.concatenate([v] * n_phase, axis=0)

        mean = phase_sum(s1_ref[...]) / count                       # (C, 1)
        diff = y_ref[...] - phase_tile(mean)                        # (Ctot, M) f32
        var = phase_sum(jnp.sum(diff * diff, axis=1, keepdims=True)) / count
        scale = g_ref[...] * jax.lax.rsqrt(var + BN_EPS)            # (C, 1)
        o_ref[...] = jnp.maximum(
            diff * phase_tile(scale) + phase_tile(beta_ref[...]), 0.0
        ).astype(o_ref.dtype)
        # TODO(synk): chunk this epilogue over lane tiles if batches >> 64 are needed.


def _conv_sigmoid_kernel(p_ref, w_ref, b_ref, o_ref):
    y = jnp.dot(w_ref[...], p_ref[...], preferred_element_type=jnp.float32)
    o_ref[...] = jax.nn.sigmoid(y + b_ref[...])


def _latent_kernel(h_ref, we_ref, be_ref, eps_ref, wd_ref, bd_ref,
                   stats_ref, h2_ref):
    # merged fc_e1|fc_e2 -> lane-dense (B, 128); reparameterize; fc_d.
    h = h_ref[...]                                                   # (B, 1024) bf16
    stats = jnp.dot(h, we_ref[...], preferred_element_type=jnp.float32) + be_ref[...]
    mu = stats[:, :64]
    logvar = stats[:, 64:]
    z = mu + eps_ref[...] * jnp.exp(0.5 * logvar)                    # (B, 64) f32
    h2 = jnp.dot(z.astype(wd_ref.dtype), wd_ref[...],
                 preferred_element_type=jnp.float32) + bd_ref[...]
    stats_ref[...] = stats
    h2_ref[...] = h2.astype(h2_ref.dtype)


# --------------------------------------------------------------------------
# pallas_call wrappers
# --------------------------------------------------------------------------

def conv_bn_relu(patches, w, g, beta, n_phase, tile_target=2048):
    """patches: (K, M) bf16, w: (Ctot, K) bf16, g/beta: (Ctot//n_phase, 1) f32."""
    k, m = patches.shape
    c_tot = w.shape[0]
    c = c_tot // n_phase
    tile = _pick_tile(m, tile_target)
    kernel = functools.partial(_conv_bn_relu_kernel, n_phase=n_phase)
    return pl.pallas_call(
        kernel,
        out_shape=jax.ShapeDtypeStruct((c_tot, m), jnp.bfloat16),
        grid=(m // tile,),
        in_specs=[pl.BlockSpec((k, tile), lambda i: (0, i)),
                  pl.BlockSpec((c_tot, k), lambda i: (0, 0)),
                  pl.BlockSpec((c, 1), lambda i: (0, 0)),
                  pl.BlockSpec((c, 1), lambda i: (0, 0))],
        out_specs=pl.BlockSpec((c_tot, m), lambda i: (0, 0)),
        scratch_shapes=[pltpu.VMEM((c_tot, m), jnp.float32),   # raw matmul result
                        pltpu.VMEM((c_tot, 1), jnp.float32)],  # per-channel sums
        compiler_params=pltpu.CompilerParams(
            dimension_semantics=("arbitrary",)),   # stats accumulate across lane tiles
    )(patches, w, g, beta)


def conv_sigmoid(patches, w, b, tile_target=2048):
    """Final sub-pixel convT + Sigmoid.  No BN -> lane tiles are independent:
    lane-tiled parallel grid, lane-dense (12, tile) output blocks."""
    k, m = patches.shape
    c = w.shape[0]
    tile = _pick_tile(m, tile_target)
    return pl.pallas_call(
        _conv_sigmoid_kernel,
        out_shape=jax.ShapeDtypeStruct((c, m), jnp.float32),
        grid=(m // tile,),
        in_specs=[pl.BlockSpec((k, tile), lambda i: (0, i)),
                  pl.BlockSpec((c, k), lambda i: (0, 0)),
                  pl.BlockSpec((c, 1), lambda i: (0, 0))],
        out_specs=pl.BlockSpec((c, tile), lambda i: (0, i)),
        compiler_params=pltpu.CompilerParams(dimension_semantics=("parallel",)),
    )(patches, w, b)


def latent_block(h1, eps, p):
    b = h1.shape[0]
    return pl.pallas_call(
        _latent_kernel,
        out_shape=(jax.ShapeDtypeStruct((b, 128), jnp.float32),    # [mu | logvar]
                   jax.ShapeDtypeStruct((b, 1024), jnp.bfloat16)),  # h2
        in_specs=[_vmem_spec()] * 6,
        out_specs=(_vmem_spec(), _vmem_spec()),
    )(h1, p['w_e'], p['b_e'], eps, p['w_d'], p['b_d'])


# --------------------------------------------------------------------------
# Layout glue (plain JAX).  Activations flow channel-major: (C, N, H, W),
# so kernel outputs (C, N*H*W) are lane-dense and feed the next layer directly.
# --------------------------------------------------------------------------

def im2col_s2(x):
    """stride-2, pad-1, k=3 conv patches.  x: (C,N,H,W) bf16 -> (9C, N*Ho*Wo)."""
    c, n, h, w = x.shape
    ho, wo = h // 2, w // 2
    xp = jnp.pad(x, ((0, 0), (0, 0), (1, 1), (1, 1)))
    taps = [xp[:, :, i:i + 2 * ho:2, j:j + 2 * wo:2]
            for i in range(3) for j in range(3)]
    p = jnp.concatenate(taps, axis=0)                    # (9C, N, Ho, Wo)
    return p.reshape(9 * c, n * ho * wo), (n, ho, wo)


def subpixel_taps(x):
    """ConvTranspose(3,2,p=1,op=1) sub-pixel taps: 2x2 window on the raw input.
    x: (C,N,H,W) -> (4C, N*H*W), tap row-block order (dh, dw)."""
    c, n, h, w = x.shape
    xe = jnp.pad(x, ((0, 0), (0, 0), (0, 1), (0, 1)))
    taps = [xe[:, :, dh:dh + h, dw:dw + w] for dh in (0, 1) for dw in (0, 1)]
    p = jnp.concatenate(taps, axis=0)                    # (4C, N, H, W)
    return p.reshape(4 * c, n * h * w), (n, h, w)


def interleave_phases(y, c, n, h, w):
    """(4C, N*H*W) with row blocks (ph, pw) -> (C, N, 2H, 2W)."""
    y = y.reshape(2, 2, c, n, h, w)
    y = jnp.transpose(y, (2, 3, 4, 0, 5, 1))             # (C, N, H, ph, W, pw)
    return y.reshape(c, n, 2 * h, 2 * w)


def convT_block_weight(t):
    """PyTorch ConvTranspose2d weight (Cin,Cout,3,3) -> (4Cin, 4Cout) block matrix
    for the sub-pixel formulation: rows = (dh,dw,cin) taps, cols = (ph,pw,cout)."""
    cin, cout = t.shape[0], t.shape[1]
    kmap = {(0, 0): 1, (1, 0): 2, (1, 1): 0}   # (output phase, tap delta) -> k index
    w = jnp.zeros((4 * cin, 4 * cout), jnp.float32)
    for ph in (0, 1):
        for pw in (0, 1):
            for dh in (0, 1):
                for dw in (0, 1):
                    kh = kmap.get((ph, dh))
                    kw = kmap.get((pw, dw))
                    if kh is None or kw is None:
                        continue
                    w = w.at[(2 * dh + dw) * cin:(2 * dh + dw + 1) * cin,
                             (2 * ph + pw) * cout:(2 * ph + pw + 1) * cout
                             ].set(t[:, :, kh, kw])
    return w


# --------------------------------------------------------------------------
# Deterministic parameter initialization (shapes from VAE.__init__)
# --------------------------------------------------------------------------

def init_params(key):
    params = {}
    keys = iter(jax.random.split(key, 40))

    def nrm(shape, scale):
        return scale * jax.random.normal(next(keys), shape, jnp.float32)

    # Encoder Conv2d(cin, cout, 3, stride=2, padding=1) + BatchNorm2d.
    # Conv bias omitted: training-mode BN cancels it exactly.
    for i, (cin, cout) in enumerate([(3, 16), (16, 32), (32, 64)]):
        w = nrm((cout, cin, 3, 3), (cin * 9.0) ** -0.5)
        params[f'enc{i}_w'] = (jnp.transpose(w, (0, 2, 3, 1))
                               .reshape(cout, 9 * cin).astype(jnp.bfloat16))
        params[f'enc{i}_g'] = 1.0 + nrm((cout, 1), 0.05)
        params[f'enc{i}_beta'] = nrm((cout, 1), 0.05)

    # fc_e1 | fc_e2 merged into one (1024, 128) matrix; fc_d: (64, 1024).
    w_e1, w_e2 = nrm((1024, 64), 1.0 / 32.0), nrm((1024, 64), 1.0 / 32.0)
    params['w_e'] = jnp.concatenate([w_e1, w_e2], axis=1).astype(jnp.bfloat16)
    params['b_e'] = jnp.concatenate([nrm((1, 64), 0.05), nrm((1, 64), 0.05)], axis=1)
    params['w_d'] = nrm((64, 1024), 1.0 / 8.0).astype(jnp.bfloat16)
    params['b_d'] = nrm((1, 1024), 0.05)

    # Decoder ConvTranspose2d(cin, cout, 3, 2, padding=1, output_padding=1).
    for i, (cin, cout) in enumerate([(64, 32), (32, 16), (16, 3)]):
        t = nrm((cin, cout, 3, 3), (cin * 9.0) ** -0.5)
        params[f'dec{i}_w'] = convT_block_weight(t).T.astype(jnp.bfloat16)  # (4Cout,4Cin)
        if i < 2:
            params[f'dec{i}_g'] = 1.0 + nrm((cout, 1), 0.05)
            params[f'dec{i}_beta'] = nrm((cout, 1), 0.05)
        else:
            b = nrm((cout, 1), 0.05)
            params['dec2_b'] = jnp.tile(b, (4, 1))   # same bias for every phase block
    return params


# --------------------------------------------------------------------------
# Full VAE forward
# --------------------------------------------------------------------------

@jax.jit
def vae_forward(params, x_nchw, eps):
    n = x_nchw.shape[0]
    x = jnp.transpose(x_nchw, (1, 0, 2, 3)).astype(jnp.bfloat16)   # (3, N, 32, 32)

    # ----- encoder: 3 x (conv s2 p1 + BN + ReLU), lane-dense (C, M) outputs -----
    for i, cout in enumerate((16, 32, 64)):
        patches, (nn, ho, wo) = im2col_s2(x)
        y = conv_bn_relu(patches, params[f'enc{i}_w'], params[f'enc{i}_g'],
                         params[f'enc{i}_beta'], n_phase=1)
        x = y.reshape(cout, nn, ho, wo)

    # flatten exactly like h1.view(N, -1) on an NCHW tensor (channel-major)
    h1 = jnp.transpose(x, (1, 0, 2, 3)).reshape(n, 1024)

    # ----- fused fc_e1|fc_e2 + reparameterize + fc_d -----
    stats, h2 = latent_block(h1, eps, params)
    mu, logvar = stats[:, :64], stats[:, 64:]

    # h2.view(N, 64, 4, 4) is NCHW -> channel-major (64, N, 4, 4) for the decoder
    d = jnp.transpose(h2.reshape(n, 64, 16), (1, 0, 2)).reshape(64, n, 4, 4)

    # ----- decoder: 2 x (sub-pixel convT + BN + ReLU) -----
    for i, cout in enumerate((32, 16)):
        patches, (nn, hh, ww) = subpixel_taps(d)
        y = conv_bn_relu(patches, params[f'dec{i}_w'], params[f'dec{i}_g'],
                         params[f'dec{i}_beta'], n_phase=4)
        d = interleave_phases(y, cout, nn, hh, ww)

    # ----- final sub-pixel convT + Sigmoid (lane-tiled parallel grid) -----
    patches, (nn, hh, ww) = subpixel_taps(d)
    y = conv_sigmoid(patches, params['dec2_w'], params['dec2_b'])  # (12, N*256) f32
    out = interleave_phases(y, 3, nn, hh, ww)                      # (3, N, 32, 32)
    return jnp.transpose(out, (1, 0, 2, 3)), mu, logvar


# --------------------------------------------------------------------------

if __name__ == "__main__":
    key = jax.random.PRNGKey(0)
    k_param, k_x, k_eps = jax.random.split(key, 3)

    params = init_params(k_param)
    # 32x32 input is required by the module (fc_e1 expects 64*4*4 = 1024 features)
    x = jax.random.normal(k_x, (2, 3, 32, 32), jnp.float32)
    eps = jax.random.normal(k_eps, (2, 64), jnp.float32)           # reparam noise

    out, mu, logvar = vae_forward(params, x, eps)
    jax.block_until_ready((out, mu, logvar))

    assert out.shape == (2, 3, 32, 32)
    assert mu.shape == (2, 64) and logvar.shape == (2, 64)
    print("KERNEL_OK")
</pallas_src>

<mosaic_0001>
module attributes {stable_mosaic.version = 11 : i64} {
  func.func @_conv_bn_relu_kernel(%arg0: i32, %arg1: memref<27x512xbf16, #tpu.memory_space<vmem>>, %arg2: memref<16x27xbf16, #tpu.memory_space<vmem>>, %arg3: memref<16x1xf32, #tpu.memory_space<vmem>>, %arg4: memref<16x1xf32, #tpu.memory_space<vmem>>, %arg5: memref<16x512xbf16, #tpu.memory_space<vmem>>, %arg6: memref<16x512xf32, #tpu.memory_space<vmem>>, %arg7: memref<16x1xf32, #tpu.memory_space<vmem>>) attributes {dimension_semantics = [#tpu.dimension_semantics<arbitrary>], iteration_bounds = array<i64: 1>, scalar_prefetch = 0 : i64, scratch_operands = 2 : i64, tpu.core_type = #tpu.core_type<tc>, window_params = [{transform_indices = @transform_0, window_bounds = array<i64: 27, 512>}, {pipeline_mode = #tpu.pipeline_mode<synchronous>, transform_indices = @transform_1, window_bounds = array<i64: 16, 27>}, {pipeline_mode = #tpu.pipeline_mode<synchronous>, transform_indices = @transform_2, window_bounds = array<i64: 16, 1>}, {pipeline_mode = #tpu.pipeline_mode<synchronous>, transform_indices = @transform_3, window_bounds = array<i64: 16, 1>}, {pipeline_mode = #tpu.pipeline_mode<synchronous>, transform_indices = @transform_4, window_bounds = array<i64: 16, 512>}]} {
    %c0_i32 = arith.constant 0 : i32
    %0 = arith.cmpi eq, %arg0, %c0_i32 : i32
    %1 = arith.extui %0 : i1 to i32
    %c0_i32_0 = arith.constant 0 : i32
    %2 = arith.cmpi ne, %1, %c0_i32_0 : i32
    scf.if %2 {
      %cst_12 = arith.constant 0.000000e+00 : f32
      %18 = vector.broadcast %cst_12 : f32 to vector<16x1xf32>
      %c0_13 = arith.constant 0 : index
      %c0_14 = arith.constant 0 : index
      %19 = vector.load %arg7[%c0_13, %c0_14] : memref<16x1xf32, #tpu.memory_space<vmem>>, vector<16x1xf32>
      tpu.vector_store %arg7[%c0_13, %c0_14], %18 {strides = array<i32>} : memref<16x1xf32, #tpu.memory_space<vmem>>, vector<16x1xf32>,
    } else {
    }
    %c0 = arith.constant 0 : index
    %c0_1 = arith.constant 0 : index
    %3 = vector.load %arg2[%c0, %c0_1] : memref<16x27xbf16, #tpu.memory_space<vmem>>, vector<16x27xbf16>
    %c0_2 = arith.constant 0 : index
    %c0_3 = arith.constant 0 : index
    %4 = vector.load %arg1[%c0_2, %c0_3] : memref<27x512xbf16, #tpu.memory_space<vmem>>, vector<27x512xbf16>
    %cst = arith.constant dense<0.000000e+00> : vector<16x512xf32>
    %5 = tpu.matmul %3, %4, %cst {dimension_numbers = #tpu.dot_dimension_numbers<[1], [0], [0], [1], [0, 0, 1, 1], [], []>} : vector<16x27xbf16>, vector<27x512xbf16>, vector<16x512xf32> -> vector<16x512xf32>
    %c0_4 = arith.constant 0 : index
    %c0_5 = arith.constant 0 : index
    %6 = vector.load %arg7[%c0_4, %c0_5] : memref<16x1xf32, #tpu.memory_space<vmem>>, vector<16x1xf32>
    %cst_6 = arith.constant dense<0.000000e+00> : vector<16xf32>
    %7 = vector.multi_reduction <add>, %5, %cst_6 [1] : vector<16x512xf32> to vector<16xf32>
    %8 = vector.shape_cast %7 : vector<16xf32> to vector<16x1xf32>
    %9 = arith.addf %6, %8 : vector<16x1xf32>
    %c0_7 = arith.constant 0 : index
    %c0_8 = arith.constant 0 : index
    %10 = vector.load %arg7[%c0_7, %c0_8] : memref<16x1xf32, #tpu.memory_space<vmem>>, vector<16x1xf32>
    tpu.vector_store %arg7[%c0_7, %c0_8], %9 {strides = array<i32>} : memref<16x1xf32, #tpu.memory_space<vmem>>, vector<16x1xf32>,
    %c512_i32 = arith.constant 512 : i32
    %11 = arith.muli %arg0, %c512_i32 : i32
    %12 = tpu.assume_multiple %11, 128 : i32
    %c0_9 = arith.constant 0 : index
    %13 = arith.index_cast %12 : i32 to index
    %14 = vector.load %arg6[%c0_9, %13] : memref<16x512xf32, #tpu.memory_space<vmem>>, vector<16x512xf32>
    tpu.vector_store %arg6[%c0_9, %13], %5 {strides = array<i32>} : memref<16x512xf32, #tpu.memory_space<vmem>>, vector<16x512xf32>,
    %c0_i32_10 = arith.constant 0 : i32
    %15 = arith.cmpi eq, %arg0, %c0_i32_10 : i32
    %16 = arith.extui %15 : i1 to i32
    %c0_i32_11 = arith.constant 0 : i32
    %17 = arith.cmpi ne, %16, %c0_i32_11 : i32
    scf.if %17 {
      %c0_12 = arith.constant 0 : index
      %c0_13 = arith.constant 0 : index
      %18 = vector.load %arg7[%c0_12, %c0_13] : memref<16x1xf32, #tpu.memory_space<vmem>>, vector<16x1xf32>
      %cst_14 = arith.constant 5.120000e+02 : f32
      %19 = vector.broadcast %cst_14 : f32 to vector<16x1xf32>
      %20 = arith.divf %18, %19 : vector<16x1xf32>
      %c0_15 = arith.constant 0 : index
      %c0_16 = arith.constant 0 : index
      %21 = vector.load %arg6[%c0_15, %c0_16] : memref<16x512xf32, #tpu.memory_space<vmem>>, vector<16x512xf32>
      %22 = vector.broadcast %20 : vector<16x1xf32> to vector<16x512xf32>
      %23 = arith.subf %21, %22 : vector<16x512xf32>
      %24 = arith.mulf %23, %23 : vector<16x512xf32>
      %cst_17 = arith.constant dense<0.000000e+00> : vector<16xf32>
      %25 = vector.multi_reduction <add>, %24, %cst_17 [1] : vector<16x512xf32> to vector<16xf32>
      %26 = vector.shape_cast %25 : vector<16xf32> to vector<16x1xf32>
      %cst_18 = arith.constant 5.120000e+02 : f32
      %27 = vector.broadcast %cst_18 : f32 to vector<16x1xf32>
      %28 = arith.divf %26, %27 : vector<16x1xf32>
      %c0_19 = arith.constant 0 : index
      %c0_20 = arith.constant 0 : index
      %29 = vector.load %arg3[%c0_19, %c0_20] : memref<16x1xf32, #tpu.memory_space<vmem>>, vector<16x1xf32>
      %cst_21 = arith.constant 9.99999974E-6 : f32
      %30 = vector.broadcast %cst_21 : f32 to vector<16x1xf32>
      %31 = arith.addf %28, %30 : vector<16x1xf32>
      %32 = math.rsqrt %31 : vector<16x1xf32>
      %33 = arith.mulf %29, %32 : vector<16x1xf32>
      %34 = vector.broadcast %33 : vector<16x1xf32> to vector<16x512xf32>
      %35 = arith.mulf %23, %34 : vector<16x512xf32>
      %c0_22 = arith.constant 0 : index
      %c0_23 = arith.constant 0 : index
      %36 = vector.load %arg4[%c0_22, %c0_23] : memref<16x1xf32, #tpu.memory_space<vmem>>, vector<16x1xf32>
      %37 = vector.broadcast %36 : vector<16x1xf32> to vector<16x512xf32>
      %38 = arith.addf %35, %37 : vector<16x512xf32>
      %cst_24 = arith.constant 0.000000e+00 : f32
      %39 = vector.broadcast %cst_24 : f32 to vector<16x512xf32>
      %40 = arith.maximumf %38, %39 : vector<16x512xf32>
      %41 = arith.truncf %40 : vector<16x512xf32> to vector<16x512xbf16>
      %c0_25 = arith.constant 0 : index
      %c0_26 = arith.constant 0 : index
      %42 = vector.load %arg5[%c0_25, %c0_26] : memref<16x512xbf16, #tpu.memory_space<vmem>>, vector<16x512xbf16>
      tpu.vector_store %arg5[%c0_25, %c0_26], %41 {strides = array<i32>} : memref<16x512xbf16, #tpu.memory_space<vmem>>, vector<16x512xbf16>,
    } else {
    }
    return
  }
  func.func @transform_0(%arg0: i32) -> (i32, i32) {
    %c0_i32 = arith.constant 0 : i32
    %c0_i32_0 = arith.constant 0 : i32
    return %c0_i32, %arg0 : i32, i32
  }
  func.func @transform_1(%arg0: i32) -> (i32, i32) {
    %c0_i32 = arith.constant 0 : i32
    %c0_i32_0 = arith.constant 0 : i32
    %c0_i32_1 = arith.constant 0 : i32
    return %c0_i32, %c0_i32_0 : i32, i32
  }
  func.func @transform_2(%arg0: i32) -> (i32, i32) {
    %c0_i32 = arith.constant 0 : i32
    %c0_i32_0 = arith.constant 0 : i32
    %c0_i32_1 = arith.constant 0 : i32
    return %c0_i32, %c0_i32_0 : i32, i32
  }
  func.func @transform_3(%arg0: i32) -> (i32, i32) {
    %c0_i32 = arith.constant 0 : i32
    %c0_i32_0 = arith.constant 0 : i32
    %c0_i32_1 = arith.constant 0 : i32
    return %c0_i32, %c0_i32_0 : i32, i32
  }
  func.func @transform_4(%arg0: i32) -> (i32, i32) {
    %c0_i32 = arith.constant 0 : i32
    %c0_i32_0 = arith.constant 0 : i32
    %c0_i32_1 = arith.constant 0 : i32
    return %c0_i32, %c0_i32_0 : i32, i32
  }
}

module attributes {stable_mosaic.version = 11 : i64} {
  func.func @_conv_bn_relu_kernel(%arg0: i32, %arg1: memref<144x128xbf16, #tpu.memory_space<vmem>>, %arg2: memref<32x144xbf16, #tpu.memory_space<vmem>>, %arg3: memref<32x1xf32, #tpu.memory_space<vmem>>, %arg4: memref<32x1xf32, #tpu.memory_space<vmem>>, %arg5: memref<32x128xbf16, #tpu.memory_space<vmem>>, %arg6: memref<32x128xf32, #tpu.memory_space<vmem>>, %arg7: memref<32x1xf32, #tpu.memory_space<vmem>>) attributes {dimension_semantics = [#tpu.dimension_semantics<arbitrary>], iteration_bounds = array<i64: 1>, scalar_prefetch = 0 : i64, scratch_operands = 2 : i64, tpu.core_type = #tpu.core_type<tc>, window_params = [{transform_indices = @transform_0, window_bounds = array<i64: 144, 128>}, {pipeline_mode = #tpu.pipeline_mode<synchronous>, transform_indices = @transform_1, window_bounds = array<i64: 32, 144>}, {pipeline_mode = #tpu.pipeline_mode<synchronous>, transform_indices = @transform_2, window_bounds = array<i64: 32, 1>}, {pipeline_mode = #tpu.pipeline_mode<synchronous>, transform_indices = @transform_3, window_bounds = array<i64: 32, 1>}, {pipeline_mode = #tpu.pipeline_mode<synchronous>, transform_indices = @transform_4, window_bounds = array<i64: 32, 128>}]} {
    %c0_i32 = arith.constant 0 : i32
    %0 = arith.cmpi eq, %arg0, %c0_i32 : i32
    %1 = arith.extui %0 : i1 to i32
    %c0_i32_0 = arith.constant 0 : i32
    %2 = arith.cmpi ne, %1, %c0_i32_0 : i32
    scf.if %2 {
      %cst_12 = arith.constant 0.000000e+00 : f32
      %18 = vector.broadcast %cst_12 : f32 to vector<32x1xf32>
      %c0_13 = arith.constant 0 : index
      %c0_14 = arith.constant 0 : index
      %19 = vector.load %arg7[%c0_13, %c0_14] : memref<32x1xf32, #tpu.memory_space<vmem>>, vector<32x1xf32>
      tpu.vector_store %arg7[%c0_13, %c0_14], %18 {strides = array<i32>} : memref<32x1xf32, #tpu.memory_space<vmem>>, vector<32x1xf32>,
    } else {
    }
    %c0 = arith.constant 0 : index
    %c0_1 = arith.constant 0 : index
    %3 = vector.load %arg2[%c0, %c0_1] : memref<32x144xbf16, #tpu.memory_space<vmem>>, vector<32x144xbf16>
    %c0_2 = arith.constant 0 : index
    %c0_3 = arith.constant 0 : index
    %4 = vector.load %arg1[%c0_2, %c0_3] : memref<144x128xbf16, #tpu.memory_space<vmem>>, vector<144x128xbf16>
    %cst = arith.constant dense<0.000000e+00> : vector<32x128xf32>
    %5 = tpu.matmul %3, %4, %cst {dimension_numbers = #tpu.dot_dimension_numbers<[1], [0], [0], [1], [0, 0, 1, 1], [], []>} : vector<32x144xbf16>, vector<144x128xbf16>, vector<32x128xf32> -> vector<32x128xf32>
    %c0_4 = arith.constant 0 : index
    %c0_5 = arith.constant 0 : index
    %6 = vector.load %arg7[%c0_4, %c0_5] : memref<32x1xf32, #tpu.memory_space<vmem>>, vector<32x1xf32>
    %cst_6 = arith.constant dense<0.000000e+00> : vector<32xf32>
    %7 = vector.multi_reduction <add>, %5, %cst_6 [1] : vector<32x128xf32> to vector<32xf32>
    %8 = vector.shape_cast %7 : vector<32xf32> to vector<32x1xf32>
    %9 = arith.addf %6, %8 : vector<32x1xf32>
    %c0_7 = arith.constant 0 : index
    %c0_8 = arith.constant 0 : index
    %10 = vector.load %arg7[%c0_7, %c0_8] : memref<32x1xf32, #tpu.memory_space<vmem>>, vector<32x1xf32>
    tpu.vector_store %arg7[%c0_7, %c0_8], %9 {strides = array<i32>} : memref<32x1xf32, #tpu.memory_space<vmem>>, vector<32x1xf32>,
    %c128_i32 = arith.constant 128 : i32
    %11 = arith.muli %arg0, %c128_i32 : i32
    %12 = tpu.assume_multiple %11, 128 : i32
    %c0_9 = arith.constant 0 : index
    %13 = arith.index_cast %12 : i32 to index
    %14 = vector.load %arg6[%c0_9, %13] : memref<32x128xf32, #tpu.memory_space<vmem>>, vector<32x128xf32>
    tpu.vector_store %arg6[%c0_9, %13], %5 {strides = array<i32>} : memref<32x128xf32, #tpu.memory_space<vmem>>, vector<32x128xf32>,
    %c0_i32_10 = arith.constant 0 : i32
    %15 = arith.cmpi eq, %arg0, %c0_i32_10 : i32
    %16 = arith.extui %15 : i1 to i32
    %c0_i32_11 = arith.constant 0 : i32
    %17 = arith.cmpi ne, %16, %c0_i32_11 : i32
    scf.if %17 {
      %c0_12 = arith.constant 0 : index
      %c0_13 = arith.constant 0 : index
      %18 = vector.load %arg7[%c0_12, %c0_13] : memref<32x1xf32, #tpu.memory_space<vmem>>, vector<32x1xf32>
      %cst_14 = arith.constant 1.280000e+02 : f32
      %19 = vector.broadcast %cst_14 : f32 to vector<32x1xf32>
      %20 = arith.divf %18, %19 : vector<32x1xf32>
      %c0_15 = arith.constant 0 : index
      %c0_16 = arith.constant 0 : index
      %21 = vector.load %arg6[%c0_15, %c0_16] : memref<32x128xf32, #tpu.memory_space<vmem>>, vector<32x128xf32>
      %22 = vector.broadcast %20 : vector<32x1xf32> to vector<32x128xf32>
      %23 = arith.subf %21, %22 : vector<32x128xf32>
      %24 = arith.mulf %23, %23 : vector<32x128xf32>
      %cst_17 = arith.constant dense<0.000000e+00> : vector<32xf32>
      %25 = vector.multi_reduction <add>, %24, %cst_17 [1] : vector<32x128xf32> to vector<32xf32>
      %26 = vector.shape_cast %25 : vector<32xf32> to vector<32x1xf32>
      %cst_18 = arith.constant 1.280000e+02 : f32
      %27 = vector.broadcast %cst_18 : f32 to vector<32x1xf32>
      %28 = arith.divf %26, %27 : vector<32x1xf32>
      %c0_19 = arith.constant 0 : index
      %c0_20 = arith.constant 0 : index
      %29 = vector.load %arg3[%c0_19, %c0_20] : memref<32x1xf32, #tpu.memory_space<vmem>>, vector<32x1xf32>
      %cst_21 = arith.constant 9.99999974E-6 : f32
      %30 = vector.broadcast %cst_21 : f32 to vector<32x1xf32>
      %31 = arith.addf %28, %30 : vector<32x1xf32>
      %32 = math.rsqrt %31 : vector<32x1xf32>
      %33 = arith.mulf %29, %32 : vector<32x1xf32>
      %34 = vector.broadcast %33 : vector<32x1xf32> to vector<32x128xf32>
      %35 = arith.mulf %23, %34 : vector<32x128xf32>
      %c0_22 = arith.constant 0 : index
      %c0_23 = arith.constant 0 : index
      %36 = vector.load %arg4[%c0_22, %c0_23] : memref<32x1xf32, #tpu.memory_space<vmem>>, vector<32x1xf32>
      %37 = vector.broadcast %36 : vector<32x1xf32> to vector<32x128xf32>
      %38 = arith.addf %35, %37 : vector<32x128xf32>
      %cst_24 = arith.constant 0.000000e+00 : f32
      %39 = vector.broadcast %cst_24 : f32 to vector<32x128xf32>
      %40 = arith.maximumf %38, %39 : vector<32x128xf32>
      %41 = arith.truncf %40 : vector<32x128xf32> to vector<32x128xbf16>
      %c0_25 = arith.constant 0 : index
      %c0_26 = arith.constant 0 : index
      %42 = vector.load %arg5[%c0_25, %c0_26] : memref<32x128xbf16, #tpu.memory_space<vmem>>, vector<32x128xbf16>
      tpu.vector_store %arg5[%c0_25, %c0_26], %41 {strides = array<i32>} : memref<32x128xbf16, #tpu.memory_space<vmem>>, vector<32x128xbf16>,
    } else {
    }
    return
  }
  func.func @transform_0(%arg0: i32) -> (i32, i32) {
    %c0_i32 = arith.constant 0 : i32
    %c0_i32_0 = arith.constant 0 : i32
    return %c0_i32, %arg0 : i32, i32
  }
  func.func @transform_1(%arg0: i32) -> (i32, i32) {
    %c0_i32 = arith.constant 0 : i32
    %c0_i32_0 = arith.constant 0 : i32
    %c0_i32_1 = arith.constant 0 : i32
    return %c0_i32, %c0_i32_0 : i32, i32
  }
  func.func @transform_2(%arg0: i32) -> (i32, i32) {
    %c0_i32 = arith.constant 0 : i32
    %c0_i32_0 = arith.constant 0 : i32
    %c0_i32_1 = arith.constant 0 : i32
    return %c0_i32, %c0_i32_0 : i32, i32
  }
  func.func @transform_3(%arg0: i32) -> (i32, i32) {
    %c0_i32 = arith.constant 0 : i32
    %c0_i32_0 = arith.constant 0 : i32
    %c0_i32_1 = arith.constant 0 : i32
    return %c0_i32, %c0_i32_0 : i32, i32
  }
  func.func @transform_4(%arg0: i32) -> (i32, i32) {
    %c0_i32 = arith.constant 0 : i32
    %c0_i32_0 = arith.constant 0 : i32
    %c0_i32_1 = arith.constant 0 : i32
    return %c0_i32, %c0_i32_0 : i32, i32
  }
}

module attributes {stable_mosaic.version = 11 : i64} {
  func.func @_conv_bn_relu_kernel(%arg0: i32, %arg1: memref<288x32xbf16, #tpu.memory_space<vmem>>, %arg2: memref<64x288xbf16, #tpu.memory_space<vmem>>, %arg3: memref<64x1xf32, #tpu.memory_space<vmem>>, %arg4: memref<64x1xf32, #tpu.memory_space<vmem>>, %arg5: memref<64x32xbf16, #tpu.memory_space<vmem>>, %arg6: memref<64x32xf32, #tpu.memory_space<vmem>>, %arg7: memref<64x1xf32, #tpu.memory_space<vmem>>) attributes {dimension_semantics = [#tpu.dimension_semantics<arbitrary>], iteration_bounds = array<i64: 1>, scalar_prefetch = 0 : i64, scratch_operands = 2 : i64, tpu.core_type = #tpu.core_type<tc>, window_params = [{transform_indices = @transform_0, window_bounds = array<i64: 288, 32>}, {pipeline_mode = #tpu.pipeline_mode<synchronous>, transform_indices = @transform_1, window_bounds = array<i64: 64, 288>}, {pipeline_mode = #tpu.pipeline_mode<synchronous>, transform_indices = @transform_2, window_bounds = array<i64: 64, 1>}, {pipeline_mode = #tpu.pipeline_mode<synchronous>, transform_indices = @transform_3, window_bounds = array<i64: 64, 1>}, {pipeline_mode = #tpu.pipeline_mode<synchronous>, transform_indices = @transform_4, window_bounds = array<i64: 64, 32>}]} {
    %c0_i32 = arith.constant 0 : i32
    %0 = arith.cmpi eq, %arg0, %c0_i32 : i32
    %1 = arith.extui %0 : i1 to i32
    %c0_i32_0 = arith.constant 0 : i32
    %2 = arith.cmpi ne, %1, %c0_i32_0 : i32
    scf.if %2 {
      %cst_12 = arith.constant 0.000000e+00 : f32
      %18 = vector.broadcast %cst_12 : f32 to vector<64x1xf32>
      %c0_13 = arith.constant 0 : index
      %c0_14 = arith.constant 0 : index
      %19 = vector.load %arg7[%c0_13, %c0_14] : memref<64x1xf32, #tpu.memory_space<vmem>>, vector<64x1xf32>
      tpu.vector_store %arg7[%c0_13, %c0_14], %18 {strides = array<i32>} : memref<64x1xf32, #tpu.memory_space<vmem>>, vector<64x1xf32>,
    } else {
    }
    %c0 = arith.constant 0 : index
    %c0_1 = arith.constant 0 : index
    %3 = vector.load %arg2[%c0, %c0_1] : memref<64x288xbf16, #tpu.memory_space<vmem>>, vector<64x288xbf16>
    %c0_2 = arith.constant 0 : index
    %c0_3 = arith.constant 0 : index
    %4 = vector.load %arg1[%c0_2, %c0_3] : memref<288x32xbf16, #tpu.memory_space<vmem>>, vector<288x32xbf16>
    %cst = arith.constant dense<0.000000e+00> : vector<64x32xf32>
    %5 = tpu.matmul %3, %4, %cst {dimension_numbers = #tpu.dot_dimension_numbers<[1], [0], [0], [1], [0, 0, 1, 1], [], []>} : vector<64x288xbf16>, vector<288x32xbf16>, vector<64x32xf32> -> vector<64x32xf32>
    %c0_4 = arith.constant 0 : index
    %c0_5 = arith.constant 0 : index
    %6 = vector.load %arg7[%c0_4, %c0_5] : memref<64x1xf32, #tpu.memory_space<vmem>>, vector<64x1xf32>
    %cst_6 = arith.constant dense<0.000000e+00> : vector<64xf32>
    %7 = vector.multi_reduction <add>, %5, %cst_6 [1] : vector<64x32xf32> to vector<64xf32>
    %8 = vector.shape_cast %7 : vector<64xf32> to vector<64x1xf32>
    %9 = arith.addf %6, %8 : vector<64x1xf32>
    %c0_7 = arith.constant 0 : index
    %c0_8 = arith.constant 0 : index
    %10 = vector.load %arg7[%c0_7, %c0_8] : memref<64x1xf32, #tpu.memory_space<vmem>>, vector<64x1xf32>
    tpu.vector_store %arg7[%c0_7, %c0_8], %9 {strides = array<i32>} : memref<64x1xf32, #tpu.memory_space<vmem>>, vector<64x1xf32>,
    %c32_i32 = arith.constant 32 : i32
    %11 = arith.muli %arg0, %c32_i32 : i32
    %12 = tpu.assume_multiple %11, 128 : i32
    %c0_9 = arith.constant 0 : index
    %13 = arith.index_cast %12 : i32 to index
    %14 = vector.load %arg6[%c0_9, %13] : memref<64x32xf32, #tpu.memory_space<vmem>>, vector<64x32xf32>
    tpu.vector_store %arg6[%c0_9, %13], %5 {strides = array<i32>} : memref<64x32xf32, #tpu.memory_space<vmem>>, vector<64x32xf32>,
    %c0_i32_10 = arith.constant 0 : i32
    %15 = arith.cmpi eq, %arg0, %c0_i32_10 : i32
    %16 = arith.extui %15 : i1 to i32
    %c0_i32_11 = arith.constant 0 : i32
    %17 = arith.cmpi ne, %16, %c0_i32_11 : i32
    scf.if %17 {
      %c0_12 = arith.constant 0 : index
      %c0_13 = arith.constant 0 : index
      %18 = vector.load %arg7[%c0_12, %c0_13] : memref<64x1xf32, #tpu.memory_space<vmem>>, vector<64x1xf32>
      %cst_14 = arith.constant 3.200000e+01 : f32
      %19 = vector.broadcast %cst_14 : f32 to vector<64x1xf32>
      %20 = arith.divf %18, %19 : vector<64x1xf32>
      %c0_15 = arith.constant 0 : index
      %c0_16 = arith.constant 0 : index
      %21 = vector.load %arg6[%c0_15, %c0_16] : memref<64x32xf32, #tpu.memory_space<vmem>>, vector<64x32xf32>
      %22 = vector.broadcast %20 : vector<64x1xf32> to vector<64x32xf32>
      %23 = arith.subf %21, %22 : vector<64x32xf32>
      %24 = arith.mulf %23, %23 : vector<64x32xf32>
      %cst_17 = arith.constant dense<0.000000e+00> : vector<64xf32>
      %25 = vector.multi_reduction <add>, %24, %cst_17 [1] : vector<64x32xf32> to vector<64xf32>
      %26 = vector.shape_cast %25 : vector<64xf32> to vector<64x1xf32>
      %cst_18 = arith.constant 3.200000e+01 : f32
      %27 = vector.broadcast %cst_18 : f32 to vector<64x1xf32>
      %28 = arith.divf %26, %27 : vector<64x1xf32>
      %c0_19 = arith.constant 0 : index
      %c0_20 = arith.constant 0 : index
      %29 = vector.load %arg3[%c0_19, %c0_20] : memref<64x1xf32, #tpu.memory_space<vmem>>, vector<64x1xf32>
      %cst_21 = arith.constant 9.99999974E-6 : f32
      %30 = vector.broadcast %cst_21 : f32 to vector<64x1xf32>
      %31 = arith.addf %28, %30 : vector<64x1xf32>
      %32 = math.rsqrt %31 : vector<64x1xf32>
      %33 = arith.mulf %29, %32 : vector<64x1xf32>
      %34 = vector.broadcast %33 : vector<64x1xf32> to vector<64x32xf32>
      %35 = arith.mulf %23, %34 : vector<64x32xf32>
      %c0_22 = arith.constant 0 : index
      %c0_23 = arith.constant 0 : index
      %36 = vector.load %arg4[%c0_22, %c0_23] : memref<64x1xf32, #tpu.memory_space<vmem>>, vector<64x1xf32>
      %37 = vector.broadcast %36 : vector<64x1xf32> to vector<64x32xf32>
      %38 = arith.addf %35, %37 : vector<64x32xf32>
      %cst_24 = arith.constant 0.000000e+00 : f32
      %39 = vector.broadcast %cst_24 : f32 to vector<64x32xf32>
      %40 = arith.maximumf %38, %39 : vector<64x32xf32>
      %41 = arith.truncf %40 : vector<64x32xf32> to vector<64x32xbf16>
      %c0_25 = arith.constant 0 : index
      %c0_26 = arith.constant 0 : index
      %42 = vector.load %arg5[%c0_25, %c0_26] : memref<64x32xbf16, #tpu.memory_space<vmem>>, vector<64x32xbf16>
      tpu.vector_store %arg5[%c0_25, %c0_26], %41 {strides = array<i32>} : memref<64x32xbf16, #tpu.memory_space<vmem>>, vector<64x32xbf16>,
    } else {
    }
    return
  }
  func.func @transform_0(%arg0: i32) -> (i32, i32) {
    %c0_i32 = arith.constant 0 : i32
    %c0_i32_0 = arith.constant 0 : i32
    return %c0_i32, %arg0 : i32, i32
  }
  func.func @transform_1(%arg0: i32) -> (i32, i32) {
    %c0_i32 = arith.constant 0 : i32
    %c0_i32_0 = arith.constant 0 : i32
    %c0_i32_1 = arith.constant 0 : i32
    return %c0_i32, %c0_i32_0 : i32, i32
  }
  func.func @transform_2(%arg0: i32) -> (i32, i32) {
    %c0_i32 = arith.constant 0 : i32
    %c0_i32_0 = arith.constant 0 : i32
    %c0_i32_1 = arith.constant 0 : i32
    return %c0_i32, %c0_i32_0 : i32, i32
  }
  func.func @transform_3(%arg0: i32) -> (i32, i32) {
    %c0_i32 = arith.constant 0 : i32
    %c0_i32_0 = arith.constant 0 : i32
    %c0_i32_1 = arith.constant 0 : i32
    return %c0_i32, %c0_i32_0 : i32, i32
  }
  func.func @transform_4(%arg0: i32) -> (i32, i32) {
    %c0_i32 = arith.constant 0 : i32
    %c0_i32_0 = arith.constant 0 : i32
    %c0_i32_1 = arith.constant 0 : i32
    return %c0_i32, %c0_i32_0 : i32, i32
  }
}

module attributes {stable_mosaic.version = 11 : i64} {
  func.func @_latent_kernel(%arg0: memref<2x1024xbf16, #tpu.memory_space<vmem>>, %arg1: memref<1024x128xbf16, #tpu.memory_space<vmem>>, %arg2: memref<1x128xf32, #tpu.memory_space<vmem>>, %arg3: memref<2x64xf32, #tpu.memory_space<vmem>>, %arg4: memref<64x1024xbf16, #tpu.memory_space<vmem>>, %arg5: memref<1x1024xf32, #tpu.memory_space<vmem>>, %arg6: memref<2x128xf32, #tpu.memory_space<vmem>>, %arg7: memref<2x1024xbf16, #tpu.memory_space<vmem>>) attributes {dimension_semantics = [], scalar_prefetch = 0 : i64, scratch_operands = 0 : i64, tpu.core_type = #tpu.core_type<tc>} {
    %c0 = arith.constant 0 : index
    %c0_0 = arith.constant 0 : index
    %0 = vector.load %arg0[%c0, %c0_0] : memref<2x1024xbf16, #tpu.memory_space<vmem>>, vector<2x1024xbf16>
    %c0_1 = arith.constant 0 : index
    %c0_2 = arith.constant 0 : index
    %1 = vector.load %arg1[%c0_1, %c0_2] : memref<1024x128xbf16, #tpu.memory_space<vmem>>, vector<1024x128xbf16>
    %cst = arith.constant dense<0.000000e+00> : vector<2x128xf32>
    %2 = tpu.matmul %0, %1, %cst {dimension_numbers = #tpu.dot_dimension_numbers<[1], [0], [0], [1], [0, 0, 1, 1], [], []>} : vector<2x1024xbf16>, vector<1024x128xbf16>, vector<2x128xf32> -> vector<2x128xf32>
    %c0_3 = arith.constant 0 : index
    %c0_4 = arith.constant 0 : index
    %3 = vector.load %arg2[%c0_3, %c0_4] : memref<1x128xf32, #tpu.memory_space<vmem>>, vector<1x128xf32>
    %4 = vector.broadcast %3 : vector<1x128xf32> to vector<2x128xf32>
    %5 = arith.addf %2, %4 : vector<2x128xf32>
    %6 = vector.extract_strided_slice %5 {offsets = [0, 0], sizes = [2, 64], strides = [1, 1]} : vector<2x128xf32> to vector<2x64xf32>
    %7 = vector.extract_strided_slice %5 {offsets = [0, 64], sizes = [2, 64], strides = [1, 1]} : vector<2x128xf32> to vector<2x64xf32>
    %c0_5 = arith.constant 0 : index
    %c0_6 = arith.constant 0 : index
    %8 = vector.load %arg3[%c0_5, %c0_6] : memref<2x64xf32, #tpu.memory_space<vmem>>, vector<2x64xf32>
    %cst_7 = arith.constant 5.000000e-01 : f32
    %9 = vector.broadcast %cst_7 : f32 to vector<2x64xf32>
    %10 = arith.mulf %9, %7 : vector<2x64xf32>
    %11 = math.exp %10 : vector<2x64xf32>
    %12 = arith.mulf %8, %11 : vector<2x64xf32>
    %13 = arith.addf %6, %12 : vector<2x64xf32>
    %14 = arith.truncf %13 : vector<2x64xf32> to vector<2x64xbf16>
    %c0_8 = arith.constant 0 : index
    %c0_9 = arith.constant 0 : index
    %15 = vector.load %arg4[%c0_8, %c0_9] : memref<64x1024xbf16, #tpu.memory_space<vmem>>, vector<64x1024xbf16>
    %cst_10 = arith.constant dense<0.000000e+00> : vector<2x1024xf32>
    %16 = tpu.matmul %14, %15, %cst_10 {dimension_numbers = #tpu.dot_dimension_numbers<[1], [0], [0], [1], [0, 0, 1, 1], [], []>} : vector<2x64xbf16>, vector<64x1024xbf16>, vector<2x1024xf32> -> vector<2x1024xf32>
    %c0_11 = arith.constant 0 : index
    %c0_12 = arith.constant 0 : index
    %17 = vector.load %arg5[%c0_11, %c0_12] : memref<1x1024xf32, #tpu.memory_space<vmem>>, vector<1x1024xf32>
    %18 = vector.broadcast %17 : vector<1x1024xf32> to vector<2x1024xf32>
    %19 = arith.addf %16, %18 : vector<2x1024xf32>
    %c0_13 = arith.constant 0 : index
    %c0_14 = arith.constant 0 : index
    %20 = vector.load %arg6[%c0_13, %c0_14] : memref<2x128xf32, #tpu.memory_space<vmem>>, vector<2x128xf32>
    tpu.vector_store %arg6[%c0_13, %c0_14], %5 {strides = array<i32>} : memref<2x128xf32, #tpu.memory_space<vmem>>, vector<2x128xf32>,
    %21 = arith.truncf %19 : vector<2x1024xf32> to vector<2x1024xbf16>
    %c0_15 = arith.constant 0 : index
    %c0_16 = arith.constant 0 : index
    %22 = vector.load %arg7[%c0_15, %c0_16] : memref<2x1024xbf16, #tpu.memory_space<vmem>>, vector<2x1024xbf16>
    tpu.vector_store %arg7[%c0_15, %c0_16], %21 {strides = array<i32>} : memref<2x1024xbf16, #tpu.memory_space<vmem>>, vector<2x1024xbf16>,
    return
  }
}

module attributes {stable_mosaic.version = 11 : i64} {
  func.func @_conv_bn_relu_kernel(%arg0: i32, %arg1: memref<256x32xbf16, #tpu.memory_space<vmem>>, %arg2: memref<128x256xbf16, #tpu.memory_space<vmem>>, %arg3: memref<32x1xf32, #tpu.memory_space<vmem>>, %arg4: memref<32x1xf32, #tpu.memory_space<vmem>>, %arg5: memref<128x32xbf16, #tpu.memory_space<vmem>>, %arg6: memref<128x32xf32, #tpu.memory_space<vmem>>, %arg7: memref<128x1xf32, #tpu.memory_space<vmem>>) attributes {dimension_semantics = [#tpu.dimension_semantics<arbitrary>], iteration_bounds = array<i64: 1>, scalar_prefetch = 0 : i64, scratch_operands = 2 : i64, tpu.core_type = #tpu.core_type<tc>, window_params = [{transform_indices = @transform_0, window_bounds = array<i64: 256, 32>}, {pipeline_mode = #tpu.pipeline_mode<synchronous>, transform_indices = @transform_1, window_bounds = array<i64: 128, 256>}, {pipeline_mode = #tpu.pipeline_mode<synchronous>, transform_indices = @transform_2, window_bounds = array<i64: 32, 1>}, {pipeline_mode = #tpu.pipeline_mode<synchronous>, transform_indices = @transform_3, window_bounds = array<i64: 32, 1>}, {pipeline_mode = #tpu.pipeline_mode<synchronous>, transform_indices = @transform_4, window_bounds = array<i64: 128, 32>}]} {
    %c0_i32 = arith.constant 0 : i32
    %0 = arith.cmpi eq, %arg0, %c0_i32 : i32
    %1 = arith.extui %0 : i1 to i32
    %c0_i32_0 = arith.constant 0 : i32
    %2 = arith.cmpi ne, %1, %c0_i32_0 : i32
    scf.if %2 {
      %cst_12 = arith.constant 0.000000e+00 : f32
      %18 = vector.broadcast %cst_12 : f32 to vector<128x1xf32>
      %c0_13 = arith.constant 0 : index
      %c0_14 = arith.constant 0 : index
      %19 = vector.load %arg7[%c0_13, %c0_14] : memref<128x1xf32, #tpu.memory_space<vmem>>, vector<128x1xf32>
      tpu.vector_store %arg7[%c0_13, %c0_14], %18 {strides = array<i32>} : memref<128x1xf32, #tpu.memory_space<vmem>>, vector<128x1xf32>,
    } else {
    }
    %c0 = arith.constant 0 : index
    %c0_1 = arith.constant 0 : index
    %3 = vector.load %arg2[%c0, %c0_1] : memref<128x256xbf16, #tpu.memory_space<vmem>>, vector<128x256xbf16>
    %c0_2 = arith.constant 0 : index
    %c0_3 = arith.constant 0 : index
    %4 = vector.load %arg1[%c0_2, %c0_3] : memref<256x32xbf16, #tpu.memory_space<vmem>>, vector<256x32xbf16>
    %cst = arith.constant dense<0.000000e+00> : vector<128x32xf32>
    %5 = tpu.matmul %3, %4, %cst {dimension_numbers = #tpu.dot_dimension_numbers<[1], [0], [0], [1], [0, 0, 1, 1], [], []>} : vector<128x256xbf16>, vector<256x32xbf16>, vector<128x32xf32> -> vector<128x32xf32>
    %c0_4 = arith.constant 0 : index
    %c0_5 = arith.constant 0 : index
    %6 = vector.load %arg7[%c0_4, %c0_5] : memref<128x1xf32, #tpu.memory_space<vmem>>, vector<128x1xf32>
    %cst_6 = arith.constant dense<0.000000e+00> : vector<128xf32>
    %7 = vector.multi_reduction <add>, %5, %cst_6 [1] : vector<128x32xf32> to vector<128xf32>
    %8 = vector.shape_cast %7 : vector<128xf32> to vector<128x1xf32>
    %9 = arith.addf %6, %8 : vector<128x1xf32>
    %c0_7 = arith.constant 0 : index
    %c0_8 = arith.constant 0 : index
    %10 = vector.load %arg7[%c0_7, %c0_8] : memref<128x1xf32, #tpu.memory_space<vmem>>, vector<128x1xf32>
    tpu.vector_store %arg7[%c0_7, %c0_8], %9 {strides = array<i32>} : memref<128x1xf32, #tpu.memory_space<vmem>>, vector<128x1xf32>,
    %c32_i32 = arith.constant 32 : i32
    %11 = arith.muli %arg0, %c32_i32 : i32
    %12 = tpu.assume_multiple %11, 128 : i32
    %c0_9 = arith.constant 0 : index
    %13 = arith.index_cast %12 : i32 to index
    %14 = vector.load %arg6[%c0_9, %13] : memref<128x32xf32, #tpu.memory_space<vmem>>, vector<128x32xf32>
    tpu.vector_store %arg6[%c0_9, %13], %5 {strides = array<i32>} : memref<128x32xf32, #tpu.memory_space<vmem>>, vector<128x32xf32>,
    %c0_i32_10 = arith.constant 0 : i32
    %15 = arith.cmpi eq, %arg0, %c0_i32_10 : i32
    %16 = arith.extui %15 : i1 to i32
    %c0_i32_11 = arith.constant 0 : i32
    %17 = arith.cmpi ne, %16, %c0_i32_11 : i32
    scf.if %17 {
      %c0_12 = arith.constant 0 : index
      %c0_13 = arith.constant 0 : index
      %18 = vector.load %arg7[%c0_12, %c0_13] : memref<128x1xf32, #tpu.memory_space<vmem>>, vector<128x1xf32>
      %19 = vector.extract_strided_slice %18 {offsets = [0, 0], sizes = [32, 1], strides = [1, 1]} : vector<128x1xf32> to vector<32x1xf32>
      %20 = vector.extract_strided_slice %18 {offsets = [32, 0], sizes = [32, 1], strides = [1, 1]} : vector<128x1xf32> to vector<32x1xf32>
      %21 = arith.addf %19, %20 : vector<32x1xf32>
      %22 = vector.extract_strided_slice %18 {offsets = [64, 0], sizes = [32, 1], strides = [1, 1]} : vector<128x1xf32> to vector<32x1xf32>
      %23 = arith.addf %21, %22 : vector<32x1xf32>
      %24 = vector.extract_strided_slice %18 {offsets = [96, 0], sizes = [32, 1], strides = [1, 1]} : vector<128x1xf32> to vector<32x1xf32>
      %25 = arith.addf %23, %24 : vector<32x1xf32>
      %cst_14 = arith.constant 1.280000e+02 : f32
      %26 = vector.broadcast %cst_14 : f32 to vector<32x1xf32>
      %27 = arith.divf %25, %26 : vector<32x1xf32>
      %c0_15 = arith.constant 0 : index
      %c0_16 = arith.constant 0 : index
      %28 = vector.load %arg6[%c0_15, %c0_16] : memref<128x32xf32, #tpu.memory_space<vmem>>, vector<128x32xf32>
      %29 = tpu.concatenate %27, %27, %27, %27 in 0 : vector<32x1xf32>, vector<32x1xf32>, vector<32x1xf32>, vector<32x1xf32> -> vector<128x1xf32>
      %30 = vector.broadcast %29 : vector<128x1xf32> to vector<128x32xf32>
      %31 = arith.subf %28, %30 : vector<128x32xf32>
      %32 = arith.mulf %31, %31 : vector<128x32xf32>
      %cst_17 = arith.constant dense<0.000000e+00> : vector<128xf32>
      %33 = vector.multi_reduction <add>, %32, %cst_17 [1] : vector<128x32xf32> to vector<128xf32>
      %34 = vector.shape_cast %33 : vector<128xf32> to vector<128x1xf32>
      %35 = vector.extract_strided_slice %34 {offsets = [0, 0], sizes = [32, 1], strides = [1, 1]} : vector<128x1xf32> to vector<32x1xf32>
      %36 = vector.extract_strided_slice %34 {offsets = [32, 0], sizes = [32, 1], strides = [1, 1]} : vector<128x1xf32> to vector<32x1xf32>
      %37 = arith.addf %35, %36 : vector<32x1xf32>
      %38 = vector.extract_strided_slice %34 {offsets = [64, 0], sizes = [32, 1], strides = [1, 1]} : vector<128x1xf32> to vector<32x1xf32>
      %39 = arith.addf %37, %38 : vector<32x1xf32>
      %40 = vector.extract_strided_slice %34 {offsets = [96, 0], sizes = [32, 1], strides = [1, 1]} : vector<128x1xf32> to vector<32x1xf32>
      %41 = arith.addf %39, %40 : vector<32x1xf32>
      %cst_18 = arith.constant 1.280000e+02 : f32
      %42 = vector.broadcast %cst_18 : f32 to vector<32x1xf32>
      %43 = arith.divf %41, %42 : vector<32x1xf32>
      %c0_19 = arith.constant 0 : index
      %c0_20 = arith.constant 0 : index
      %44 = vector.load %arg3[%c0_19, %c0_20] : memref<32x1xf32, #tpu.memory_space<vmem>>, vector<32x1xf32>
      %cst_21 = arith.constant 9.99999974E-6 : f32
      %45 = vector.broadcast %cst_21 : f32 to vector<32x1xf32>
      %46 = arith.addf %43, %45 : vector<32x1xf32>
      %47 = math.rsqrt %46 : vector<32x1xf32>
      %48 = arith.mulf %44, %47 : vector<32x1xf32>
      %49 = tpu.concatenate %48, %48, %48, %48 in 0 : vector<32x1xf32>, vector<32x1xf32>, vector<32x1xf32>, vector<32x1xf32> -> vector<128x1xf32>
      %50 = vector.broadcast %49 : vector<128x1xf32> to vector<128x32xf32>
      %51 = arith.mulf %31, %50 : vector<128x32xf32>
      %c0_22 = arith.constant 0 : index
      %c0_23 = arith.constant 0 : index
      %52 = vector.load %arg4[%c0_22, %c0_23] : memref<32x1xf32, #tpu.memory_space<vmem>>, vector<32x1xf32>
      %53 = tpu.concatenate %52, %52, %52, %52 in 0 : vector<32x1xf32>, vector<32x1xf32>, vector<32x1xf32>, vector<32x1xf32> -> vector<128x1xf32>
      %54 = vector.broadcast %53 : vector<128x1xf32> to vector<128x32xf32>
      %55 = arith.addf %51, %54 : vector<128x32xf32>
      %cst_24 = arith.constant 0.000000e+00 : f32
      %56 = vector.broadcast %cst_24 : f32 to vector<128x32xf32>
      %57 = arith.maximumf %55, %56 : vector<128x32xf32>
      %58 = arith.truncf %57 : vector<128x32xf32> to vector<128x32xbf16>
      %c0_25 = arith.constant 0 : index
      %c0_26 = arith.constant 0 : index
      %59 = vector.load %arg5[%c0_25, %c0_26] : memref<128x32xbf16, #tpu.memory_space<vmem>>, vector<128x32xbf16>
      tpu.vector_store %arg5[%c0_25, %c0_26], %58 {strides = array<i32>} : memref<128x32xbf16, #tpu.memory_space<vmem>>, vector<128x32xbf16>,
    } else {
    }
    return
  }
  func.func @transform_0(%arg0: i32) -> (i32, i32) {
    %c0_i32 = arith.constant 0 : i32
    %c0_i32_0 = arith.constant 0 : i32
    return %c0_i32, %arg0 : i32, i32
  }
  func.func @transform_1(%arg0: i32) -> (i32, i32) {
    %c0_i32 = arith.constant 0 : i32
    %c0_i32_0 = arith.constant 0 : i32
    %c0_i32_1 = arith.constant 0 : i32
    return %c0_i32, %c0_i32_0 : i32, i32
  }
  func.func @transform_2(%arg0: i32) -> (i32, i32) {
    %c0_i32 = arith.constant 0 : i32
    %c0_i32_0 = arith.constant 0 : i32
    %c0_i32_1 = arith.constant 0 : i32
    return %c0_i32, %c0_i32_0 : i32, i32
  }
  func.func @transform_3(%arg0: i32) -> (i32, i32) {
    %c0_i32 = arith.constant 0 : i32
    %c0_i32_0 = arith.constant 0 : i32
    %c0_i32_1 = arith.constant 0 : i32
    return %c0_i32, %c0_i32_0 : i32, i32
  }
  func.func @transform_4(%arg0: i32) -> (i32, i32) {
    %c0_i32 = arith.constant 0 : i32
    %c0_i32_0 = arith.constant 0 : i32
    %c0_i32_1 = arith.constant 0 : i32
    return %c0_i32, %c0_i32_0 : i32, i32
  }
}

module attributes {stable_mosaic.version = 11 : i64} {
  func.func @_conv_bn_relu_kernel(%arg0: i32, %arg1: memref<128x128xbf16, #tpu.memory_space<vmem>>, %arg2: memref<64x128xbf16, #tpu.memory_space<vmem>>, %arg3: memref<16x1xf32, #tpu.memory_space<vmem>>, %arg4: memref<16x1xf32, #tpu.memory_space<vmem>>, %arg5: memref<64x128xbf16, #tpu.memory_space<vmem>>, %arg6: memref<64x128xf32, #tpu.memory_space<vmem>>, %arg7: memref<64x1xf32, #tpu.memory_space<vmem>>) attributes {dimension_semantics = [#tpu.dimension_semantics<arbitrary>], iteration_bounds = array<i64: 1>, scalar_prefetch = 0 : i64, scratch_operands = 2 : i64, tpu.core_type = #tpu.core_type<tc>, window_params = [{transform_indices = @transform_0, window_bounds = array<i64: 128, 128>}, {pipeline_mode = #tpu.pipeline_mode<synchronous>, transform_indices = @transform_1, window_bounds = array<i64: 64, 128>}, {pipeline_mode = #tpu.pipeline_mode<synchronous>, transform_indices = @transform_2, window_bounds = array<i64: 16, 1>}, {pipeline_mode = #tpu.pipeline_mode<synchronous>, transform_indices = @transform_3, window_bounds = array<i64: 16, 1>}, {pipeline_mode = #tpu.pipeline_mode<synchronous>, transform_indices = @transform_4, window_bounds = array<i64: 64, 128>}]} {
    %c0_i32 = arith.constant 0 : i32
    %0 = arith.cmpi eq, %arg0, %c0_i32 : i32
    %1 = arith.extui %0 : i1 to i32
    %c0_i32_0 = arith.constant 0 : i32
    %2 = arith.cmpi ne, %1, %c0_i32_0 : i32
    scf.if %2 {
      %cst_12 = arith.constant 0.000000e+00 : f32
      %18 = vector.broadcast %cst_12 : f32 to vector<64x1xf32>
      %c0_13 = arith.constant 0 : index
      %c0_14 = arith.constant 0 : index
      %19 = vector.load %arg7[%c0_13, %c0_14] : memref<64x1xf32, #tpu.memory_space<vmem>>, vector<64x1xf32>
      tpu.vector_store %arg7[%c0_13, %c0_14], %18 {strides = array<i32>} : memref<64x1xf32, #tpu.memory_space<vmem>>, vector<64x1xf32>,
    } else {
    }
    %c0 = arith.constant 0 : index
    %c0_1 = arith.constant 0 : index
    %3 = vector.load %arg2[%c0, %c0_1] : memref<64x128xbf16, #tpu.memory_space<vmem>>, vector<64x128xbf16>
    %c0_2 = arith.constant 0 : index
    %c0_3 = arith.constant 0 : index
    %4 = vector.load %arg1[%c0_2, %c0_3] : memref<128x128xbf16, #tpu.memory_space<vmem>>, vector<128x128xbf16>
    %cst = arith.constant dense<0.000000e+00> : vector<64x128xf32>
    %5 = tpu.matmul %3, %4, %cst {dimension_numbers = #tpu.dot_dimension_numbers<[1], [0], [0], [1], [0, 0, 1, 1], [], []>} : vector<64x128xbf16>, vector<128x128xbf16>, vector<64x128xf32> -> vector<64x128xf32>
    %c0_4 = arith.constant 0 : index
    %c0_5 = arith.constant 0 : index
    %6 = vector.load %arg7[%c0_4, %c0_5] : memref<64x1xf32, #tpu.memory_space<vmem>>, vector<64x1xf32>
    %cst_6 = arith.constant dense<0.000000e+00> : vector<64xf32>
    %7 = vector.multi_reduction <add>, %5, %cst_6 [1] : vector<64x128xf32> to vector<64xf32>
    %8 = vector.shape_cast %7 : vector<64xf32> to vector<64x1xf32>
    %9 = arith.addf %6, %8 : vector<64x1xf32>
    %c0_7 = arith.constant 0 : index
    %c0_8 = arith.constant 0 : index
    %10 = vector.load %arg7[%c0_7, %c0_8] : memref<64x1xf32, #tpu.memory_space<vmem>>, vector<64x1xf32>
    tpu.vector_store %arg7[%c0_7, %c0_8], %9 {strides = array<i32>} : memref<64x1xf32, #tpu.memory_space<vmem>>, vector<64x1xf32>,
    %c128_i32 = arith.constant 128 : i32
    %11 = arith.muli %arg0, %c128_i32 : i32
    %12 = tpu.assume_multiple %11, 128 : i32
    %c0_9 = arith.constant 0 : index
    %13 = arith.index_cast %12 : i32 to index
    %14 = vector.load %arg6[%c0_9, %13] : memref<64x128xf32, #tpu.memory_space<vmem>>, vector<64x128xf32>
    tpu.vector_store %arg6[%c0_9, %13], %5 {strides = array<i32>} : memref<64x128xf32, #tpu.memory_space<vmem>>, vector<64x128xf32>,
    %c0_i32_10 = arith.constant 0 : i32
    %15 = arith.cmpi eq, %arg0, %c0_i32_10 : i32
    %16 = arith.extui %15 : i1 to i32
    %c0_i32_11 = arith.constant 0 : i32
    %17 = arith.cmpi ne, %16, %c0_i32_11 : i32
    scf.if %17 {
      %c0_12 = arith.constant 0 : index
      %c0_13 = arith.constant 0 : index
      %18 = vector.load %arg7[%c0_12, %c0_13] : memref<64x1xf32, #tpu.memory_space<vmem>>, vector<64x1xf32>
      %19 = vector.extract_strided_slice %18 {offsets = [0, 0], sizes = [16, 1], strides = [1, 1]} : vector<64x1xf32> to vector<16x1xf32>
      %20 = vector.extract_strided_slice %18 {offsets = [16, 0], sizes = [16, 1], strides = [1, 1]} : vector<64x1xf32> to vector<16x1xf32>
      %21 = arith.addf %19, %20 : vector<16x1xf32>
      %22 = vector.extract_strided_slice %18 {offsets = [32, 0], sizes = [16, 1], strides = [1, 1]} : vector<64x1xf32> to vector<16x1xf32>
      %23 = arith.addf %21, %22 : vector<16x1xf32>
      %24 = vector.extract_strided_slice %18 {offsets = [48, 0], sizes = [16, 1], strides = [1, 1]} : vector<64x1xf32> to vector<16x1xf32>
      %25 = arith.addf %23, %24 : vector<16x1xf32>
      %cst_14 = arith.constant 5.120000e+02 : f32
      %26 = vector.broadcast %cst_14 : f32 to vector<16x1xf32>
      %27 = arith.divf %25, %26 : vector<16x1xf32>
      %c0_15 = arith.constant 0 : index
      %c0_16 = arith.constant 0 : index
      %28 = vector.load %arg6[%c0_15, %c0_16] : memref<64x128xf32, #tpu.memory_space<vmem>>, vector<64x128xf32>
      %29 = tpu.concatenate %27, %27, %27, %27 in 0 : vector<16x1xf32>, vector<16x1xf32>, vector<16x1xf32>, vector<16x1xf32> -> vector<64x1xf32>
      %30 = vector.broadcast %29 : vector<64x1xf32> to vector<64x128xf32>
      %31 = arith.subf %28, %30 : vector<64x128xf32>
      %32 = arith.mulf %31, %31 : vector<64x128xf32>
      %cst_17 = arith.constant dense<0.000000e+00> : vector<64xf32>
      %33 = vector.multi_reduction <add>, %32, %cst_17 [1] : vector<64x128xf32> to vector<64xf32>
      %34 = vector.shape_cast %33 : vector<64xf32> to vector<64x1xf32>
      %35 = vector.extract_strided_slice %34 {offsets = [0, 0], sizes = [16, 1], strides = [1, 1]} : vector<64x1xf32> to vector<16x1xf32>
      %36 = vector.extract_strided_slice %34 {offsets = [16, 0], sizes = [16, 1], strides = [1, 1]} : vector<64x1xf32> to vector<16x1xf32>
      %37 = arith.addf %35, %36 : vector<16x1xf32>
      %38 = vector.extract_strided_slice %34 {offsets = [32, 0], sizes = [16, 1], strides = [1, 1]} : vector<64x1xf32> to vector<16x1xf32>
      %39 = arith.addf %37, %38 : vector<16x1xf32>
      %40 = vector.extract_strided_slice %34 {offsets = [48, 0], sizes = [16, 1], strides = [1, 1]} : vector<64x1xf32> to vector<16x1xf32>
      %41 = arith.addf %39, %40 : vector<16x1xf32>
      %cst_18 = arith.constant 5.120000e+02 : f32
      %42 = vector.broadcast %cst_18 : f32 to vector<16x1xf32>
      %43 = arith.divf %41, %42 : vector<16x1xf32>
      %c0_19 = arith.constant 0 : index
      %c0_20 = arith.constant 0 : index
      %44 = vector.load %arg3[%c0_19, %c0_20] : memref<16x1xf32, #tpu.memory_space<vmem>>, vector<16x1xf32>
      %cst_21 = arith.constant 9.99999974E-6 : f32
      %45 = vector.broadcast %cst_21 : f32 to vector<16x1xf32>
      %46 = arith.addf %43, %45 : vector<16x1xf32>
      %47 = math.rsqrt %46 : vector<16x1xf32>
      %48 = arith.mulf %44, %47 : vector<16x1xf32>
      %49 = tpu.concatenate %48, %48, %48, %48 in 0 : vector<16x1xf32>, vector<16x1xf32>, vector<16x1xf32>, vector<16x1xf32> -> vector<64x1xf32>
      %50 = vector.broadcast %49 : vector<64x1xf32> to vector<64x128xf32>
      %51 = arith.mulf %31, %50 : vector<64x128xf32>
      %c0_22 = arith.constant 0 : index
      %c0_23 = arith.constant 0 : index
      %52 = vector.load %arg4[%c0_22, %c0_23] : memref<16x1xf32, #tpu.memory_space<vmem>>, vector<16x1xf32>
      %53 = tpu.concatenate %52, %52, %52, %52 in 0 : vector<16x1xf32>, vector<16x1xf32>, vector<16x1xf32>, vector<16x1xf32> -> vector<64x1xf32>
      %54 = vector.broadcast %53 : vector<64x1xf32> to vector<64x128xf32>
      %55 = arith.addf %51, %54 : vector<64x128xf32>
      %cst_24 = arith.constant 0.000000e+00 : f32
      %56 = vector.broadcast %cst_24 : f32 to vector<64x128xf32>
      %57 = arith.maximumf %55, %56 : vector<64x128xf32>
      %58 = arith.truncf %57 : vector<64x128xf32> to vector<64x128xbf16>
      %c0_25 = arith.constant 0 : index
      %c0_26 = arith.constant 0 : index
      %59 = vector.load %arg5[%c0_25, %c0_26] : memref<64x128xbf16, #tpu.memory_space<vmem>>, vector<64x128xbf16>
      tpu.vector_store %arg5[%c0_25, %c0_26], %58 {strides = array<i32>} : memref<64x128xbf16, #tpu.memory_space<vmem>>, vector<64x128xbf16>,
    } else {
    }
    return
  }
  func.func @transform_0(%arg0: i32) -> (i32, i32) {
    %c0_i32 = arith.constant 0 : i32
    %c0_i32_0 = arith.constant 0 : i32
    return %c0_i32, %arg0 : i32, i32
  }
  func.func @transform_1(%arg0: i32) -> (i32, i32) {
    %c0_i32 = arith.constant 0 : i32
    %c0_i32_0 = arith.constant 0 : i32
    %c0_i32_1 = arith.constant 0 : i32
    return %c0_i32, %c0_i32_0 : i32, i32
  }
  func.func @transform_2(%arg0: i32) -> (i32, i32) {
    %c0_i32 = arith.constant 0 : i32
    %c0_i32_0 = arith.constant 0 : i32
    %c0_i32_1 = arith.constant 0 : i32
    return %c0_i32, %c0_i32_0 : i32, i32
  }
  func.func @transform_3(%arg0: i32) -> (i32, i32) {
    %c0_i32 = arith.constant 0 : i32
    %c0_i32_0 = arith.constant 0 : i32
    %c0_i32_1 = arith.constant 0 : i32
    return %c0_i32, %c0_i32_0 : i32, i32
  }
  func.func @transform_4(%arg0: i32) -> (i32, i32) {
    %c0_i32 = arith.constant 0 : i32
    %c0_i32_0 = arith.constant 0 : i32
    %c0_i32_1 = arith.constant 0 : i32
    return %c0_i32, %c0_i32_0 : i32, i32
  }
}

module attributes {stable_mosaic.version = 11 : i64} {
  func.func @_conv_sigmoid_kernel(%arg0: i32, %arg1: memref<64x512xbf16, #tpu.memory_space<vmem>>, %arg2: memref<12x64xbf16, #tpu.memory_space<vmem>>, %arg3: memref<12x1xf32, #tpu.memory_space<vmem>>, %arg4: memref<12x512xf32, #tpu.memory_space<vmem>>) attributes {dimension_semantics = [#tpu.dimension_semantics<parallel>], iteration_bounds = array<i64: 1>, scalar_prefetch = 0 : i64, scratch_operands = 0 : i64, tpu.core_type = #tpu.core_type<tc>, window_params = [{transform_indices = @transform_0, window_bounds = array<i64: 64, 512>}, {pipeline_mode = #tpu.pipeline_mode<synchronous>, transform_indices = @transform_1, window_bounds = array<i64: 12, 64>}, {pipeline_mode = #tpu.pipeline_mode<synchronous>, transform_indices = @transform_2, window_bounds = array<i64: 12, 1>}, {transform_indices = @transform_3, window_bounds = array<i64: 12, 512>}]} {
    %c0 = arith.constant 0 : index
    %c0_0 = arith.constant 0 : index
    %0 = vector.load %arg2[%c0, %c0_0] : memref<12x64xbf16, #tpu.memory_space<vmem>>, vector<12x64xbf16>
    %c0_1 = arith.constant 0 : index
    %c0_2 = arith.constant 0 : index
    %1 = vector.load %arg1[%c0_1, %c0_2] : memref<64x512xbf16, #tpu.memory_space<vmem>>, vector<64x512xbf16>
    %cst = arith.constant dense<0.000000e+00> : vector<12x512xf32>
    %2 = tpu.matmul %0, %1, %cst {dimension_numbers = #tpu.dot_dimension_numbers<[1], [0], [0], [1], [0, 0, 1, 1], [], []>} : vector<12x64xbf16>, vector<64x512xbf16>, vector<12x512xf32> -> vector<12x512xf32>
    %c0_3 = arith.constant 0 : index
    %c0_4 = arith.constant 0 : index
    %3 = vector.load %arg3[%c0_3, %c0_4] : memref<12x1xf32, #tpu.memory_space<vmem>>, vector<12x1xf32>
    %4 = vector.broadcast %3 : vector<12x1xf32> to vector<12x512xf32>
    %5 = arith.addf %2, %4 : vector<12x512xf32>
    %6 = arith.negf %5 : vector<12x512xf32>
    %7 = math.exp %6 : vector<12x512xf32>
    %cst_5 = arith.constant 1.000000e+00 : f32
    %8 = vector.broadcast %cst_5 : f32 to vector<12x512xf32>
    %9 = arith.addf %8, %7 : vector<12x512xf32>
    %10 = arith.divf %8, %9 : vector<12x512xf32>
    %c0_6 = arith.constant 0 : index
    %c0_7 = arith.constant 0 : index
    %11 = vector.load %arg4[%c0_6, %c0_7] : memref<12x512xf32, #tpu.memory_space<vmem>>, vector<12x512xf32>
    tpu.vector_store %arg4[%c0_6, %c0_7], %10 {strides = array<i32>} : memref<12x512xf32, #tpu.memory_space<vmem>>, vector<12x512xf32>,
    return
  }
  func.func @transform_0(%arg0: i32) -> (i32, i32) {
    %c0_i32 = arith.constant 0 : i32
    %c0_i32_0 = arith.constant 0 : i32
    return %c0_i32, %arg0 : i32, i32
  }
  func.func @transform_1(%arg0: i32) -> (i32, i32) {
    %c0_i32 = arith.constant 0 : i32
    %c0_i32_0 = arith.constant 0 : i32
    %c0_i32_1 = arith.constant 0 : i32
    return %c0_i32, %c0_i32_0 : i32, i32
  }
  func.func @transform_2(%arg0: i32) -> (i32, i32) {
    %c0_i32 = arith.constant 0 : i32
    %c0_i32_0 = arith.constant 0 : i32
    %c0_i32_1 = arith.constant 0 : i32
    return %c0_i32, %c0_i32_0 : i32, i32
  }
  func.func @transform_3(%arg0: i32) -> (i32, i32) {
    %c0_i32 = arith.constant 0 : i32
    %c0_i32_0 = arith.constant 0 : i32
    return %c0_i32, %arg0 : i32, i32
  }
}

</mosaic_0001>

<bundles_post_ra>
// kernel: vae_forward.7
= control target key start
LH: loop header
LB: loop body
LE: loop exit
PB: predicated region body
PF: predicated region fallthrough
CT: control target
= control target key end

     0   :  { %vm80_vm0 = vcmask 1044480   ;;  %vm81_vm1 = vcmask 1045504   ;;  %v390_v2 = vmov 65535   ;;  %vm76_vm2 = vcmask 220160   ;;  %s538_s0 = inlined_call_operand.vmem [shape: bf16[27,512], index: 0, kind: input, shape index: {}]   ;;  %s539_s1 = inlined_call_operand.vmem [shape: bf16[16,27], index: 1, kind: input, shape index: {}]   ;;  %s540_s3 = inlined_call_operand.vmem [shape: f32[16,1], index: 3, kind: input, shape index: {}]   ;;  %s541_s2 = inlined_call_operand.vmem [shape: f32[16,1], index: 2, kind: input, shape index: {}]   ;;  %s542_s4 = inlined_call_operand.vmem [shape: bf16[16,512], index: 4, kind: output, shape index: {}]  }
   0x1   :  { %v350_v0 = vld [vmem:[%s538_s0 + $0x20] sm:$0xf]  ;;  %v375_v1 = vld [vmem:[%s538_s0 + $0x2c] sm:$0x30]  ;;  %v82_v3 = vsel %vm80_vm0, 4294967295, %v390_v2  ;;  %vm22_vm3 = vcmask 7168  }
   0x2   :  { %v351_v4 = vor.u32 %v375_v1, %v350_v0  ;;  %v83_v5 = vsel %vm81_vm1, %v82_v3, 0  ;;  %v373_v6 = vld [vmem:[%s538_s0 + $0x24] sm:$0xf]  ;;  %v352_v7 = vld [vmem:[%s538_s0 + $0x30] sm:$0x30]  ;;  %v391_v32 = vmov 0.0  }
   0x3   :  { %v355_v8 = vor.u32 %v373_v6, %v352_v7  ;;  %v358_v9 = vld [vmem:[%s538_s0 + $0x28] sm:$0xf]  ;;  %v376_v10 = vld [vmem:[%s538_s0 + $0x34] sm:$0x30]  ;;  %v374_v11 = vld [vmem:[%s538_s0 + $0x2c] sm:$0xf] }
   0x4   :  { %v85_v12 = vand.u32 %v351_v4, %v83_v5  ;;  %v359_v13 = vor.u32 %v376_v10, %v358_v9  ;;  %v360_v14 = vld [vmem:[%s538_s0 + $0x38] sm:$0x30]  ;;  %v334_v15 = vld [vmem:[%s538_s0] sm:$0xf]  ;;  %v371_v16 = vld [vmem:[%s538_s0 + $0xc] sm:$0xf0] }
   0x5   :  { %v88_v17 = vand.u32 %v355_v8, %v83_v5  ;;  %v363_v18 = vor.u32 %v374_v11, %v360_v14  ;;  %v369_v19 = vld [vmem:[%s538_s0 + $0x4] sm:$0xf]  ;;  %v336_v20 = vld [vmem:[%s538_s0 + $0x10] sm:$0xf0]  ;;  %v342_v21 = vld [vmem:[%s538_s0 + $0x8] sm:$0xf]  ;;  %v335_v23 = vor.u32 %v371_v16, %v334_v15 }
   0x6   :  { %102 = vmatpush.bf16.msra.mxu0 %v85_v12  ;;  %v91_v22 = vand.u32 %v359_v13, %v83_v5  ;;  %v372_v24 = vld [vmem:[%s538_s0 + $0x14] sm:$0xf0]  ;;  %v370_v25 = vld [vmem:[%s538_s0 + $0xc] sm:$0xf]  ;;  %v344_v26 = vld [vmem:[%s538_s0 + $0x18] sm:$0xf0]  ;;  %v339_v28 = vor.u32 %v369_v19, %v336_v20 }
   0x7   :  { %116 = vmatpush.bf16.msra.mxu1 %v88_v17  ;;  %v94_v27 = vand.u32 %v363_v18, %v83_v5  ;;  %v343_v29 = vor.u32 %v372_v24, %v342_v21  ;;  %v347_v30 = vor.u32 %v370_v25, %v344_v26  ;;  %v368_v31 = vld [vmem:[%s539_s1] sm:$0xff]  ;;  %23 = vst.msk [vmem:[#allocation3] sm:$0xff] %vm22_vm3, %v391_v32  ;;  %v392_v47 = vmov 0  }
   0x8   :  { %130 = vmatpush.bf16.msra.mxu2 %v91_v22  ;;  %24 = vst.msk [vmem:[#allocation3 + $0x8] sm:$0xff] %vm22_vm3, %v391_v32  ;;  %381 = vset.pattern.permute.xlu1 %v392_v47  ;;  %v393_v48 = vmov 512.0  }
   0x9   :  { %144 = vmatpush.bf16.msra.mxu3 %v94_v27  ;;  %382 = vset.pattern.permute.xlu0 %v392_v47  ;;  %384 = vrcp.f32 %v393_v48 }
   0xa   :  { %103 = vmatpush.bf16.msra.mxu0 %v335_v23  ;;  %383 = vset.pattern.permute.xlu2 %v392_v47 }
   0xb   :  { %117 = vmatpush.bf16.msra.mxu1 %v339_v28 }
   0xc   :  { %131 = vmatpush.bf16.msra.mxu2 %v343_v29 }
   0xd   :  { %145 = vmatpush.bf16.msra.mxu3 %v347_v30  ;;  %364 = vmatmul.msk.bf16.vlgmr.msra.gmra.mxu0 %vm76_vm2, %v368_v31  ;;  %v286_v30 = vld [vmem:[%s540_s3] sm:$0xff] }
   0xe   :  { %365 = vmatmul.msk.bf16.vlgmr.msra.gmra.mxu1 %vm76_vm2, %v368_v31  ;;  %v152_v52 = vld [vmem:[#allocation3] sm:$0xff] }
   0xf   :  { %366 = vmatmul.msk.bf16.vlgmr.msra.gmra.mxu2 %vm76_vm2, %v368_v31  ;;  %v385_v49 = vpop.eup %384  ;;  %v153_v57 = vld [vmem:[#allocation3 + $0x8] sm:$0xff] }
  0x10   :  { %367 = vmatmul.msk.bf16.vlgmr.msra.gmra.mxu3 %vm76_vm2, %v368_v31  ;;  %v188_v50 = vmul.f32 512.0, %v385_v49  ;;  %vm192_vm4 = vweird.f32 %v385_v49 }
  0x12   :  { %v189_v51 = vsub.f32 1.0, %v188_v50  ;;  %v287_v50 = vld [vmem:[%s540_s3 + $0x8] sm:$0xff] }
  0x14   :  { %v190_v54 = vmul.f32 %v385_v49, %v189_v51 }
  0x16   :  { %v191_v56 = vadd.f32 %v385_v49, %v190_v54 }
  0x18   :  { %v193_v59 = vsel %vm192_vm4, %v385_v49, %v191_v56 }
  0x8a   :  { %v105_v33 = vpop.f32.mrf.mxu0 }
  0x8b   :  { %v119_v34 = vpop.f32.mrf.mxu1 }
  0x8c   :  { %v154_v35 = vadd.f32 %v119_v34, %v105_v33 }
  0x92   :  { %v133_v36 = vpop.f32.mrf.mxu2  ;;  %v107_v40 = vpop.f32.mrf.mxu0 }
  0x93   :  { %v155_v37 = vadd.f32 %v154_v35, %v133_v36  ;;  %v147_v38 = vpop.f32.mrf.mxu3  ;;  %v121_v41 = vpop.f32.mrf.mxu1 }
  0x94   :  { %v159_v42 = vadd.f32 %v121_v41, %v107_v40 }
  0x95   :  { %v156_v39 = vadd.f32 %v155_v37, %v147_v38 }
  0x97   :  { %157 = vadd.xlane.f32.xlu0 %v156_v39  ;;  %v242_v39 = vld [vmem:[%s541_s2] sm:$0xff] }
  0x9a   :  { %v135_v43 = vpop.f32.mrf.mxu2 }
  0x9b   :  { %v160_v44 = vadd.f32 %v159_v42, %v135_v43  ;;  %v149_v45 = vpop.f32.mrf.mxu3 }
  0x9d   :  { %v161_v46 = vadd.f32 %v160_v44, %v149_v45 }
  0x9f   :  { %162 = vadd.xlane.f32.xlu0 %v161_v46  ;;  %v243_v46 = vld [vmem:[%s541_s2 + $0x8] sm:$0xff] }
 0x10a   :  { %v158_v53 = vpop.xlane.xlu0 %157 }
 0x10b   :  { %v164_v55 = vadd.f32 %v158_v53, %v152_v52 }
 0x10d   :  { %167 = vst.msk [vmem:[#allocation3] sm:$0xff] %vm22_vm3, %v164_v55 }
 0x112   :  { %v163_v58 = vpop.xlane.xlu0 %162 }
 0x113   :  { %v165_v60 = vadd.f32 %v163_v58, %v153_v57 }
 0x114   :  { %v185_v61 = vld [vmem:[#allocation3] sm:$0xff] }
 0x115   :  { %168 = vst.msk [vmem:[#allocation3 + $0x8] sm:$0xff] %vm22_vm3, %v165_v60  ;;  %v194_v62 = vmul.f32 %v193_v59, %v185_v61 }
 0x117   :  { %206 = vperm.xlu1 %381, %v194_v62  }
 0x11c   :  { %v186_v63 = vld [vmem:[#allocation3 + $0x8] sm:$0xff] }
 0x11d   :  { %v195_v0 = vmul.f32 %v193_v59, %v186_v63 }
 0x11f   :  { %211 = vperm.xlu1 %381, %v195_v0  }
 0x189   :  { %v207_v1 = vpop.permute.xlu1 %206 }
 0x18a   :  { %v474_v2 = vsub.f32 %v105_v33, %v207_v1  ;;  %v476_v3 = vsub.f32 %v119_v34, %v207_v1  ;;  %v478_v4 = vsub.f32 %v133_v36, %v207_v1  ;;  %v480_v5 = vsub.f32 %v147_v38, %v207_v1 }
 0x18c   :  { %v222_v6 = vmul.f32 %v474_v2, %v474_v2  ;;  %v223_v7 = vmul.f32 %v476_v3, %v476_v3  ;;  %v224_v8 = vmul.f32 %v478_v4, %v478_v4  ;;  %v225_v10 = vmul.f32 %v480_v5, %v480_v5 }
 0x18e   :  { %v230_v9 = vadd.f32 %v223_v7, %v222_v6 }
 0x190   :  { %v231_v11 = vadd.f32 %v230_v9, %v224_v8 }
 0x191   :  { %v212_v12 = vpop.permute.xlu1 %211 }
 0x192   :  { %v490_v13 = vsub.f32 %v107_v40, %v212_v12  ;;  %v492_v14 = vsub.f32 %v121_v41, %v212_v12  ;;  %v494_v15 = vsub.f32 %v135_v43, %v212_v12  ;;  %v232_v16 = vadd.f32 %v231_v11, %v225_v10 }
 0x193   :  { %v496_v17 = vsub.f32 %v149_v45, %v212_v12 }
 0x194   :  { %233 = vadd.xlane.f32.xlu2 %v232_v16  ;;  %v226_v18 = vmul.f32 %v490_v13, %v490_v13  ;;  %v227_v19 = vmul.f32 %v492_v14, %v492_v14  ;;  %v228_v20 = vmul.f32 %v494_v15, %v494_v15 }
 0x195   :  { %v229_v22 = vmul.f32 %v496_v17, %v496_v17 }
 0x196   :  { %v235_v21 = vadd.f32 %v227_v19, %v226_v18 }
 0x198   :  { %v236_v23 = vadd.f32 %v235_v21, %v228_v20 }
 0x19a   :  { %v237_v24 = vadd.f32 %v236_v23, %v229_v22 }
 0x19c   :  { %238 = vadd.xlane.f32.xlu2 %v237_v24 }
 0x1b4   :  { %290 = vperm.xlu2 %383, %v286_v30  }
 0x207   :  { %v234_v25 = vpop.xlane.xlu2 %233 }
 0x208   :  { %v240_v26 = vmul.f32 %v234_v25, %v193_v59 }
 0x20a   :  { %v244_v27 = vadd.f32 1e-05, %v240_v26 }
 0x20c   :  { %386 = vrsqrt.f32 %v244_v27  ;;  %vm252_vm6 = vweird.f32 %v244_v27 }
 0x20f   :  { %v239_v28 = vpop.xlane.xlu2 %238 }
 0x210   :  { %v241_v29 = vmul.f32 %v239_v28, %v193_v59 }
 0x212   :  { %v387_v31 = vpop.eup %386  ;;  %v245_v32 = vadd.f32 1e-05, %v241_v29 }
 0x213   :  { %v247_v33 = vmul.f32 %v387_v31, %v244_v27  ;;  %vm253_vm5 = vweird.f32 %v387_v31 }
 0x214   :  { %388 = vrsqrt.f32 %v245_v32  ;;  %vm254_vm7 = vmor %vm252_vm6, %vm253_vm5  ;;  %vm262_vm9 = vweird.f32 %v245_v32 }
 0x215   :  { %v248_v34 = vmul.f32 %v387_v31, %v247_v33 }
 0x217   :  { %v249_v35 = vmul.f32 0.5, %v248_v34  ;;  %v291_v52 = vpop.permute.xlu2 %290 }
 0x219   :  { %v250_v36 = vsub.f32 1.5, %v249_v35 }
 0x21a   :  { %v389_v37 = vpop.eup %388 }
 0x21b   :  { %v257_v38 = vmul.f32 %v389_v37, %v245_v32  ;;  %v251_v40 = vmul.f32 %v387_v31, %v250_v36  ;;  %vm263_vm8 = vweird.f32 %v389_v37 }
 0x21c   :  { %vm264_vm10 = vmor %vm262_vm9, %vm263_vm8 }
 0x21d   :  { %v258_v41 = vmul.f32 %v389_v37, %v257_v38  ;;  %v255_v42 = vsel %vm254_vm7, %v387_v31, %v251_v40 }
 0x21e   :  { %v266_v43 = vmul.f32 %v255_v42, %v242_v39 }
 0x21f   :  { %v259_v44 = vmul.f32 0.5, %v258_v41 }
 0x220   :  { %270 = vperm.xlu0 %382, %v266_v43  }
 0x221   :  { %v260_v45 = vsub.f32 1.5, %v259_v44 }
 0x223   :  { %v261_v47 = vmul.f32 %v389_v37, %v260_v45 }
 0x225   :  { %v265_v48 = vsel %vm264_vm10, %v389_v37, %v261_v47 }
 0x226   :  { %v267_v49 = vmul.f32 %v265_v48, %v243_v46 }
 0x228   :  { %275 = vperm.xlu1 %381, %v267_v49  }
 0x230   :  { %295 = vperm.xlu1 %381, %v287_v50  }
 0x292   :  { %v271_v51 = vpop.permute.xlu0 %270 }
 0x293   :  { %v278_v53 = vmul.f32 %v271_v51, %v474_v2  ;;  %v279_v54 = vmul.f32 %v271_v51, %v476_v3  ;;  %v280_v55 = vmul.f32 %v271_v51, %v478_v4  ;;  %v281_v56 = vmul.f32 %v271_v51, %v480_v5 }
 0x295   :  { %v298_v57 = vadd.f32 %v291_v52, %v278_v53  ;;  %v299_v58 = vadd.f32 %v291_v52, %v279_v54  ;;  %v300_v59 = vadd.f32 %v291_v52, %v280_v55  ;;  %v301_v60 = vadd.f32 %v291_v52, %v281_v56 }
 0x297   :  { %v306_v61 = vmax.f32 %v298_v57, 0.0  ;;  %v307_v62 = vmax.f32 %v299_v58, 0.0  ;;  %v308_v63 = vmax.f32 %v300_v59, 0.0  ;;  %v309_v0 = vmax.f32 %v301_v60, 0.0 }
 0x299   :  { %v314_v1 = vpack.c.bf16 %v307_v62, %v306_v61  ;;  %v315_v6 = vpack.c.bf16 %v309_v0, %v308_v63 }
 0x29a   :  { %v276_v7 = vpop.permute.xlu1 %275 }
 0x29b   :  { %318 = vst [vmem:[%s542_s4] sm:$0xff] %v314_v1  ;;  %v282_v2 = vmul.f32 %v276_v7, %v490_v13  ;;  %v283_v3 = vmul.f32 %v276_v7, %v492_v14  ;;  %v284_v4 = vmul.f32 %v276_v7, %v494_v15  ;;  %v285_v5 = vmul.f32 %v276_v7, %v496_v17 }
 0x29c   :  { %319 = vst [vmem:[%s542_s4 + $0x8] sm:$0xff] %v315_v6 }
 0x2a2   :  { %v296_v8 = vpop.permute.xlu1 %295 }
 0x2a3   :  { %v302_v9 = vadd.f32 %v296_v8, %v282_v2  ;;  %v303_v10 = vadd.f32 %v296_v8, %v283_v3  ;;  %v304_v11 = vadd.f32 %v296_v8, %v284_v4  ;;  %v305_v12 = vadd.f32 %v296_v8, %v285_v5 }
 0x2a5   :  { %v310_v16 = vmax.f32 %v302_v9, 0.0  ;;  %v311_v18 = vmax.f32 %v303_v10, 0.0  ;;  %v312_v19 = vmax.f32 %v304_v11, 0.0  ;;  %v313_v20 = vmax.f32 %v305_v12, 0.0 }
 0x2a7   :  { %v316_v21 = vpack.c.bf16 %v311_v18, %v310_v16  ;;  %v317_v22 = vpack.c.bf16 %v313_v20, %v312_v19 }
 0x2a9   :  { %320 = vst [vmem:[%s542_s4 + $0x10] sm:$0xff] %v316_v21 }
 0x2aa   :  { %321 = vst [vmem:[%s542_s4 + $0x18] sm:$0xff] %v317_v22 }

// kernel: vae_forward.8
= control target key start
LH: loop header
LB: loop body
LE: loop exit
PB: predicated region body
PF: predicated region fallthrough
CT: control target
= control target key end

     0   :  { %vm121_vm0 = vcmask 130048   ;;  %vm22_vm1 = vcmask 7168   ;;  %v480_v22 = vmov 0.0   ;;  %v481_v34 = vmov 0   ;;  %s629_s0 = inlined_call_operand.vmem [shape: bf16[144,128], index: 0, kind: input, shape index: {}]   ;;  %s630_s1 = inlined_call_operand.vmem [shape: bf16[32,144], index: 1, kind: input, shape index: {}]   ;;  %s631_s3 = inlined_call_operand.vmem [shape: f32[32,1], index: 3, kind: input, shape index: {}]   ;;  %s632_s2 = inlined_call_operand.vmem [shape: f32[32,1], index: 2, kind: input, shape index: {}]   ;;  %s633_s4 = inlined_call_operand.vmem [shape: bf16[32,128], index: 4, kind: output, shape index: {}]  }
   0x1   :  { %v443_v0 = vld [vmem:[%s629_s0 + $0x38] sm:$0xff]  ;;  %v444_v1 = vld [vmem:[%s629_s0 + $0x40] sm:$0xff]  ;;  %v442_v3 = vld [vmem:[%s629_s0 + $0x30] sm:$0xff]  ;;  %23 = vst.msk [vmem:[#allocation3] sm:$0xff] %vm22_vm1, %v480_v22  ;;  %467 = vset.pattern.permute.xlu2 %v481_v34  ;;  %468 = vset.pattern.permute.xlu0 %v481_v34  ;;  %v482_v35 = vmov 128.0  }
   0x2   :  { %v432_v2 = vld [vmem:[%s630_s1 + $0x4] sm:$0xf]  ;;  %128 = vmatpush.bf16.msra.mxu0 %v443_v0  ;;  %456 = vmatpush.bf16.msra.mxu2 %v443_v0  ;;  %v382_v4 = vld [vmem:[%s630_s1 + $0x8] sm:$0xf0]  ;;  %v439_v8 = vld [vmem:[%s629_s0 + $0x18] sm:$0xff]  ;;  %24 = vst.msk [vmem:[#allocation3 + $0x8] sm:$0xff] %vm22_vm1, %v480_v22  ;;  %470 = vrcp.f32 %v482_v35 }
   0x3   :  { %154 = vmatpush.bf16.msra.mxu1 %v444_v1  ;;  %v385_v5 = vor.u32 %v432_v2, %v382_v4  ;;  %v441_v6 = vld [vmem:[%s629_s0 + $0x28] sm:$0xff]  ;;  %v440_v7 = vld [vmem:[%s629_s0 + $0x20] sm:$0xff]  ;;  %v434_v9 = vld [vmem:[%s630_s1 + $0x14] sm:$0xf]  ;;  %25 = vst.msk [vmem:[#allocation3 + $0x10] sm:$0xff] %vm22_vm1, %v480_v22  ;;  %469 = vset.pattern.permute.xlu1 %v481_v34 }
   0x4   :  { %v390_v10 = vld [vmem:[%s630_s1 + $0x18] sm:$0xf0]  ;;  %v438_v11 = vld [vmem:[%s629_s0 + $0x10] sm:$0xff]  ;;  %v437_v13 = vld [vmem:[%s629_s0 + $0x8] sm:$0xff]  ;;  %26 = vst.msk [vmem:[#allocation3 + $0x18] sm:$0xff] %vm22_vm1, %v480_v22 }
   0x5   :  { %v393_v12 = vor.u32 %v434_v9, %v390_v10  ;;  %v436_v14 = vld [vmem:[%s629_s0] sm:$0xff]  ;;  %v433_v16 = vld [vmem:[%s630_s1 + $0x4] sm:$0xf0]  ;;  %v388_v17 = vld [vmem:[%s630_s1 + $0x10] sm:$0xf] }
   0x6   :  { %129 = vmatpush.bf16.msra.mxu0 %v442_v3  ;;  %457 = vmatpush.bf16.msra.mxu2 %v442_v3  ;;  %v380_v15 = vld [vmem:[%s630_s1] sm:$0xf]  ;;  %v435_v18 = vld [vmem:[%s630_s1 + $0x14] sm:$0xf0] }
   0x7   :  { %430 = vmatmul.msk.bf16.vlgmr.msra.gmra.mxu1 %vm121_vm0, %v385_v5  ;;  %v381_v19 = vor.u32 %v433_v16, %v380_v15  ;;  %v389_v20 = vor.u32 %v435_v18, %v388_v17  ;;  %v333_v10 = vld [vmem:[%s631_s3] sm:$0xff] }
   0x8   :  { %v471_v36 = vpop.eup %470  ;;  %v166_v39 = vld [vmem:[#allocation3] sm:$0xff] }
   0x9   :  { %v203_v37 = vmul.f32 128.0, %v471_v36  ;;  %vm207_vm2 = vweird.f32 %v471_v36  ;;  %v167_v46 = vld [vmem:[#allocation3 + $0x8] sm:$0xff] }
   0xa   :  { %130 = vmatpush.bf16.msra.mxu0 %v441_v6  ;;  %458 = vmatpush.bf16.msra.mxu2 %v441_v6  ;;  %v168_v43 = vld [vmem:[#allocation3 + $0x10] sm:$0xff] }
   0xb   :  { %v204_v38 = vsub.f32 1.0, %v203_v37  ;;  %v169_v53 = vld [vmem:[#allocation3 + $0x18] sm:$0xff] }
   0xd   :  { %v205_v41 = vmul.f32 %v471_v36, %v204_v38 }
   0xe   :  { %131 = vmatpush.bf16.msra.mxu0 %v440_v7  ;;  %459 = vmatpush.bf16.msra.mxu2 %v440_v7 }
   0xf   :  { %v206_v44 = vadd.f32 %v471_v36, %v205_v41 }
  0x11   :  { %v566_v49 = vsel %vm207_vm2, %v471_v36, %v206_v44 }
  0x12   :  { %132 = vmatpush.bf16.msra.mxu0 %v439_v8  ;;  %460 = vmatpush.bf16.msra.mxu2 %v439_v8 }
  0x16   :  { %133 = vmatpush.bf16.msra.mxu0 %v438_v11  ;;  %461 = vmatpush.bf16.msra.mxu2 %v438_v11  ;;  %v334_v11 = vld [vmem:[%s631_s3 + $0x8] sm:$0xff] }
  0x17   :  { %431 = vmatmul.msk.bf16.gmra.mxu1 %vm121_vm0, %v393_v12 }
  0x1a   :  { %134 = vmatpush.bf16.msra.mxu0 %v437_v13  ;;  %462 = vmatpush.bf16.msra.mxu2 %v437_v13 }
  0x1e   :  { %135 = vmatpush.bf16.msra.mxu0 %v436_v14  ;;  %463 = vmatpush.bf16.msra.mxu2 %v436_v14 }
  0x21   :  { %136 = vmatmul.bf16.vlgmr.msra.gmra.mxu0 %v381_v19  ;;  %141 = vmatmul.bf16.vlgmr.msra.gmra.mxu2 %v389_v20 }
  0x84   :  { %v156_v21 = vpop.f32.mrf.mxu1 }
  0x8c   :  { %v158_v23 = vpop.f32.mrf.mxu1 }
  0x94   :  { %v161_v26 = vpop.f32.mrf.mxu1 }
  0x9c   :  { %v163_v31 = vpop.f32.mrf.mxu1 }
  0x9e   :  { %v137_v24 = vpop.f32.mrf.mxu0 }
  0x9f   :  { %v157_v25 = vadd.f32 %v156_v21, %v137_v24 }
  0xa1   :  { %170 = vadd.xlane.f32.xlu0 %v157_v25 }
  0xa4   :  { %v142_v27 = vpop.f32.mrf.mxu2 }
  0xa5   :  { %v162_v28 = vadd.f32 %v161_v26, %v142_v27 }
  0xa6   :  { %v139_v29 = vpop.f32.mrf.mxu0 }
  0xa7   :  { %v159_v30 = vadd.f32 %v158_v23, %v139_v29  ;;  %174 = vadd.xlane.f32.xlu1 %v162_v28 }
  0xa9   :  { %172 = vadd.xlane.f32.xlu0 %v159_v30 }
  0xac   :  { %v144_v32 = vpop.f32.mrf.mxu2 }
  0xad   :  { %v164_v33 = vadd.f32 %v163_v31, %v144_v32  ;;  %v258_v32 = vld [vmem:[%s632_s2 + $0x8] sm:$0xff] }
  0xaf   :  { %176 = vadd.xlane.f32.xlu1 %v164_v33 }
 0x114   :  { %v171_v40 = vpop.xlane.xlu0 %170 }
 0x115   :  { %v178_v42 = vadd.f32 %v171_v40, %v166_v39  ;;  %v335_v40 = vld [vmem:[%s631_s3 + $0x10] sm:$0xff] }
 0x117   :  { %183 = vst.msk [vmem:[#allocation3] sm:$0xff] %vm22_vm1, %v178_v42 }
 0x11a   :  { %v175_v45 = vpop.xlane.xlu1 %174 }
 0x11b   :  { %v180_v47 = vadd.f32 %v175_v45, %v168_v43 }
 0x11c   :  { %v173_v48 = vpop.xlane.xlu0 %172 }
 0x11d   :  { %185 = vst.msk [vmem:[#allocation3 + $0x10] sm:$0xff] %vm22_vm1, %v180_v47  ;;  %v179_v50 = vadd.f32 %v173_v48, %v167_v46 }
 0x11e   :  { %v198_v51 = vld [vmem:[#allocation3] sm:$0xff] }
 0x11f   :  { %184 = vst.msk [vmem:[#allocation3 + $0x8] sm:$0xff] %vm22_vm1, %v179_v50  ;;  %v209_v52 = vmul.f32 %v566_v49, %v198_v51  ;;  %v259_v51 = vld [vmem:[%s632_s2 + $0x10] sm:$0xff] }
 0x121   :  { %219 = vperm.xlu2 %467, %v209_v52  }
 0x122   :  { %v177_v54 = vpop.xlane.xlu1 %176 }
 0x123   :  { %v181_v55 = vadd.f32 %v177_v54, %v169_v53 }
 0x124   :  { %v200_v56 = vld [vmem:[#allocation3 + $0x10] sm:$0xff] }
 0x125   :  { %186 = vst.msk [vmem:[#allocation3 + $0x18] sm:$0xff] %vm22_vm1, %v181_v55  ;;  %v211_v57 = vmul.f32 %v566_v49, %v200_v56 }
 0x126   :  { %v199_v58 = vld [vmem:[#allocation3 + $0x8] sm:$0xff] }
 0x127   :  { %229 = vperm.xlu0 %468, %v211_v57   ;;  %v210_v59 = vmul.f32 %v566_v49, %v199_v58  ;;  %v260_v57 = vld [vmem:[%s632_s2 + $0x18] sm:$0xff] }
 0x129   :  { %224 = vperm.xlu2 %467, %v210_v59  }
 0x12c   :  { %v201_v60 = vld [vmem:[#allocation3 + $0x18] sm:$0xff] }
 0x12d   :  { %v212_v61 = vmul.f32 %v566_v49, %v201_v60 }
 0x12f   :  { %234 = vperm.xlu1 %469, %v212_v61   ;;  %v336_v61 = vld [vmem:[%s631_s3 + $0x18] sm:$0xff] }
 0x17b   :  { %v220_v62 = vpop.permute.xlu2 %219 }
 0x17c   :  { %v575_v63 = vsub.f32 %v157_v25, %v220_v62  ;;  %v257_v25 = vld [vmem:[%s632_s2] sm:$0xff] }
 0x17e   :  { %v241_v0 = vmul.f32 %v575_v63, %v575_v63 }
 0x180   :  { %245 = vadd.xlane.f32.xlu2 %v241_v0 }
 0x183   :  { %v225_v1 = vpop.permute.xlu2 %224 }
 0x184   :  { %v579_v2 = vsub.f32 %v159_v30, %v225_v1 }
 0x186   :  { %v242_v3 = vmul.f32 %v579_v2, %v579_v2 }
 0x188   :  { %247 = vadd.xlane.f32.xlu1 %v242_v3 }
 0x199   :  { %v230_v4 = vpop.permute.xlu0 %229 }
 0x19a   :  { %v583_v5 = vsub.f32 %v162_v28, %v230_v4 }
 0x19c   :  { %v243_v6 = vmul.f32 %v583_v5, %v583_v5 }
 0x19e   :  { %249 = vadd.xlane.f32.xlu0 %v243_v6 }
 0x1a1   :  { %v235_v7 = vpop.permute.xlu1 %234 }
 0x1a2   :  { %v587_v8 = vsub.f32 %v164_v33, %v235_v7 }
 0x1a4   :  { %v244_v9 = vmul.f32 %v587_v8, %v587_v8 }
 0x1a6   :  { %251 = vadd.xlane.f32.xlu2 %v244_v9 }
 0x1b2   :  { %339 = vperm.xlu0 %468, %v333_v10  }
 0x1be   :  { %344 = vperm.xlu2 %467, %v334_v11  }
 0x1f3   :  { %v246_v12 = vpop.xlane.xlu2 %245 }
 0x1f4   :  { %v253_v13 = vmul.f32 %v246_v12, %v566_v49 }
 0x1f6   :  { %v261_v14 = vadd.f32 1e-05, %v253_v13 }
 0x1f8   :  { %472 = vrsqrt.f32 %v261_v14  ;;  %vm271_vm4 = vweird.f32 %v261_v14 }
 0x1fb   :  { %v248_v15 = vpop.xlane.xlu1 %247 }
 0x1fc   :  { %v254_v16 = vmul.f32 %v248_v15, %v566_v49 }
 0x1fe   :  { %v473_v17 = vpop.eup %472  ;;  %v262_v18 = vadd.f32 1e-05, %v254_v16 }
 0x1ff   :  { %v266_v19 = vmul.f32 %v473_v17, %v261_v14  ;;  %vm272_vm3 = vweird.f32 %v473_v17 }
 0x200   :  { %474 = vrsqrt.f32 %v262_v18  ;;  %vm273_vm5 = vmor %vm271_vm4, %vm272_vm3  ;;  %vm281_vm7 = vweird.f32 %v262_v18 }
 0x201   :  { %v267_v20 = vmul.f32 %v473_v17, %v266_v19 }
 0x203   :  { %v268_v21 = vmul.f32 0.5, %v267_v20 }
 0x205   :  { %v269_v22 = vsub.f32 1.5, %v268_v21 }
 0x206   :  { %v475_v23 = vpop.eup %474 }
 0x207   :  { %v276_v24 = vmul.f32 %v475_v23, %v262_v18  ;;  %v270_v26 = vmul.f32 %v473_v17, %v269_v22  ;;  %vm282_vm6 = vweird.f32 %v475_v23 }
 0x208   :  { %vm283_vm8 = vmor %vm281_vm7, %vm282_vm6 }
 0x209   :  { %v277_v27 = vmul.f32 %v475_v23, %v276_v24  ;;  %v274_v28 = vsel %vm273_vm5, %v473_v17, %v270_v26 }
 0x20a   :  { %v305_v29 = vmul.f32 %v274_v28, %v257_v25 }
 0x20b   :  { %v278_v30 = vmul.f32 0.5, %v277_v27 }
 0x20c   :  { %311 = vperm.xlu2 %467, %v305_v29  }
 0x20d   :  { %v279_v31 = vsub.f32 1.5, %v278_v30 }
 0x20f   :  { %v280_v33 = vmul.f32 %v475_v23, %v279_v31 }
 0x211   :  { %v250_v34 = vpop.xlane.xlu0 %249  ;;  %v284_v35 = vsel %vm283_vm8, %v475_v23, %v280_v33 }
 0x212   :  { %v255_v36 = vmul.f32 %v250_v34, %v566_v49  ;;  %v306_v37 = vmul.f32 %v284_v35, %v258_v32 }
 0x214   :  { %v263_v38 = vadd.f32 1e-05, %v255_v36  ;;  %316 = vperm.xlu1 %469, %v306_v37  }
 0x216   :  { %476 = vrsqrt.f32 %v263_v38  ;;  %vm291_vm10 = vweird.f32 %v263_v38 }
 0x219   :  { %v252_v39 = vpop.xlane.xlu2 %251 }
 0x21a   :  { %v256_v41 = vmul.f32 %v252_v39, %v566_v49 }
 0x21c   :  { %v477_v42 = vpop.eup %476  ;;  %v264_v43 = vadd.f32 1e-05, %v256_v41  ;;  %349 = vperm.xlu1 %469, %v335_v40  }
 0x21d   :  { %v286_v44 = vmul.f32 %v477_v42, %v263_v38  ;;  %vm292_vm9 = vweird.f32 %v477_v42 }
 0x21e   :  { %478 = vrsqrt.f32 %v264_v43  ;;  %vm293_vm11 = vmor %vm291_vm10, %vm292_vm9  ;;  %vm301_vm13 = vweird.f32 %v264_v43 }
 0x21f   :  { %v287_v45 = vmul.f32 %v477_v42, %v286_v44 }
 0x221   :  { %v288_v46 = vmul.f32 0.5, %v287_v45  ;;  %v345_v62 = vpop.permute.xlu2 %344 }
 0x223   :  { %v289_v47 = vsub.f32 1.5, %v288_v46 }
 0x224   :  { %v479_v48 = vpop.eup %478  ;;  %v340_v4 = vpop.permute.xlu0 %339 }
 0x225   :  { %v296_v50 = vmul.f32 %v479_v48, %v264_v43  ;;  %v290_v52 = vmul.f32 %v477_v42, %v289_v47  ;;  %vm302_vm12 = vweird.f32 %v479_v48 }
 0x226   :  { %vm303_vm14 = vmor %vm301_vm13, %vm302_vm12 }
 0x227   :  { %v297_v53 = vmul.f32 %v479_v48, %v296_v50  ;;  %v294_v49 = vsel %vm293_vm11, %v477_v42, %v290_v52 }
 0x228   :  { %v307_v54 = vmul.f32 %v294_v49, %v259_v51 }
 0x229   :  { %v298_v55 = vmul.f32 0.5, %v297_v53 }
 0x22a   :  { %321 = vperm.xlu2 %467, %v307_v54  }
 0x22b   :  { %v299_v56 = vsub.f32 1.5, %v298_v55 }
 0x22d   :  { %v300_v58 = vmul.f32 %v479_v48, %v299_v56 }
 0x22f   :  { %v304_v59 = vsel %vm303_vm14, %v479_v48, %v300_v58 }
 0x230   :  { %v308_v60 = vmul.f32 %v304_v59, %v260_v57 }
 0x232   :  { %326 = vperm.xlu2 %467, %v308_v60  }
 0x23a   :  { %354 = vperm.xlu2 %467, %v336_v61  }
 0x266   :  { %v312_v0 = vpop.permute.xlu2 %311 }
 0x267   :  { %v329_v1 = vmul.f32 %v312_v0, %v575_v63 }
 0x269   :  { %v357_v7 = vadd.f32 %v340_v4, %v329_v1 }
 0x26b   :  { %v361_v11 = vmax.f32 %v357_v7, 0.0 }
 0x284   :  { %v322_v3 = vpop.permute.xlu2 %321 }
 0x285   :  { %v331_v16 = vmul.f32 %v322_v3, %v583_v5 }
 0x286   :  { %v317_v6 = vpop.permute.xlu1 %316 }
 0x287   :  { %v330_v9 = vmul.f32 %v317_v6, %v579_v2 }
 0x289   :  { %v358_v10 = vadd.f32 %v345_v62, %v330_v9 }
 0x28b   :  { %v362_v12 = vmax.f32 %v358_v10, 0.0 }
 0x28c   :  { %v327_v13 = vpop.permute.xlu2 %326 }
 0x28d   :  { %v448_v14 = vpack.c.bf16 %v362_v12, %v361_v11  ;;  %v332_v63 = vmul.f32 %v327_v13, %v587_v8 }
 0x28e   :  { %v350_v15 = vpop.permute.xlu1 %349 }
 0x28f   :  { %449 = vst [vmem:[%s633_s4] sm:$0xff] %v448_v14   ;;  %v359_v17 = vadd.f32 %v350_v15, %v331_v16 }
 0x291   :  { %v363_v20 = vmax.f32 %v359_v17, 0.0 }
 0x294   :  { %v355_v18 = vpop.permute.xlu2 %354 }
 0x295   :  { %v360_v19 = vadd.f32 %v355_v18, %v332_v63 }
 0x297   :  { %v364_v21 = vmax.f32 %v360_v19, 0.0 }
 0x299   :  { %v453_v2 = vpack.c.bf16 %v364_v21, %v363_v20 }
 0x29b   :  { %455 = vst [vmem:[%s633_s4 + $0x8] sm:$0xff] %v453_v2  }

// kernel: vae_forward.9
= control target key start
LH: loop header
LB: loop body
LE: loop exit
PB: predicated region body
PF: predicated region fallthrough
CT: control target
= control target key end

     0   :  { %vm251_vm0 = vcmask 261120   ;;  %vm22_vm1 = vcmask 7168   ;;  %s1302_s0 = inlined_call_operand.vmem [shape: bf16[288,32], index: 0, kind: input, shape index: {}]   ;;  %s1303_s1 = inlined_call_operand.vmem [shape: bf16[64,288], index: 1, kind: input, shape index: {}]   ;;  %s1304_s3 = inlined_call_operand.vmem [shape: f32[64,1], index: 3, kind: input, shape index: {}]   ;;  %s1305_s2 = inlined_call_operand.vmem [shape: f32[64,1], index: 2, kind: input, shape index: {}]   ;;  %s1306_s4 = inlined_call_operand.vmem [shape: bf16[64,32], index: 4, kind: output, shape index: {}]  }
   0x1   :  { %v915_v0 = vld [vmem:[%s1302_s0 + $0x38] sm:$0xff]  ;;  %v925_v2 = vld [vmem:[%s1302_s0 + $0x88] sm:$0xff]  ;;  %v914_v3 = vld [vmem:[%s1302_s0 + $0x30] sm:$0xff] }
   0x2   :  { %v923_v1 = vld [vmem:[%s1302_s0 + $0x78] sm:$0xff]  ;;  %264 = vmatpush.bf16.msra.mxu0 %v915_v0  ;;  %926 = vmatpush.bf16.msra.mxu3 %v915_v0  ;;  %v922_v4 = vld [vmem:[%s1302_s0 + $0x70] sm:$0xff]  ;;  %v924_v5 = vld [vmem:[%s1302_s0 + $0x80] sm:$0xff] }
   0x3   :  { %934 = vmatpush.bf16.msra.mxu1 %v923_v1  ;;  %328 = vmatpush.bf16.msra.mxu2 %v925_v2  ;;  %v782_v6 = vld [vmem:[%s1303_s1 + $0x8] sm:$0xf]  ;;  %v898_v7 = vld [vmem:[%s1303_s1 + $0x10] sm:$0xf0]  ;;  %v912_v11 = vld [vmem:[%s1302_s0 + $0x20] sm:$0xff] }
   0x4   :  { %v913_v8 = vld [vmem:[%s1302_s0 + $0x28] sm:$0xff]  ;;  %v783_v10 = vor.u32 %v898_v7, %v782_v6  ;;  %v920_v12 = vld [vmem:[%s1302_s0 + $0x60] sm:$0xff]  ;;  %v911_v13 = vld [vmem:[%s1302_s0 + $0x18] sm:$0xff] }
   0x5   :  { %v921_v9 = vld [vmem:[%s1302_s0 + $0x68] sm:$0xff]  ;;  %v919_v14 = vld [vmem:[%s1302_s0 + $0x58] sm:$0xff]  ;;  %v910_v15 = vld [vmem:[%s1302_s0 + $0x10] sm:$0xff] }
   0x6   :  { %265 = vmatpush.bf16.msra.mxu0 %v914_v3  ;;  %927 = vmatpush.bf16.msra.mxu3 %v914_v3  ;;  %v918_v16 = vld [vmem:[%s1302_s0 + $0x50] sm:$0xff]  ;;  %v794_v17 = vld [vmem:[%s1303_s1 + $0x20] sm:$0xf]  ;;  %v901_v18 = vld [vmem:[%s1303_s1 + $0x28] sm:$0xf0] }
   0x7   :  { %935 = vmatpush.bf16.msra.mxu1 %v922_v4  ;;  %329 = vmatpush.bf16.msra.mxu2 %v924_v5  ;;  %v909_v19 = vld [vmem:[%s1302_s0 + $0x8] sm:$0xff]  ;;  %v795_v21 = vor.u32 %v901_v18, %v794_v17  ;;  %v908_v22 = vld [vmem:[%s1302_s0] sm:$0xff]  ;;  %v786_v23 = vld [vmem:[%s1303_s1 + $0x18] sm:$0xf] }
   0x8   :  { %v917_v20 = vld [vmem:[%s1302_s0 + $0x48] sm:$0xff]  ;;  %v900_v24 = vld [vmem:[%s1303_s1 + $0x20] sm:$0xf0]  ;;  %v774_v25 = vld [vmem:[%s1303_s1] sm:$0xf] }
   0x9   :  { %v897_v26 = vld [vmem:[%s1303_s1 + $0x8] sm:$0xf0]  ;;  %v916_v27 = vld [vmem:[%s1302_s0 + $0x40] sm:$0xff]  ;;  %v899_v28 = vld [vmem:[%s1303_s1 + $0x1c] sm:$0xf]  ;;  %v787_v30 = vor.u32 %v900_v24, %v786_v23 }
   0xa   :  { %266 = vmatpush.bf16.msra.mxu0 %v913_v8  ;;  %928 = vmatpush.bf16.msra.mxu3 %v913_v8  ;;  %v788_v29 = vld [vmem:[%s1303_s1 + $0x24] sm:$0xf0]  ;;  %v775_v31 = vor.u32 %v897_v26, %v774_v25  ;;  %v806_v33 = vld [vmem:[%s1303_s1 + $0x38] sm:$0xf]  ;;  %v904_v34 = vld [vmem:[%s1303_s1 + $0x40] sm:$0xf0] }
   0xb   :  { %936 = vmatpush.bf16.msra.mxu1 %v921_v9  ;;  %892 = vmatmul.msk.bf16.vlgmr.msra.gmra.mxu2 %vm251_vm0, %v783_v10  ;;  %v791_v32 = vor.u32 %v899_v28, %v788_v29  ;;  %v807_v35 = vor.u32 %v904_v34, %v806_v33  ;;  %v798_v36 = vld [vmem:[%s1303_s1 + $0x30] sm:$0xf]  ;;  %v903_v37 = vld [vmem:[%s1303_s1 + $0x38] sm:$0xf0]  ;;  %v902_v38 = vld [vmem:[%s1303_s1 + $0x34] sm:$0xf] }
   0xc   :  { %v800_v39 = vld [vmem:[%s1303_s1 + $0x3c] sm:$0xf0]  ;;  %v799_v40 = vor.u32 %v903_v37, %v798_v36  ;;  %v818_v42 = vld [vmem:[%s1303_s1 + $0x50] sm:$0xf]  ;;  %v907_v43 = vld [vmem:[%s1303_s1 + $0x58] sm:$0xf0] }
   0xd   :  { %v803_v41 = vor.u32 %v902_v38, %v800_v39  ;;  %v896_v44 = vld [vmem:[%s1303_s1 + $0x4] sm:$0xf]  ;;  %v776_v45 = vld [vmem:[%s1303_s1 + $0xc] sm:$0xf0]  ;;  %v819_v46 = vor.u32 %v907_v43, %v818_v42  ;;  %v810_v48 = vld [vmem:[%s1303_s1 + $0x48] sm:$0xf] }
   0xe   :  { %267 = vmatpush.bf16.msra.mxu0 %v912_v11  ;;  %929 = vmatpush.bf16.msra.mxu3 %v912_v11  ;;  %v779_v47 = vor.u32 %v896_v44, %v776_v45  ;;  %v906_v49 = vld [vmem:[%s1303_s1 + $0x50] sm:$0xf0]  ;;  %v905_v50 = vld [vmem:[%s1303_s1 + $0x4c] sm:$0xf]  ;;  %v812_v51 = vld [vmem:[%s1303_s1 + $0x54] sm:$0xf0] }
   0xf   :  { %937 = vmatpush.bf16.msra.mxu1 %v920_v12  ;;  %v811_v52 = vor.u32 %v906_v49, %v810_v48  ;;  %v815_v53 = vor.u32 %v905_v50, %v812_v51  ;;  %v966_v8 = vmov 0.0   ;;  %v967_v39 = vmov 0  }
  0x10   :  { %25 = vst.msk [vmem:[#allocation3 + $0x10] sm:$0xff] %vm22_vm1, %v966_v8  ;;  %945 = vset.pattern.permute.xlu1 %v967_v39  ;;  %946 = vset.pattern.permute.xlu2 %v967_v39 }
  0x11   :  { %23 = vst.msk [vmem:[#allocation3] sm:$0xff] %vm22_vm1, %v966_v8  ;;  %947 = vset.pattern.permute.xlu0 %v967_v39 }
  0x12   :  { %268 = vmatpush.bf16.msra.mxu0 %v911_v13  ;;  %930 = vmatpush.bf16.msra.mxu3 %v911_v13  ;;  %24 = vst.msk [vmem:[#allocation3 + $0x8] sm:$0xff] %vm22_vm1, %v966_v8 }
  0x13   :  { %938 = vmatpush.bf16.msra.mxu1 %v919_v14  ;;  %26 = vst.msk [vmem:[#allocation3 + $0x18] sm:$0xff] %vm22_vm1, %v966_v8 }
  0x14   :  { %27 = vst.msk [vmem:[#allocation3 + $0x20] sm:$0xff] %vm22_vm1, %v966_v8 }
  0x15   :  { %28 = vst.msk [vmem:[#allocation3 + $0x28] sm:$0xff] %vm22_vm1, %v966_v8 }
  0x16   :  { %269 = vmatpush.bf16.msra.mxu0 %v910_v15  ;;  %931 = vmatpush.bf16.msra.mxu3 %v910_v15  ;;  %29 = vst.msk [vmem:[#allocation3 + $0x30] sm:$0xff] %vm22_vm1, %v966_v8 }
  0x17   :  { %939 = vmatpush.bf16.msra.mxu1 %v918_v16  ;;  %30 = vst.msk [vmem:[#allocation3 + $0x38] sm:$0xff] %vm22_vm1, %v966_v8  ;;  %v353_v44 = vld [vmem:[#allocation3 + $0x10] sm:$0xff] }
  0x1a   :  { %270 = vmatpush.bf16.msra.mxu0 %v909_v19  ;;  %932 = vmatpush.bf16.msra.mxu3 %v909_v19  ;;  %v354_v49 = vld [vmem:[#allocation3 + $0x18] sm:$0xff] }
  0x1b   :  { %940 = vmatpush.bf16.msra.mxu1 %v917_v20  ;;  %893 = vmatmul.msk.bf16.gmra.mxu2 %vm251_vm0, %v795_v21 }
  0x1e   :  { %271 = vmatpush.bf16.msra.mxu0 %v908_v22  ;;  %933 = vmatpush.bf16.msra.mxu3 %v908_v22 }
  0x1f   :  { %941 = vmatpush.bf16.msra.mxu1 %v916_v27 }
  0x21   :  { %277 = vmatmul.bf16.vlgmr.msra.gmra.mxu3 %v787_v30  ;;  %272 = vmatmul.bf16.vlgmr.msra.gmra.mxu0 %v775_v31 }
  0x22   :  { %293 = vmatpush.bf16.msrb.mxu0 %v923_v1  ;;  %306 = vmatmul.bf16.vlgmr.msra.gmra.mxu1 %v791_v32 }
  0x26   :  { %294 = vmatpush.bf16.msrb.mxu0 %v922_v4 }
  0x2a   :  { %295 = vmatpush.bf16.msrb.mxu0 %v921_v9 }
  0x2b   :  { %894 = vmatmul.msk.bf16.gmra.mxu2 %vm251_vm0, %v807_v35 }
  0x2e   :  { %296 = vmatpush.bf16.msrb.mxu0 %v920_v12 }
  0x31   :  { %282 = vmatmul.bf16.gmra.mxu3 %v799_v40  ;;  %v968_v40 = vmov 32.0  }
  0x32   :  { %297 = vmatpush.bf16.msrb.mxu0 %v919_v14  ;;  %311 = vmatmul.bf16.gmra.mxu1 %v803_v41  ;;  %948 = vrcp.f32 %v968_v40 }
  0x36   :  { %298 = vmatpush.bf16.msrb.mxu0 %v918_v16 }
  0x38   :  { %v949_v41 = vpop.eup %948 }
  0x39   :  { %v424_v42 = vmul.f32 32.0, %v949_v41  ;;  %vm428_vm2 = vweird.f32 %v949_v41 }
  0x3a   :  { %299 = vmatpush.bf16.msrb.mxu0 %v917_v20 }
  0x3b   :  { %895 = vmatmul.msk.bf16.gmra.mxu2 %vm251_vm0, %v819_v46  ;;  %v425_v43 = vsub.f32 1.0, %v424_v42 }
  0x3d   :  { %v426_v46 = vmul.f32 %v949_v41, %v425_v43 }
  0x3e   :  { %300 = vmatpush.bf16.msrb.mxu0 %v916_v27 }
  0x3f   :  { %v427_v48 = vadd.f32 %v949_v41, %v426_v46 }
  0x41   :  { %301 = vmatmul.bf16.vlgmr.msrb.gmra.mxu0 %v779_v47  ;;  %287 = vmatmul.bf16.gmra.mxu3 %v811_v52  ;;  %v1149_v51 = vsel %vm428_vm2, %v949_v41, %v427_v48  ;;  %v688_v48 = vld [vmem:[%s1304_s3 + $0x10] sm:$0xff] }
  0x42   :  { %316 = vmatmul.bf16.gmra.mxu1 %v815_v53 }
  0x8e   :  { %v331_v54 = vpop.f32.mrf.mxu2 }
  0x96   :  { %v333_v55 = vpop.f32.mrf.mxu2 }
  0x9e   :  { %v336_v56 = vpop.f32.mrf.mxu2  ;;  %v273_v63 = vpop.f32.mrf.mxu0 }
  0x9f   :  { %v307_v57 = vpop.f32.mrf.mxu1 }
  0xa4   :  { %v278_v58 = vpop.f32.mrf.mxu3 }
  0xa5   :  { %v308_v59 = vadd.f32 %v307_v57, %v278_v58 }
  0xa6   :  { %v338_v60 = vpop.f32.mrf.mxu2  ;;  %v275_v7 = vpop.f32.mrf.mxu0 }
  0xa7   :  { %v337_v61 = vadd.f32 %v336_v56, %v308_v59  ;;  %v309_v62 = vpop.f32.mrf.mxu1 }
  0xa9   :  { %406 = vst.msk [vmem:[#allocation2 + $0x10] sm:$0xff] %vm251_vm0, %v337_v61  ;;  %v365_v0 = vsel %vm251_vm0, %v337_v61, 0.0  ;;  %v356_v61 = vld [vmem:[#allocation3 + $0x28] sm:$0xff] }
  0xaa   :  { %366 = vadd.xlane.f32.xlu1 %v365_v0 }
  0xac   :  { %v280_v1 = vpop.f32.mrf.mxu3 }
  0xad   :  { %v310_v2 = vadd.f32 %v309_v62, %v280_v1 }
  0xae   :  { %v341_v3 = vpop.f32.mrf.mxu2 }
  0xaf   :  { %v339_v4 = vadd.f32 %v338_v60, %v310_v2  ;;  %v312_v5 = vpop.f32.mrf.mxu1  ;;  %v351_v60 = vld [vmem:[#allocation3] sm:$0xff]  ;;  %v352_v2 = vld [vmem:[#allocation3 + $0x8] sm:$0xff] }
  0xb1   :  { %407 = vst.msk [vmem:[#allocation2 + $0x18] sm:$0xff] %vm251_vm0, %v339_v4  ;;  %v368_v6 = vsel %vm251_vm0, %v339_v4, 0.0 }
  0xb2   :  { %369 = vadd.xlane.f32.xlu1 %v368_v6 }
  0xb4   :  { %v283_v9 = vpop.f32.mrf.mxu3 }
  0xb5   :  { %v313_v10 = vadd.f32 %v312_v5, %v283_v9  ;;  %v357_v9 = vld [vmem:[#allocation3 + $0x30] sm:$0xff] }
  0xb6   :  { %v343_v13 = vpop.f32.mrf.mxu2 }
  0xb7   :  { %v342_v11 = vadd.f32 %v341_v3, %v313_v10  ;;  %v314_v12 = vpop.f32.mrf.mxu1 }
  0xb9   :  { %408 = vst.msk [vmem:[#allocation2 + $0x20] sm:$0xff] %vm251_vm0, %v342_v11  ;;  %v371_v14 = vsel %vm251_vm0, %v342_v11, 0.0  ;;  %v358_v11 = vld [vmem:[#allocation3 + $0x38] sm:$0xff] }
  0xba   :  { %372 = vadd.xlane.f32.xlu2 %v371_v14 }
  0xbc   :  { %v285_v17 = vpop.f32.mrf.mxu3 }
  0xbd   :  { %v315_v18 = vadd.f32 %v314_v12, %v285_v17 }
  0xbe   :  { %v302_v15 = vpop.f32.mrf.mxu0  ;;  %v346_v24 = vpop.f32.mrf.mxu2 }
  0xbf   :  { %v303_v16 = vadd.f32 %v302_v15, %v273_v63  ;;  %v344_v20 = vadd.f32 %v343_v13, %v315_v18  ;;  %v317_v22 = vpop.f32.mrf.mxu1 }
  0xc1   :  { %v332_v19 = vadd.f32 %v331_v54, %v303_v16  ;;  %409 = vst.msk [vmem:[#allocation2 + $0x28] sm:$0xff] %vm251_vm0, %v344_v20  ;;  %v374_v23 = vsel %vm251_vm0, %v344_v20, 0.0 }
  0xc2   :  { %375 = vadd.xlane.f32.xlu2 %v374_v23  ;;  %v441_v23 = vld [vmem:[#allocation2 + $0x18] sm:$0xff] }
  0xc3   :  { %v359_v21 = vsel %vm251_vm0, %v332_v19, 0.0  ;;  %404 = vst.msk [vmem:[#allocation2] sm:$0xff] %vm251_vm0, %v332_v19 }
  0xc4   :  { %360 = vadd.xlane.f32.xlu0 %v359_v21  ;;  %v288_v27 = vpop.f32.mrf.mxu3 }
  0xc5   :  { %v318_v28 = vadd.f32 %v317_v22, %v288_v27 }
  0xc6   :  { %v304_v25 = vpop.f32.mrf.mxu0  ;;  %v348_v34 = vpop.f32.mrf.mxu2 }
  0xc7   :  { %v305_v26 = vadd.f32 %v304_v25, %v275_v7  ;;  %v347_v30 = vadd.f32 %v346_v24, %v318_v28  ;;  %v319_v32 = vpop.f32.mrf.mxu1 }
  0xc8   :  { %v443_v43 = vld [vmem:[#allocation2 + $0x28] sm:$0xff] }
  0xc9   :  { %v334_v29 = vadd.f32 %v333_v55, %v305_v26  ;;  %410 = vst.msk [vmem:[#allocation2 + $0x30] sm:$0xff] %vm251_vm0, %v347_v30  ;;  %v377_v36 = vsel %vm251_vm0, %v347_v30, 0.0  ;;  %v355_v55 = vld [vmem:[#allocation3 + $0x20] sm:$0xff] }
  0xca   :  { %v438_v28 = vld [vmem:[#allocation2] sm:$0xff] }
  0xcb   :  { %v362_v31 = vsel %vm251_vm0, %v334_v29, 0.0  ;;  %405 = vst.msk [vmem:[#allocation2 + $0x8] sm:$0xff] %vm251_vm0, %v334_v29 }
  0xcc   :  { %363 = vadd.xlane.f32.xlu0 %v362_v31  ;;  %v290_v33 = vpop.f32.mrf.mxu3  ;;  %v440_v31 = vld [vmem:[#allocation2 + $0x10] sm:$0xff] }
  0xcd   :  { %v320_v35 = vadd.f32 %v319_v32, %v290_v33 }
  0xcf   :  { %v349_v37 = vadd.f32 %v348_v34, %v320_v35 }
  0xd1   :  { %411 = vst.msk [vmem:[#allocation2 + $0x38] sm:$0xff] %vm251_vm0, %v349_v37  ;;  %v380_v38 = vsel %vm251_vm0, %v349_v37, 0.0 }
  0xd2   :  { %381 = vadd.xlane.f32.xlu1 %v380_v38  ;;  %v442_v38 = vld [vmem:[#allocation2 + $0x20] sm:$0xff] }
  0xd4   :  { %378 = vadd.xlane.f32.xlu0 %v377_v36 }
 0x11d   :  { %v367_v45 = vpop.xlane.xlu1 %366 }
 0x11e   :  { %v385_v47 = vadd.f32 %v367_v45, %v353_v44 }
 0x120   :  { %394 = vst.msk [vmem:[#allocation3 + $0x10] sm:$0xff] %vm22_vm1, %v385_v47 }
 0x125   :  { %v370_v50 = vpop.xlane.xlu1 %369 }
 0x126   :  { %v386_v52 = vadd.f32 %v370_v50, %v354_v49  ;;  %v439_v49 = vld [vmem:[#allocation2 + $0x8] sm:$0xff] }
 0x127   :  { %v417_v53 = vld [vmem:[#allocation3 + $0x10] sm:$0xff] }
 0x128   :  { %395 = vst.msk [vmem:[#allocation3 + $0x18] sm:$0xff] %vm22_vm1, %v386_v52  ;;  %v432_v54 = vmul.f32 %v1149_v51, %v417_v53 }
 0x12a   :  { %458 = vperm.xlu1 %945, %v432_v54  }
 0x12d   :  { %v373_v56 = vpop.xlane.xlu2 %372 }
 0x12e   :  { %v387_v57 = vadd.f32 %v373_v56, %v355_v55  ;;  %v444_v55 = vld [vmem:[#allocation2 + $0x30] sm:$0xff] }
 0x12f   :  { %v418_v58 = vld [vmem:[#allocation3 + $0x18] sm:$0xff] }
 0x130   :  { %396 = vst.msk [vmem:[#allocation3 + $0x20] sm:$0xff] %vm22_vm1, %v387_v57  ;;  %v433_v59 = vmul.f32 %v1149_v51, %v418_v58 }
 0x132   :  { %463 = vperm.xlu2 %946, %v433_v59  }
 0x135   :  { %v376_v0 = vpop.xlane.xlu2 %375 }
 0x136   :  { %v388_v1 = vadd.f32 %v376_v0, %v356_v61  ;;  %v690_v61 = vld [vmem:[%s1304_s3 + $0x20] sm:$0xff] }
 0x137   :  { %v361_v62 = vpop.xlane.xlu0 %360  ;;  %v419_v10 = vld [vmem:[#allocation3 + $0x20] sm:$0xff] }
 0x138   :  { %v383_v63 = vadd.f32 %v361_v62, %v351_v60  ;;  %397 = vst.msk [vmem:[#allocation3 + $0x28] sm:$0xff] %vm22_vm1, %v388_v1  ;;  %v434_v15 = vmul.f32 %v1149_v51, %v419_v10  ;;  %v687_v60 = vld [vmem:[%s1304_s3 + $0x8] sm:$0xff]  ;;  %v686_v1 = vld [vmem:[%s1304_s3] sm:$0xff] }
 0x13a   :  { %392 = vst.msk [vmem:[#allocation3] sm:$0xff] %vm22_vm1, %v383_v63  ;;  %v445_v63 = vld [vmem:[#allocation2 + $0x38] sm:$0xff] }
 0x13f   :  { %v364_v3 = vpop.xlane.xlu0 %363  ;;  %v420_v7 = vld [vmem:[#allocation3 + $0x28] sm:$0xff] }
 0x140   :  { %v384_v4 = vadd.f32 %v364_v3, %v352_v2  ;;  %v435_v8 = vmul.f32 %v1149_v51, %v420_v7 }
 0x141   :  { %v415_v5 = vld [vmem:[#allocation3] sm:$0xff] }
 0x142   :  { %393 = vst.msk [vmem:[#allocation3 + $0x8] sm:$0xff] %vm22_vm1, %v384_v4  ;;  %v430_v6 = vmul.f32 %v1149_v51, %v415_v5  ;;  %473 = vperm.xlu1 %945, %v435_v8   ;;  %v689_v4 = vld [vmem:[%s1304_s3 + $0x18] sm:$0xff] }
 0x144   :  { %448 = vperm.xlu2 %946, %v430_v6  }
 0x145   :  { %v382_v14 = vpop.xlane.xlu1 %381 }
 0x146   :  { %v390_v16 = vadd.f32 %v382_v14, %v358_v11 }
 0x147   :  { %v379_v12 = vpop.xlane.xlu0 %378 }
 0x148   :  { %v389_v13 = vadd.f32 %v379_v12, %v357_v9  ;;  %399 = vst.msk [vmem:[#allocation3 + $0x38] sm:$0xff] %vm22_vm1, %v390_v16 }
 0x149   :  { %v416_v17 = vld [vmem:[#allocation3 + $0x8] sm:$0xff] }
 0x14a   :  { %398 = vst.msk [vmem:[#allocation3 + $0x30] sm:$0xff] %vm22_vm1, %v389_v13  ;;  %v431_v18 = vmul.f32 %v1149_v51, %v416_v17 }
 0x14c   :  { %468 = vperm.xlu2 %946, %v434_v15   ;;  %453 = vperm.xlu0 %947, %v431_v18  }
 0x14f   :  { %v422_v21 = vld [vmem:[#allocation3 + $0x38] sm:$0xff] }
 0x150   :  { %v437_v22 = vmul.f32 %v1149_v51, %v422_v21 }
 0x151   :  { %v421_v19 = vld [vmem:[#allocation3 + $0x30] sm:$0xff] }
 0x152   :  { %v436_v20 = vmul.f32 %v1149_v51, %v421_v19  ;;  %483 = vperm.xlu1 %945, %v437_v22   ;;  %v537_v19 = vld [vmem:[%s1305_s2 + $0x18] sm:$0xff] }
 0x154   :  { %478 = vperm.xlu2 %946, %v436_v20  }
 0x18c   :  { %v464_v24 = vpop.permute.xlu2 %463 }
 0x18d   :  { %v1166_v25 = vsub.f32 %v441_v23, %v464_v24 }
 0x18f   :  { %v497_v26 = vmul.f32 %v1166_v25, %v1166_v25 }
 0x191   :  { %v511_v27 = vsel %vm251_vm0, %v497_v26, 0.0 }
 0x192   :  { %512 = vadd.xlane.f32.xlu2 %v511_v27 }
 0x19c   :  { %v459_v32 = vpop.permute.xlu1 %458 }
 0x19d   :  { %v1173_v33 = vsub.f32 %v440_v31, %v459_v32 }
 0x19e   :  { %v449_v29 = vpop.permute.xlu2 %448 }
 0x19f   :  { %v1171_v30 = vsub.f32 %v438_v28, %v449_v29  ;;  %v496_v35 = vmul.f32 %v1173_v33, %v1173_v33 }
 0x1a1   :  { %v494_v34 = vmul.f32 %v1171_v30, %v1171_v30  ;;  %v508_v37 = vsel %vm251_vm0, %v496_v35, 0.0 }
 0x1a2   :  { %509 = vadd.xlane.f32.xlu1 %v508_v37 }
 0x1a3   :  { %v502_v36 = vsel %vm251_vm0, %v494_v34, 0.0 }
 0x1a4   :  { %503 = vadd.xlane.f32.xlu0 %v502_v36 }
 0x1a6   :  { %v469_v39 = vpop.permute.xlu2 %468 }
 0x1a7   :  { %v1181_v40 = vsub.f32 %v442_v38, %v469_v39 }
 0x1a9   :  { %v498_v41 = vmul.f32 %v1181_v40, %v1181_v40 }
 0x1ab   :  { %v514_v42 = vsel %vm251_vm0, %v498_v41, 0.0 }
 0x1ac   :  { %515 = vadd.xlane.f32.xlu0 %v514_v42  ;;  %v534_v42 = vld [vmem:[%s1305_s2] sm:$0xff] }
 0x1ae   :  { %v479_v53 = vpop.permute.xlu2 %478 }
 0x1af   :  { %v1198_v56 = vsub.f32 %v444_v55, %v479_v53 }
 0x1b1   :  { %v500_v58 = vmul.f32 %v1198_v56, %v1198_v56 }
 0x1b3   :  { %v520_v59 = vsel %vm251_vm0, %v500_v58, 0.0 }
 0x1b4   :  { %v474_v44 = vpop.permute.xlu1 %473 }
 0x1b5   :  { %v1186_v45 = vsub.f32 %v443_v43, %v474_v44  ;;  %v536_v44 = vld [vmem:[%s1305_s2 + $0x10] sm:$0xff] }
 0x1b7   :  { %v499_v46 = vmul.f32 %v1186_v45, %v1186_v45 }
 0x1b9   :  { %v517_v47 = vsel %vm251_vm0, %v499_v46, 0.0 }
 0x1ba   :  { %518 = vadd.xlane.f32.xlu1 %v517_v47 }
 0x1be   :  { %v454_v50 = vpop.permute.xlu0 %453 }
 0x1bf   :  { %v1194_v52 = vsub.f32 %v439_v49, %v454_v50 }
 0x1c0   :  { %706 = vperm.xlu0 %947, %v688_v48  }
 0x1c1   :  { %v495_v54 = vmul.f32 %v1194_v52, %v1194_v52 }
 0x1c3   :  { %v505_v57 = vsel %vm251_vm0, %v495_v54, 0.0 }
 0x1c4   :  { %506 = vadd.xlane.f32.xlu2 %v505_v57  ;;  %v484_v62 = vpop.permute.xlu1 %483 }
 0x1c5   :  { %v1210_v0 = vsub.f32 %v445_v63, %v484_v62 }
 0x1c7   :  { %v501_v2 = vmul.f32 %v1210_v0, %v1210_v0 }
 0x1c9   :  { %v523_v3 = vsel %vm251_vm0, %v501_v2, 0.0 }
 0x1cc   :  { %521 = vadd.xlane.f32.xlu2 %v520_v59 }
 0x1d3   :  { %701 = vperm.xlu1 %945, %v687_v60   ;;  %v538_v60 = vld [vmem:[%s1305_s2 + $0x20] sm:$0xff] }
 0x1db   :  { %716 = vperm.xlu1 %945, %v690_v61  }
 0x1e4   :  { %696 = vperm.xlu2 %946, %v686_v1  }
 0x1ea   :  { %524 = vadd.xlane.f32.xlu0 %v523_v3 }
 0x1ec   :  { %711 = vperm.xlu2 %946, %v689_v4  }
 0x205   :  { %v513_v5 = vpop.xlane.xlu2 %512 }
 0x206   :  { %v529_v6 = vmul.f32 %v513_v5, %v1149_v51 }
 0x208   :  { %v545_v7 = vadd.f32 1e-05, %v529_v6 }
 0x20a   :  { %950 = vrsqrt.f32 %v545_v7  ;;  %vm586_vm4 = vweird.f32 %v545_v7 }
 0x210   :  { %v951_v8 = vpop.eup %950 }
 0x211   :  { %v581_v9 = vmul.f32 %v951_v8, %v545_v7  ;;  %vm587_vm3 = vweird.f32 %v951_v8 }
 0x212   :  { %vm588_vm5 = vmor %vm586_vm4, %vm587_vm3 }
 0x213   :  { %v582_v10 = vmul.f32 %v951_v8, %v581_v9 }
 0x215   :  { %v583_v12 = vmul.f32 0.5, %v582_v10  ;;  %v510_v14 = vpop.xlane.xlu1 %509 }
 0x216   :  { %v528_v15 = vmul.f32 %v510_v14, %v1149_v51 }
 0x217   :  { %v504_v11 = vpop.xlane.xlu0 %503  ;;  %v584_v16 = vsub.f32 1.5, %v583_v12 }
 0x218   :  { %v526_v13 = vmul.f32 %v504_v11, %v1149_v51  ;;  %v544_v18 = vadd.f32 1e-05, %v528_v15 }
 0x219   :  { %v585_v20 = vmul.f32 %v951_v8, %v584_v16 }
 0x21a   :  { %v542_v17 = vadd.f32 1e-05, %v526_v13  ;;  %vm576_vm10 = vweird.f32 %v544_v18 }
 0x21b   :  { %v589_v21 = vsel %vm588_vm5, %v951_v8, %v585_v20 }
 0x21c   :  { %952 = vrsqrt.f32 %v542_v17  ;;  %v633_v23 = vmul.f32 %v589_v21, %v537_v19  ;;  %vm556_vm8 = vweird.f32 %v542_v17  ;;  %v535_v19 = vld [vmem:[%s1305_s2 + $0x8] sm:$0xff] }
 0x21d   :  { %954 = vrsqrt.f32 %v544_v18 }
 0x21e   :  { %655 = vperm.xlu1 %945, %v633_v23  }
 0x21f   :  { %v516_v22 = vpop.xlane.xlu0 %515 }
 0x220   :  { %v530_v24 = vmul.f32 %v516_v22, %v1149_v51 }
 0x222   :  { %v953_v26 = vpop.eup %952  ;;  %v546_v27 = vadd.f32 1e-05, %v530_v24 }
 0x223   :  { %v955_v28 = vpop.eup %954  ;;  %v551_v29 = vmul.f32 %v953_v26, %v542_v17  ;;  %vm557_vm6 = vweird.f32 %v953_v26 }
 0x224   :  { %v571_v31 = vmul.f32 %v955_v28, %v544_v18  ;;  %956 = vrsqrt.f32 %v546_v27  ;;  %vm577_vm7 = vweird.f32 %v955_v28  ;;  %vm558_vm9 = vmor %vm556_vm8, %vm557_vm6  ;;  %vm596_vm13 = vweird.f32 %v546_v27 }
 0x225   :  { %v552_v32 = vmul.f32 %v953_v26, %v551_v29  ;;  %vm578_vm11 = vmor %vm576_vm10, %vm577_vm7 }
 0x226   :  { %v572_v34 = vmul.f32 %v955_v28, %v571_v31  ;;  %v540_v31 = vld [vmem:[%s1305_s2 + $0x30] sm:$0xff] }
 0x227   :  { %v553_v35 = vmul.f32 0.5, %v552_v32 }
 0x228   :  { %v573_v36 = vmul.f32 0.5, %v572_v34 }
 0x229   :  { %v554_v37 = vsub.f32 1.5, %v553_v35 }
 0x22a   :  { %v957_v38 = vpop.eup %956  ;;  %v574_v39 = vsub.f32 1.5, %v573_v36 }
 0x22b   :  { %v591_v41 = vmul.f32 %v957_v38, %v546_v27  ;;  %v555_v43 = vmul.f32 %v953_v26, %v554_v37  ;;  %vm597_vm12 = vweird.f32 %v957_v38 }
 0x22c   :  { %v575_v46 = vmul.f32 %v955_v28, %v574_v39  ;;  %vm598_vm14 = vmor %vm596_vm13, %vm597_vm12  ;;  %v692_v39 = vld [vmem:[%s1304_s3 + $0x30] sm:$0xff] }
 0x22d   :  { %v592_v47 = vmul.f32 %v957_v38, %v591_v41  ;;  %v559_v48 = vsel %vm558_vm9, %v953_v26, %v555_v43  ;;  %v519_v55 = vpop.xlane.xlu1 %518  ;;  %v693_v41 = vld [vmem:[%s1304_s3 + $0x38] sm:$0xff] }
 0x22e   :  { %v630_v49 = vmul.f32 %v559_v48, %v534_v42  ;;  %v579_v50 = vsel %vm578_vm11, %v955_v28, %v575_v46  ;;  %v531_v58 = vmul.f32 %v519_v55, %v1149_v51  ;;  %v539_v28 = vld [vmem:[%s1305_s2 + $0x28] sm:$0xff]  ;;  %vm758_vm11 = vcmask 257024  }
 0x22f   :  { %v593_v53 = vmul.f32 0.5, %v592_v47  ;;  %v632_v54 = vmul.f32 %v579_v50, %v536_v44  ;;  %v541_v50 = vld [vmem:[%s1305_s2 + $0x38] sm:$0xff] }
 0x230   :  { %640 = vperm.xlu1 %945, %v630_v49   ;;  %v547_v59 = vadd.f32 1e-05, %v531_v58 }
 0x231   :  { %v594_v57 = vsub.f32 1.5, %v593_v53  ;;  %650 = vperm.xlu0 %947, %v632_v54  }
 0x232   :  { %958 = vrsqrt.f32 %v547_v59  ;;  %vm606_vm3 = vweird.f32 %v547_v59  ;;  %v707_v34 = vpop.permute.xlu0 %706 }
 0x233   :  { %v595_v61 = vmul.f32 %v957_v38, %v594_v57 }
 0x235   :  { %v599_v62 = vsel %vm598_vm14, %v957_v38, %v595_v61 }
 0x236   :  { %v634_v63 = vmul.f32 %v599_v62, %v538_v60 }
 0x237   :  { %v507_v1 = vpop.xlane.xlu2 %506 }
 0x238   :  { %v527_v2 = vmul.f32 %v507_v1, %v1149_v51  ;;  %v959_v4 = vpop.eup %958 }
 0x239   :  { %660 = vperm.xlu0 %947, %v634_v63   ;;  %v601_v5 = vmul.f32 %v959_v4, %v547_v59  ;;  %vm607_vm2 = vweird.f32 %v959_v4 }
 0x23a   :  { %v543_v3 = vadd.f32 1e-05, %v527_v2  ;;  %vm608_vm5 = vmor %vm606_vm3, %vm607_vm2 }
 0x23b   :  { %v602_v10 = vmul.f32 %v959_v4, %v601_v5 }
 0x23c   :  { %960 = vrsqrt.f32 %v543_v3  ;;  %vm566_vm0 = vweird.f32 %v543_v3 }
 0x23d   :  { %v603_v13 = vmul.f32 0.5, %v602_v10 }
 0x23f   :  { %v522_v6 = vpop.xlane.xlu2 %521  ;;  %v604_v17 = vsub.f32 1.5, %v603_v13 }
 0x240   :  { %v532_v7 = vmul.f32 %v522_v6, %v1149_v51 }
 0x241   :  { %v605_v26 = vmul.f32 %v959_v4, %v604_v17 }
 0x242   :  { %v961_v8 = vpop.eup %960  ;;  %v548_v9 = vadd.f32 1e-05, %v532_v7 }
 0x243   :  { %v561_v11 = vmul.f32 %v961_v8, %v543_v3  ;;  %vm567_vm15 = vweird.f32 %v961_v8  ;;  %v609_v29 = vsel %vm608_vm5, %v959_v4, %v605_v26 }
 0x244   :  { %962 = vrsqrt.f32 %v548_v9  ;;  %vm568_vm1 = vmor %vm566_vm0, %vm567_vm15  ;;  %vm616_vm6 = vweird.f32 %v548_v9  ;;  %v635_v36 = vmul.f32 %v609_v29, %v539_v28 }
 0x245   :  { %v562_v12 = vmul.f32 %v961_v8, %v561_v11  ;;  %v702_v57 = vpop.permute.xlu1 %701 }
 0x247   :  { %v563_v14 = vmul.f32 0.5, %v562_v12  ;;  %v697_v58 = vpop.permute.xlu2 %696 }
 0x249   :  { %v564_v15 = vsub.f32 1.5, %v563_v14 }
 0x24a   :  { %v963_v16 = vpop.eup %962 }
 0x24b   :  { %v611_v18 = vmul.f32 %v963_v16, %v548_v9  ;;  %v565_v20 = vmul.f32 %v961_v8, %v564_v15  ;;  %vm617_vm4 = vweird.f32 %v963_v16 }
 0x24c   :  { %vm618_vm7 = vmor %vm616_vm6, %vm617_vm4 }
 0x24d   :  { %v612_v21 = vmul.f32 %v963_v16, %v611_v18  ;;  %v569_v22 = vsel %vm568_vm1, %v961_v8, %v565_v20  ;;  %v717_v59 = vpop.permute.xlu1 %716 }
 0x24e   :  { %v631_v23 = vmul.f32 %v569_v22, %v535_v19 }
 0x24f   :  { %v613_v24 = vmul.f32 0.5, %v612_v21  ;;  %v712_v62 = vpop.permute.xlu2 %711 }
 0x250   :  { %645 = vperm.xlu2 %946, %v631_v23  }
 0x251   :  { %v614_v27 = vsub.f32 1.5, %v613_v24 }
 0x253   :  { %v615_v32 = vmul.f32 %v963_v16, %v614_v27 }
 0x255   :  { %v619_v35 = vsel %vm618_vm7, %v963_v16, %v615_v32 }
 0x256   :  { %v636_v37 = vmul.f32 %v619_v35, %v540_v31 }
 0x258   :  { %665 = vperm.xlu2 %946, %v635_v36   ;;  %670 = vperm.xlu1 %945, %v636_v37  }
 0x25d   :  { %v525_v38 = vpop.xlane.xlu0 %524 }
 0x25e   :  { %v533_v42 = vmul.f32 %v525_v38, %v1149_v51  ;;  %v691_v51 = vld [vmem:[%s1304_s3 + $0x28] sm:$0xff] }
 0x260   :  { %v549_v43 = vadd.f32 1e-05, %v533_v42  ;;  %726 = vperm.xlu2 %946, %v692_v39   ;;  %731 = vperm.xlu1 %945, %v693_v41  }
 0x262   :  { %964 = vrsqrt.f32 %v549_v43  ;;  %vm626_vm9 = vweird.f32 %v549_v43 }
 0x268   :  { %v965_v44 = vpop.eup %964 }
 0x269   :  { %v621_v46 = vmul.f32 %v965_v44, %v549_v43  ;;  %vm627_vm8 = vweird.f32 %v965_v44 }
 0x26a   :  { %vm628_vm10 = vmor %vm626_vm9, %vm627_vm8 }
 0x26b   :  { %v622_v47 = vmul.f32 %v965_v44, %v621_v46 }
 0x26d   :  { %v623_v48 = vmul.f32 0.5, %v622_v47 }
 0x26f   :  { %v624_v49 = vsub.f32 1.5, %v623_v48 }
 0x271   :  { %v625_v53 = vmul.f32 %v965_v44, %v624_v49 }
 0x273   :  { %v629_v54 = vsel %vm628_vm10, %v965_v44, %v625_v53 }
 0x274   :  { %v637_v55 = vmul.f32 %v629_v54, %v541_v50 }
 0x276   :  { %675 = vperm.xlu0 %947, %v637_v55  }
 0x27e   :  { %721 = vperm.xlu0 %947, %v691_v51  }
 0x290   :  { %v656_v60 = vpop.permute.xlu1 %655 }
 0x291   :  { %v681_v61 = vmul.f32 %v656_v60, %v1166_v25 }
 0x293   :  { %v737_v63 = vadd.f32 %v712_v62, %v681_v61 }
 0x295   :  { %v745_v1 = vmax.f32 %v737_v63, 0.0 }
 0x297   :  { %v753_v2 = vpack.c.bf16 %v745_v1, %v745_v1 }
 0x299   :  { %762 = vst.msk [vmem:[%s1306_s4 + $0xc] sm:$0xf] %vm758_vm11, %v753_v2 }
 0x2a2   :  { %v641_v3 = vpop.permute.xlu1 %640 }
 0x2a3   :  { %v678_v4 = vmul.f32 %v641_v3, %v1171_v30  ;;  %v651_v5 = vpop.permute.xlu0 %650 }
 0x2a4   :  { %v680_v6 = vmul.f32 %v651_v5, %v1173_v33 }
 0x2a5   :  { %v734_v7 = vadd.f32 %v697_v58, %v678_v4 }
 0x2a6   :  { %v736_v8 = vadd.f32 %v707_v34, %v680_v6 }
 0x2a7   :  { %v742_v9 = vmax.f32 %v734_v7, 0.0 }
 0x2a8   :  { %v744_v25 = vmax.f32 %v736_v8, 0.0 }
 0x2a9   :  { %v750_v10 = vpack.c.bf16 %v742_v9, %v742_v9 }
 0x2aa   :  { %v752_v11 = vpack.c.bf16 %v744_v25, %v744_v25  ;;  %v646_v12 = vpop.permute.xlu2 %645 }
 0x2ab   :  { %759 = vst.msk [vmem:[%s1306_s4] sm:$0xf] %vm758_vm11, %v750_v10  ;;  %v679_v13 = vmul.f32 %v646_v12, %v1194_v52  ;;  %v661_v14 = vpop.permute.xlu0 %660 }
 0x2ac   :  { %761 = vst.msk [vmem:[%s1306_s4 + $0x8] sm:$0xf] %vm758_vm11, %v752_v11  ;;  %v682_v30 = vmul.f32 %v661_v14, %v1181_v40 }
 0x2ad   :  { %v735_v33 = vadd.f32 %v702_v57, %v679_v13 }
 0x2ae   :  { %v738_v15 = vadd.f32 %v717_v59, %v682_v30 }
 0x2af   :  { %v743_v16 = vmax.f32 %v735_v33, 0.0 }
 0x2b0   :  { %v746_v17 = vmax.f32 %v738_v15, 0.0 }
 0x2b1   :  { %v751_v18 = vpack.c.bf16 %v743_v16, %v743_v16 }
 0x2b2   :  { %v754_v19 = vpack.c.bf16 %v746_v17, %v746_v17  ;;  %v666_v52 = vpop.permute.xlu2 %665 }
 0x2b3   :  { %760 = vst.msk [vmem:[%s1306_s4 + $0x4] sm:$0xf] %vm758_vm11, %v751_v18  ;;  %v683_v32 = vmul.f32 %v666_v52, %v1186_v45 }
 0x2b4   :  { %763 = vst.msk [vmem:[%s1306_s4 + $0x10] sm:$0xf] %vm758_vm11, %v754_v19 }
 0x2ba   :  { %v727_v21 = vpop.permute.xlu2 %726 }
 0x2ca   :  { %v671_v20 = vpop.permute.xlu1 %670 }
 0x2cb   :  { %v684_v40 = vmul.f32 %v671_v20, %v1198_v56 }
 0x2cd   :  { %v740_v22 = vadd.f32 %v727_v21, %v684_v40 }
 0x2cf   :  { %v748_v23 = vmax.f32 %v740_v22, 0.0 }
 0x2d1   :  { %v756_v24 = vpack.c.bf16 %v748_v23, %v748_v23 }
 0x2d2   :  { %v732_v28 = vpop.permute.xlu1 %731 }
 0x2d3   :  { %765 = vst.msk [vmem:[%s1306_s4 + $0x18] sm:$0xf] %vm758_vm11, %v756_v24 }
 0x2e8   :  { %v676_v26 = vpop.permute.xlu0 %675 }
 0x2e9   :  { %v685_v27 = vmul.f32 %v676_v26, %v1210_v0 }
 0x2eb   :  { %v741_v29 = vadd.f32 %v732_v28, %v685_v27 }
 0x2ed   :  { %v749_v31 = vmax.f32 %v741_v29, 0.0 }
 0x2ef   :  { %v757_v34 = vpack.c.bf16 %v749_v31, %v749_v31 }
 0x2f0   :  { %v722_v35 = vpop.permute.xlu0 %721 }
 0x2f1   :  { %766 = vst.msk [vmem:[%s1306_s4 + $0x1c] sm:$0xf] %vm758_vm11, %v757_v34  ;;  %v739_v56 = vadd.f32 %v722_v35, %v683_v32 }
 0x2f3   :  { %v747_v36 = vmax.f32 %v739_v56, 0.0 }
 0x2f5   :  { %v755_v37 = vpack.c.bf16 %v747_v36, %v747_v36 }
 0x2f7   :  { %764 = vst.msk [vmem:[%s1306_s4 + $0x14] sm:$0xf] %vm758_vm11, %v755_v37 }

// kernel: vae_forward.10
= control target key start
LH: loop header
LB: loop body
LE: loop exit
PB: predicated region body
PF: predicated region fallthrough
CT: control target
= control target key end

     0   :  { %s1534_s27 = smov 64   ;;  %vm886_vm0 = vcmask 523264   ;;  %vm1014_vm1 = vcmask 1042434   ;;  %vm1010_vm2 = vcmask 1040384   ;;  %vm1018_vm3 = vcmask 1041408   ;;  %s1982_s1 = inlined_call_operand.vmem [shape: bf16[1024,128], index: 1, kind: input, shape index: {}]   ;;  %s1983_s0 = inlined_call_operand.vmem [shape: bf16[2,1024], index: 0, kind: input, shape index: {}]   ;;  %s1984_s2 = inlined_call_operand.vmem [shape: f32[1,128], index: 2, kind: input, shape index: {}]   ;;  %s1985_s4 = inlined_call_operand.vmem [shape: bf16[64,1024], index: 4, kind: input, shape index: {}]   ;;  %s1986_s6 = inlined_call_operand.vmem [shape: f32[2,128], index: 6, kind: output, shape index: {0}]   ;;  %s1987_s3 = inlined_call_operand.vmem [shape: f32[2,64], index: 3, kind: input, shape index: {}]   ;;  %s1988_s5 = inlined_call_operand.vmem [shape: f32[1,1024], index: 5, kind: input, shape index: {}]   ;;  %s1989_s7 = inlined_call_operand.vmem [shape: bf16[2,1024], index: 7, kind: output, shape index: {1}]  }
   0x1   :  { %v1441_v0 = vld [vmem:[%s1982_s1 + $0x38] sm:$0xff]  ;;  %v1440_v4 = vld [vmem:[%s1982_s1 + $0x30] sm:$0xff]  ;;  %v1439_v8 = vld [vmem:[%s1982_s1 + $0x28] sm:$0xff]  ;;  %vm1020_vm4 = vcmask 1044484   ;;  %vm1024_vm5 = vcmask 1046534   ;;  %vm1028_vm6 = vcmask 1045508  }
   0x2   :  { %v1449_v1 = vld [vmem:[%s1982_s1 + $0x78] sm:$0xff]  ;;  %561 = vmatpush.bf16.msra.mxu0 %v1441_v0  ;;  %v1448_v5 = vld [vmem:[%s1982_s1 + $0x70] sm:$0xff]  ;;  %v1447_v9 = vld [vmem:[%s1982_s1 + $0x68] sm:$0xff]  ;;  %vm1030_vm7 = vcmask 1043456  }
   0x3   :  { %v1457_v2 = vld [vmem:[%s1982_s1 + $0xb8] sm:$0xff]  ;;  %574 = vmatpush.bf16.msra.mxu1 %v1449_v1  ;;  %v1456_v6 = vld [vmem:[%s1982_s1 + $0xb0] sm:$0xff]  ;;  %v1455_v10 = vld [vmem:[%s1982_s1 + $0xa8] sm:$0xff] }
   0x4   :  { %v1465_v3 = vld [vmem:[%s1982_s1 + $0xf8] sm:$0xff]  ;;  %587 = vmatpush.bf16.msra.mxu2 %v1457_v2  ;;  %v1464_v7 = vld [vmem:[%s1982_s1 + $0xf0] sm:$0xff]  ;;  %v1463_v11 = vld [vmem:[%s1982_s1 + $0xe8] sm:$0xff] }
   0x5   :  { %600 = vmatpush.bf16.msra.mxu3 %v1465_v3  ;;  %v1438_v12 = vld [vmem:[%s1982_s1 + $0x20] sm:$0xff]  ;;  %v1437_v17 = vld [vmem:[%s1982_s1 + $0x18] sm:$0xff]  ;;  %v1436_v21 = vld [vmem:[%s1982_s1 + $0x10] sm:$0xff] }
   0x6   :  { %562 = vmatpush.bf16.msra.mxu0 %v1440_v4  ;;  %v1446_v13 = vld [vmem:[%s1982_s1 + $0x60] sm:$0xff]  ;;  %v1445_v18 = vld [vmem:[%s1982_s1 + $0x58] sm:$0xff]  ;;  %v1444_v22 = vld [vmem:[%s1982_s1 + $0x50] sm:$0xff] }
   0x7   :  { %575 = vmatpush.bf16.msra.mxu1 %v1448_v5  ;;  %v1454_v14 = vld [vmem:[%s1982_s1 + $0xa0] sm:$0xff]  ;;  %v1453_v19 = vld [vmem:[%s1982_s1 + $0x98] sm:$0xff]  ;;  %v1452_v23 = vld [vmem:[%s1982_s1 + $0x90] sm:$0xff] }
   0x8   :  { %588 = vmatpush.bf16.msra.mxu2 %v1456_v6  ;;  %v1462_v15 = vld [vmem:[%s1982_s1 + $0xe0] sm:$0xff]  ;;  %v1461_v20 = vld [vmem:[%s1982_s1 + $0xd8] sm:$0xff]  ;;  %v1460_v24 = vld [vmem:[%s1982_s1 + $0xd0] sm:$0xff] }
   0x9   :  { %601 = vmatpush.bf16.msra.mxu3 %v1464_v7  ;;  %v26_v16 = vld [vmem:[%s1983_s0] sm:$0xff]  ;;  %v1435_v25 = vld [vmem:[%s1982_s1 + $0x8] sm:$0xff]  ;;  %v1473_v33 = vld [vmem:[%s1982_s1 + $0x138] sm:$0xff] }
   0xa   :  { %563 = vmatpush.bf16.msra.mxu0 %v1439_v8  ;;  %160 = vst [vmem:[#allocation1] ss:$9 sm:$0xff] %v26_v16  ;;  %v1443_v26 = vld [vmem:[%s1982_s1 + $0x48] sm:$0xff]  ;;  %v1434_v29 = vld [vmem:[%s1982_s1] sm:$0xff]  ;;  %v1481_v34 = vld [vmem:[%s1982_s1 + $0x178] sm:$0xff] }
   0xb   :  { %576 = vmatpush.bf16.msra.mxu1 %v1447_v9  ;;  %v1451_v27 = vld [vmem:[%s1982_s1 + $0x88] sm:$0xff]  ;;  %v1442_v30 = vld [vmem:[%s1982_s1 + $0x40] sm:$0xff]  ;;  %v1489_v35 = vld [vmem:[%s1982_s1 + $0x1b8] sm:$0xff] }
   0xc   :  { %589 = vmatpush.bf16.msra.mxu2 %v1455_v10  ;;  %v1459_v28 = vld [vmem:[%s1982_s1 + $0xc8] sm:$0xff]  ;;  %v1450_v31 = vld [vmem:[%s1982_s1 + $0x80] sm:$0xff]  ;;  %v1497_v36 = vld [vmem:[%s1982_s1 + $0x1f8] sm:$0xff] }
   0xd   :  { %602 = vmatpush.bf16.msra.mxu3 %v1463_v11  ;;  %v1458_v32 = vld [vmem:[%s1982_s1 + $0xc0] sm:$0xff]  ;;  %v1472_v37 = vld [vmem:[%s1982_s1 + $0x130] sm:$0xff]  ;;  %v1471_v45 = vld [vmem:[%s1982_s1 + $0x128] sm:$0xff] }
   0xe   :  { %564 = vmatpush.bf16.msra.mxu0 %v1438_v12  ;;  %v1480_v40 = vld [vmem:[%s1982_s1 + $0x170] sm:$0xff]  ;;  %v1479_v46 = vld [vmem:[%s1982_s1 + $0x168] sm:$0xff]  ;;  %v1470_v49 = vld [vmem:[%s1982_s1 + $0x120] sm:$0xff] }
   0xf   :  { %577 = vmatpush.bf16.msra.mxu1 %v1446_v13  ;;  %v1488_v43 = vld [vmem:[%s1982_s1 + $0x1b0] sm:$0xff]  ;;  %v1487_v47 = vld [vmem:[%s1982_s1 + $0x1a8] sm:$0xff]  ;;  %v1478_v50 = vld [vmem:[%s1982_s1 + $0x160] sm:$0xff] }
  0x10   :  { %590 = vmatpush.bf16.msra.mxu2 %v1454_v14  ;;  %v1496_v44 = vld [vmem:[%s1982_s1 + $0x1f0] sm:$0xff]  ;;  %v1495_v48 = vld [vmem:[%s1982_s1 + $0x1e8] sm:$0xff]  ;;  %v1486_v51 = vld [vmem:[%s1982_s1 + $0x1a0] sm:$0xff] }
  0x11   :  { %603 = vmatpush.bf16.msra.mxu3 %v1462_v15  ;;  %v163_v38 = vld [vmem:[#allocation1 + $0x12] sm:$0xff]  ;;  %v161_v39 = vld [vmem:[#allocation1] sm:$0xff]  ;;  %v162_v42 = vld [vmem:[#allocation1 + $0x9] sm:$0xff] }
  0x12   :  { %565 = vmatpush.bf16.msra.mxu0 %v1437_v17  ;;  %v164_v41 = vld [vmem:[#allocation1 + $0x1b] sm:$0xff]  ;;  %v1468_v57 = vld [vmem:[%s1982_s1 + $0x110] sm:$0xff]  ;;  %v1467_v61 = vld [vmem:[%s1982_s1 + $0x108] sm:$0xff] }
  0x13   :  { %578 = vmatpush.bf16.msra.mxu1 %v1445_v18  ;;  %v1494_v52 = vld [vmem:[%s1982_s1 + $0x1e0] sm:$0xff]  ;;  %v1469_v53 = vld [vmem:[%s1982_s1 + $0x118] sm:$0xff]  ;;  %v1476_v58 = vld [vmem:[%s1982_s1 + $0x150] sm:$0xff] }
  0x14   :  { %591 = vmatpush.bf16.msra.mxu2 %v1453_v19  ;;  %v1477_v54 = vld [vmem:[%s1982_s1 + $0x158] sm:$0xff]  ;;  %v1484_v59 = vld [vmem:[%s1982_s1 + $0x190] sm:$0xff]  ;;  %v1475_v62 = vld [vmem:[%s1982_s1 + $0x148] sm:$0xff] }
  0x15   :  { %604 = vmatpush.bf16.msra.mxu3 %v1461_v20  ;;  %v1485_v55 = vld [vmem:[%s1982_s1 + $0x198] sm:$0xff]  ;;  %v1492_v60 = vld [vmem:[%s1982_s1 + $0x1d0] sm:$0xff]  ;;  %v1483_v63 = vld [vmem:[%s1982_s1 + $0x188] sm:$0xff] }
  0x16   :  { %566 = vmatpush.bf16.msra.mxu0 %v1436_v21  ;;  %v1493_v56 = vld [vmem:[%s1982_s1 + $0x1d8] sm:$0xff]  ;;  %v1491_v0 = vld [vmem:[%s1982_s1 + $0x1c8] sm:$0xff]  ;;  %v1466_v1 = vld [vmem:[%s1982_s1 + $0x100] sm:$0xff] }
  0x17   :  { %579 = vmatpush.bf16.msra.mxu1 %v1444_v22  ;;  %v1474_v2 = vld [vmem:[%s1982_s1 + $0x140] sm:$0xff]  ;;  %v166_v6 = vld [vmem:[#allocation1 + $0x2d] sm:$0xff]  ;;  %v167_v7 = vld [vmem:[#allocation1 + $0x36] sm:$0xff] }
  0x18   :  { %592 = vmatpush.bf16.msra.mxu2 %v1452_v23  ;;  %v1482_v3 = vld [vmem:[%s1982_s1 + $0x180] sm:$0xff]  ;;  %v1404_v19 = vld [vmem:[%s1985_s4 + $0xc8] sm:$0xf]  ;;  %v1523_v21 = vld [vmem:[%s1985_s4 + $0xcc] sm:$0xf] }
  0x19   :  { %605 = vmatpush.bf16.msra.mxu3 %v1460_v24  ;;  %v1490_v4 = vld [vmem:[%s1982_s1 + $0x1c0] sm:$0xff]  ;;  %v1527_v20 = vld [vmem:[%s1985_s4 + $0xe4] sm:$0xf0]  ;;  %v1406_v24 = vld [vmem:[%s1985_s4 + $0xe8] sm:$0xf0] }
  0x1a   :  { %567 = vmatpush.bf16.msra.mxu0 %v1435_v25  ;;  %v165_v5 = vld [vmem:[#allocation1 + $0x24] sm:$0xff]  ;;  %v1531_v15 = vld [vmem:[%s1984_s2] ss:$0 sm:$0xff]  ;;  %v1405_v23 = vor.u32 %v1527_v20, %v1404_v19 }
  0x1b   :  { %580 = vmatpush.bf16.msra.mxu1 %v1443_v26  ;;  %v168_v8 = vld [vmem:[#allocation1 + $0x3f] sm:$0xff] }
  0x1c   :  { %593 = vmatpush.bf16.msra.mxu2 %v1451_v27  ;;  %v1396_v25 = vld [vmem:[%s1985_s4 + $0xc0] sm:$0xf]  ;;  %v1409_v27 = vor.u32 %v1523_v21, %v1406_v24  ;;  %v1302_v19 = vld [vmem:[%s1985_s4 + $0x20] sm:$0xf0]  ;;  %v1420_v21 = vld [vmem:[%s1985_s4 + $0xd8] sm:$0xf] }
  0x1d   :  { %606 = vmatpush.bf16.msra.mxu3 %v1459_v28  ;;  %v1526_v26 = vld [vmem:[%s1985_s4 + $0xdc] sm:$0xf0] }
  0x1e   :  { %568 = vmatpush.bf16.msra.mxu0 %v1434_v29  ;;  %v1397_v28 = vor.u32 %v1526_v26, %v1396_v25  ;;  %v1522_v29 = vld [vmem:[%s1985_s4 + $0xc4] sm:$0xf]  ;;  %v1422_v25 = vld [vmem:[%s1985_s4 + $0xf8] sm:$0xf0]  ;;  %v1412_v26 = vld [vmem:[%s1985_s4 + $0xd0] sm:$0xf] }
  0x1f   :  { %581 = vmatpush.bf16.msra.mxu1 %v1442_v30  ;;  %v1398_v30 = vld [vmem:[%s1985_s4 + $0xe0] sm:$0xf0] }
  0x20   :  { %594 = vmatpush.bf16.msra.mxu2 %v1450_v31  ;;  %v1372_v31 = vld [vmem:[%s1985_s4 + $0x88] sm:$0xf] }
  0x21   :  { %607 = vmatpush.bf16.msra.mxu3 %v1458_v32  ;;  %569 = vmatmul.bf16.vlgmr.msra.gmra.mxu0 %v161_v39  ;;  %v1401_v32 = vor.u32 %v1522_v29, %v1398_v30  ;;  %v1518_v39 = vld [vmem:[%s1985_s4 + $0x9c] sm:$0xf0]  ;;  %v1524_v30 = vld [vmem:[%s1985_s4 + $0xd4] sm:$0xf] }
  0x22   :  { %613 = vmatpush.bf16.msrb.mxu0 %v1473_v33  ;;  %582 = vmatmul.bf16.vlgmr.msra.gmra.mxu1 %v162_v42  ;;  %v1519_v33 = vld [vmem:[%s1985_s4 + $0xa4] sm:$0xf0] }
  0x23   :  { %626 = vmatpush.bf16.msrb.mxu1 %v1481_v34  ;;  %595 = vmatmul.bf16.vlgmr.msra.gmra.mxu2 %v163_v38  ;;  %v1515_v34 = vld [vmem:[%s1985_s4 + $0x8c] sm:$0xf]  ;;  %v1364_v38 = vld [vmem:[%s1985_s4 + $0x80] sm:$0xf] }
  0x24   :  { %639 = vmatpush.bf16.msrb.mxu2 %v1489_v35  ;;  %608 = vmatmul.bf16.vlgmr.msra.gmra.mxu3 %v164_v41  ;;  %v1374_v35 = vld [vmem:[%s1985_s4 + $0xa8] sm:$0xf0]  ;;  %v1365_v42 = vor.u32 %v1518_v39, %v1364_v38  ;;  %v1380_v39 = vld [vmem:[%s1985_s4 + $0x90] sm:$0xf] }
  0x25   :  { %652 = vmatpush.bf16.msrb.mxu3 %v1497_v36  ;;  %v1373_v36 = vor.u32 %v1519_v33, %v1372_v31  ;;  %v1414_v31 = vld [vmem:[%s1985_s4 + $0xf0] sm:$0xf0] }
  0x26   :  { %614 = vmatpush.bf16.msrb.mxu0 %v1472_v37  ;;  %v1377_v37 = vor.u32 %v1515_v34, %v1374_v35  ;;  %v1417_v33 = vor.u32 %v1524_v30, %v1414_v31  ;;  %v1521_v34 = vld [vmem:[%s1985_s4 + $0xb4] sm:$0xf0]  ;;  %v1517_v35 = vld [vmem:[%s1985_s4 + $0x9c] sm:$0xf] }
  0x27   :  { %627 = vmatpush.bf16.msrb.mxu1 %v1480_v40  ;;  %v1514_v40 = vld [vmem:[%s1985_s4 + $0x84] sm:$0xf] }
  0x28   :  { %640 = vmatpush.bf16.msrb.mxu2 %v1488_v43  ;;  %v1366_v43 = vld [vmem:[%s1985_s4 + $0xa0] sm:$0xf0] }
  0x29   :  { %653 = vmatpush.bf16.msrb.mxu3 %v1496_v44  ;;  %v1340_v44 = vld [vmem:[%s1985_s4 + $0x48] sm:$0xf] }
  0x2a   :  { %615 = vmatpush.bf16.msrb.mxu0 %v1471_v45  ;;  %v1511_v45 = vld [vmem:[%s1985_s4 + $0x64] sm:$0xf0] }
  0x2b   :  { %628 = vmatpush.bf16.msrb.mxu1 %v1479_v46  ;;  %v1369_v46 = vor.u32 %v1514_v40, %v1366_v43  ;;  %v1520_v40 = vld [vmem:[%s1985_s4 + $0xac] sm:$0xf0]  ;;  %v1382_v43 = vld [vmem:[%s1985_s4 + $0xb0] sm:$0xf0] }
  0x2c   :  { %641 = vmatpush.bf16.msrb.mxu2 %v1487_v47  ;;  %v1507_v47 = vld [vmem:[%s1985_s4 + $0x4c] sm:$0xf] }
  0x2d   :  { %654 = vmatpush.bf16.msrb.mxu3 %v1495_v48  ;;  %v1342_v48 = vld [vmem:[%s1985_s4 + $0x68] sm:$0xf0] }
  0x2e   :  { %616 = vmatpush.bf16.msrb.mxu0 %v1470_v49  ;;  %v1341_v49 = vor.u32 %v1511_v45, %v1340_v44  ;;  %v1356_v44 = vld [vmem:[%s1985_s4 + $0x58] sm:$0xf] }
  0x2f   :  { %629 = vmatpush.bf16.msrb.mxu1 %v1478_v50  ;;  %v1345_v50 = vor.u32 %v1507_v47, %v1342_v48  ;;  %v1513_v45 = vld [vmem:[%s1985_s4 + $0x74] sm:$0xf0]  ;;  %v1509_v47 = vld [vmem:[%s1985_s4 + $0x5c] sm:$0xf] }
  0x30   :  { %642 = vmatpush.bf16.msrb.mxu2 %v1486_v51  ;;  %v1358_v48 = vld [vmem:[%s1985_s4 + $0x78] sm:$0xf0] }
  0x31   :  { %655 = vmatpush.bf16.msrb.mxu3 %v1494_v52 }
  0x32   :  { %617 = vmatpush.bf16.msrb.mxu0 %v1469_v53 }
  0x33   :  { %630 = vmatpush.bf16.msrb.mxu1 %v1477_v54 }
  0x34   :  { %643 = vmatpush.bf16.msrb.mxu2 %v1485_v55 }
  0x35   :  { %656 = vmatpush.bf16.msrb.mxu3 %v1493_v56 }
  0x36   :  { %618 = vmatpush.bf16.msrb.mxu0 %v1468_v57 }
  0x37   :  { %631 = vmatpush.bf16.msrb.mxu1 %v1476_v58 }
  0x38   :  { %644 = vmatpush.bf16.msrb.mxu2 %v1484_v59 }
  0x39   :  { %657 = vmatpush.bf16.msrb.mxu3 %v1492_v60 }
  0x3a   :  { %619 = vmatpush.bf16.msrb.mxu0 %v1467_v61 }
  0x3b   :  { %632 = vmatpush.bf16.msrb.mxu1 %v1475_v62 }
  0x3c   :  { %645 = vmatpush.bf16.msrb.mxu2 %v1483_v63 }
  0x3d   :  { %658 = vmatpush.bf16.msrb.mxu3 %v1491_v0 }
  0x3e   :  { %620 = vmatpush.bf16.msrb.mxu0 %v1466_v1 }
  0x3f   :  { %633 = vmatpush.bf16.msrb.mxu1 %v1474_v2 }
  0x40   :  { %646 = vmatpush.bf16.msrb.mxu2 %v1482_v3  ;;  %v1332_v3 = vld [vmem:[%s1985_s4 + $0x40] sm:$0xf] }
  0x41   :  { %659 = vmatpush.bf16.msrb.mxu3 %v1490_v4  ;;  %621 = vmatmul.bf16.vlgmr.msrb.gmra.mxu0 %v165_v5  ;;  %v1510_v4 = vld [vmem:[%s1985_s4 + $0x5c] sm:$0xf0]  ;;  %v1506_v5 = vld [vmem:[%s1985_s4 + $0x44] sm:$0xf] }
  0x42   :  { %634 = vmatmul.bf16.vlgmr.msrb.gmra.mxu1 %v166_v6  ;;  %894 = vmatpush.bf16.msra.mxu0 %v1397_v28  ;;  %v1333_v6 = vor.u32 %v1510_v4, %v1332_v3 }
  0x43   :  { %647 = vmatmul.bf16.vlgmr.msrb.gmra.mxu2 %v167_v7  ;;  %907 = vmatpush.bf16.msra.mxu1 %v1401_v32  ;;  %v1334_v7 = vld [vmem:[%s1985_s4 + $0x60] sm:$0xf0]  ;;  %v1388_v32 = vld [vmem:[%s1985_s4 + $0x98] sm:$0xf] }
  0x44   :  { %660 = vmatmul.bf16.vlgmr.msrb.gmra.mxu3 %v168_v8  ;;  %920 = vmatpush.bf16.msra.mxu2 %v1405_v23  ;;  %v1337_v8 = vor.u32 %v1506_v5, %v1334_v7  ;;  %v1525_v23 = vld [vmem:[%s1985_s4 + $0xdc] sm:$0xf] }
  0x45   :  { %933 = vmatpush.bf16.msra.mxu3 %v1409_v27  ;;  %v1528_v27 = vld [vmem:[%s1985_s4 + $0xec] sm:$0xf0]  ;;  %v1425_v28 = vor.u32 %v1525_v23, %v1422_v25 }
  0x46   :  { %895 = vmatpush.bf16.msra.mxu0 %v1365_v42  ;;  %v1413_v29 = vor.u32 %v1528_v27, %v1412_v26  ;;  %v1381_v42 = vor.u32 %v1520_v40, %v1380_v39 }
  0x47   :  { %908 = vmatpush.bf16.msra.mxu1 %v1369_v46 }
  0x48   :  { %921 = vmatpush.bf16.msra.mxu2 %v1373_v36  ;;  %v1390_v36 = vld [vmem:[%s1985_s4 + $0xb8] sm:$0xf0] }
  0x49   :  { %934 = vmatpush.bf16.msra.mxu3 %v1377_v37  ;;  %v1389_v37 = vor.u32 %v1521_v34, %v1388_v32  ;;  %v1393_v38 = vor.u32 %v1517_v35, %v1390_v36 }
  0x4a   :  { %896 = vmatpush.bf16.msra.mxu0 %v1333_v6  ;;  %v665_v6 = vld [vmem:[%s1987_s3] sm:$0x3] }
  0x4b   :  { %909 = vmatpush.bf16.msra.mxu1 %v1337_v8 }
  0x4c   :  { %922 = vmatpush.bf16.msra.mxu2 %v1341_v49  ;;  %v1348_v49 = vld [vmem:[%s1985_s4 + $0x50] sm:$0xf] }
  0x4d   :  { %935 = vmatpush.bf16.msra.mxu3 %v1345_v50  ;;  %v1357_v50 = vor.u32 %v1513_v45, %v1356_v44 }
  0x9e   :  { %v570_v9 = vpop.f32.mrf.mxu0 }
  0x9f   :  { %v583_v10 = vpop.f32.mrf.mxu1  ;;  %v571_v18 = vadd.f32 %v1531_v15, %v570_v9  ;;  %v1308_v9 = vld [vmem:[%s1985_s4 + $0x8] sm:$0xf]  ;;  %v1502_v15 = vld [vmem:[%s1985_s4 + $0x1c] sm:$0xf0] }
  0xa1   :  { %v584_v22 = vadd.f32 %v583_v10, %v571_v18  ;;  %v1503_v10 = vld [vmem:[%s1985_s4 + $0x24] sm:$0xf0]  ;;  %v1498_v18 = vld [vmem:[%s1985_s4 + $0x4] sm:$0xf] }
  0xa2   :  { %v1305_v20 = vor.u32 %v1498_v18, %v1302_v19 }
  0xa4   :  { %910 = vmatpush.bf16.msra.mxu1 %v1305_v20 }
  0xa6   :  { %v596_v11 = vpop.f32.mrf.mxu2  ;;  %v572_v13 = vpop.f32.mrf.mxu0 }
  0xa7   :  { %v609_v12 = vpop.f32.mrf.mxu3  ;;  %v585_v14 = vpop.f32.mrf.mxu1  ;;  %v597_v41 = vadd.f32 %v596_v11, %v584_v22  ;;  %v1499_v11 = vld [vmem:[%s1985_s4 + $0xc] sm:$0xf]  ;;  %v1529_v22 = vld [vmem:[%s1985_s4 + $0xf4] sm:$0xf0] }
  0xa8   :  { %v1310_v13 = vld [vmem:[%s1985_s4 + $0x28] sm:$0xf0]  ;;  %v1300_v14 = vld [vmem:[%s1985_s4] sm:$0xf]  ;;  %v1421_v24 = vor.u32 %v1529_v22, %v1420_v21  ;;  %959 = vmatpush.bf16.msrb.mxu1 %v1417_v33 }
  0xa9   :  { %v610_v51 = vadd.f32 %v609_v12, %v597_v41  ;;  %v1309_v12 = vor.u32 %v1503_v10, %v1308_v9  ;;  %v1516_v41 = vld [vmem:[%s1985_s4 + $0x94] sm:$0xf] }
  0xaa   :  { %v1385_v46 = vor.u32 %v1516_v41, %v1382_v43 }
  0xab   :  { %923 = vmatpush.bf16.msra.mxu2 %v1309_v12 }
  0xac   :  { %960 = vmatpush.bf16.msrb.mxu1 %v1385_v46 }
  0xae   :  { %v598_v16 = vpop.f32.mrf.mxu2 }
  0xaf   :  { %v611_v17 = vpop.f32.mrf.mxu3  ;;  %v1313_v16 = vor.u32 %v1499_v11, %v1310_v13  ;;  %972 = vmatpush.bf16.msrb.mxu2 %v1421_v24 }
  0xb0   :  { %v1301_v17 = vor.u32 %v1502_v15, %v1300_v14 }
  0xb1   :  { %936 = vmatpush.bf16.msra.mxu3 %v1313_v16 }
  0xb2   :  { %897 = vmatpush.bf16.msra.mxu0 %v1301_v17 }
  0xb3   :  { %973 = vmatpush.bf16.msrb.mxu2 %v1389_v37 }
  0xb5   :  { %985 = vmatpush.bf16.msrb.mxu3 %v1425_v28 }
  0xb6   :  { %946 = vmatpush.bf16.msrb.mxu0 %v1413_v29 }
  0xb7   :  { %974 = vmatpush.bf16.msrb.mxu2 %v1357_v50 }
  0xb9   :  { %986 = vmatpush.bf16.msrb.mxu3 %v1393_v38 }
  0xba   :  { %947 = vmatpush.bf16.msrb.mxu0 %v1381_v42 }
  0xbe   :  { %v622_v52 = vpop.f32.mrf.mxu0 }
  0xbf   :  { %v635_v53 = vpop.f32.mrf.mxu1  ;;  %v623_v54 = vadd.f32 %v622_v52, %v610_v51  ;;  %v1512_v51 = vld [vmem:[%s1985_s4 + $0x6c] sm:$0xf0]  ;;  %v1508_v52 = vld [vmem:[%s1985_s4 + $0x54] sm:$0xf] }
  0xc1   :  { %v636_v55 = vadd.f32 %v635_v53, %v623_v54  ;;  %v1350_v53 = vld [vmem:[%s1985_s4 + $0x70] sm:$0xf0]  ;;  %v1361_v54 = vor.u32 %v1509_v47, %v1358_v48 }
  0xc3   :  { %987 = vmatpush.bf16.msrb.mxu3 %v1361_v54 }
  0xc6   :  { %v648_v56 = vpop.f32.mrf.mxu2  ;;  %v624_v59 = vpop.f32.mrf.mxu0 }
  0xc7   :  { %v661_v57 = vpop.f32.mrf.mxu3  ;;  %v649_v58 = vadd.f32 %v648_v56, %v636_v55  ;;  %v637_v60 = vpop.f32.mrf.mxu1  ;;  %v1349_v55 = vor.u32 %v1512_v51, %v1348_v49  ;;  %v1324_v56 = vld [vmem:[%s1985_s4 + $0x18] sm:$0xf]  ;;  %v1353_v59 = vor.u32 %v1508_v52, %v1350_v53 }
  0xc8   :  { %v1326_v60 = vld [vmem:[%s1985_s4 + $0x38] sm:$0xf0] }
  0xc9   :  { %v1833_v61 = vadd.f32 %v661_v57, %v649_v58  ;;  %v1505_v57 = vld [vmem:[%s1985_s4 + $0x34] sm:$0xf0]  ;;  %v1501_v58 = vld [vmem:[%s1985_s4 + $0x1c] sm:$0xf]  ;;  %948 = vmatpush.bf16.msrb.mxu0 %v1349_v55  ;;  %961 = vmatpush.bf16.msrb.mxu1 %v1353_v59 }
  0xca   :  { %v1329_v3 = vor.u32 %v1501_v58, %v1326_v60 }
  0xcb   :  { %v666_v62 = vmul.f32 0.5, %v1833_v61  ;;  %994 = vst [vmem:[%s1986_s6] sm:$0x3] %v1833_v61 }
  0xcc   :  { %988 = vmatpush.bf16.msrb.mxu3 %v1329_v3 }
  0xcd   :  { %v667_v63 = vmul.f32 1.442695, %v666_v62  ;;  %v1316_v62 = vld [vmem:[%s1985_s4 + $0x10] sm:$0xf] }
  0xce   :  { %v650_v0 = vpop.f32.mrf.mxu2 }
  0xcf   :  { %v663_v1 = vpop.f32.mrf.mxu3  ;;  %1532 = vpow2.f32 %v667_v63  ;;  %v1504_v63 = vld [vmem:[%s1985_s4 + $0x2c] sm:$0xf0]  ;;  %v1500_v0 = vld [vmem:[%s1985_s4 + $0x14] sm:$0xf] }
  0xd0   :  { %v1318_v1 = vld [vmem:[%s1985_s4 + $0x30] sm:$0xf0]  ;;  %v1317_v4 = vor.u32 %v1504_v63, %v1316_v62 }
  0xd1   :  { %v1321_v5 = vor.u32 %v1500_v0, %v1318_v1 }
  0xd2   :  { %949 = vmatpush.bf16.msrb.mxu0 %v1317_v4 }
  0xd3   :  { %962 = vmatpush.bf16.msrb.mxu1 %v1321_v5 }
  0xd5   :  { %v1533_v2 = vpop.eup %1532 }
  0xd6   :  { %670 = vrot.lane.b32.xlu0 %v1533_v2, %s1534_s27  ;;  %v1325_v2 = vor.u32 %v1505_v57, %v1324_v56 }
  0xd8   :  { %975 = vmatpush.bf16.msrb.mxu2 %v1325_v2 }
 0x148   :  { %v671_v7 = vpop.permute.xlu0 %670 }
 0x149   :  { %v673_v8 = vmul.f32 %v671_v7, %v665_v6 }
 0x14b   :  { %v674_v9 = vadd.f32 %v673_v8, %v1833_v61  ;;  %v708_v61 = vld [vmem:[%s1988_s5] sm:$0xff] }
 0x14c   :  { %v712_v17 = vperm.slane %v708_v61, 2  ;;  %v713_v18 = vperm.slane %v708_v61, 3  ;;  %v710_v19 = vperm.slane %v708_v61, 0  ;;  %v711_v20 = vperm.slane %v708_v61, 1 }
 0x14d   :  { %v675_v10 = vpack.c.bf16 %v674_v9, %v674_v9  ;;  %v714_v21 = vperm.slane %v708_v61, 4  ;;  %v715_v22 = vperm.slane %v708_v61, 5  ;;  %v716_v34 = vperm.slane %v708_v61, 6 }
 0x14e   :  { %v717_v35 = vperm.slane %v708_v61, 7 }
 0x14f   :  { %1426 = vmatmul.msk.bf16.vlgmr.msra.gmra.mxu0 %vm886_vm0, %v675_v10  ;;  %1427 = vmatmul.msk.bf16.vlgmr.msra.gmra.mxu1 %vm886_vm0, %v675_v10 }
 0x150   :  { %1428 = vmatmul.msk.bf16.vlgmr.msra.gmra.mxu2 %vm886_vm0, %v675_v10  ;;  %1429 = vmatmul.msk.bf16.vlgmr.msra.gmra.mxu3 %vm886_vm0, %v675_v10 }
 0x15f   :  { %1430 = vmatmul.msk.bf16.vlgmr.msrb.gmra.mxu0 %vm886_vm0, %v675_v10  ;;  %1431 = vmatmul.msk.bf16.vlgmr.msrb.gmra.mxu1 %vm886_vm0, %v675_v10 }
 0x160   :  { %1432 = vmatmul.msk.bf16.vlgmr.msrb.gmra.mxu2 %vm886_vm0, %v675_v10  ;;  %1433 = vmatmul.msk.bf16.vlgmr.msrb.gmra.mxu3 %vm886_vm0, %v675_v10 }
 0x1cc   :  { %v899_v11 = vpop.f32.mrf.mxu0  ;;  %v912_v12 = vpop.f32.mrf.mxu1 }
 0x1cd   :  { %v900_v29 = vadd.f32 %v899_v11, %v710_v19  ;;  %v913_v30 = vadd.f32 %v912_v12, %v711_v20 }
 0x1cf   :  { %v995_v36 = vpack.c.bf16 %v913_v30, %v900_v29 }
 0x1d1   :  { %v1003_v46 = vrot.slane %v995_v36, 3 }
 0x1d3   :  { %v925_v13 = vpop.f32.mrf.mxu2  ;;  %v938_v14 = vpop.f32.mrf.mxu3  ;;  %v1013_v53 = vsel %vm1010_vm2, %v995_v36, %v1003_v46 }
 0x1d4   :  { %v901_v15 = vpop.f32.mrf.mxu0  ;;  %v914_v16 = vpop.f32.mrf.mxu1  ;;  %v926_v25 = vadd.f32 %v925_v13, %v712_v17  ;;  %v939_v26 = vadd.f32 %v938_v14, %v713_v18 }
 0x1d6   :  { %v996_v33 = vpack.c.bf16 %v939_v26, %v926_v25 }
 0x1d8   :  { %v1004_v40 = vrot.slane %v996_v33, 6  ;;  %v1005_v41 = vrot.slane %v996_v33, 1 }
 0x1da   :  { %v1017_v50 = vsel %vm1014_vm1, %v1004_v40, %v1005_v41 }
 0x1db   :  { %v927_v23 = vpop.f32.mrf.mxu2  ;;  %v940_v24 = vpop.f32.mrf.mxu3  ;;  %v1019_v56 = vsel %vm1018_vm3, %v1013_v53, %v1017_v50 }
 0x1dc   :  { %v951_v27 = vpop.f32.mrf.mxu0  ;;  %v964_v28 = vpop.f32.mrf.mxu1 }
 0x1dd   :  { %v952_v31 = vadd.f32 %v951_v27, %v714_v21  ;;  %v965_v32 = vadd.f32 %v964_v28, %v715_v22 }
 0x1df   :  { %v997_v37 = vpack.c.bf16 %v965_v32, %v952_v31 }
 0x1e1   :  { %v1006_v47 = vrot.slane %v997_v37, 4  ;;  %v1007_v48 = vrot.slane %v997_v37, 7 }
 0x1e3   :  { %v977_v38 = vpop.f32.mrf.mxu2  ;;  %v990_v39 = vpop.f32.mrf.mxu3  ;;  %v1023_v54 = vsel %vm1020_vm4, %v1006_v47, %v1007_v48 }
 0x1e4   :  { %v978_v42 = vadd.f32 %v977_v38, %v716_v34  ;;  %v991_v43 = vadd.f32 %v990_v39, %v717_v35  ;;  %v953_v44 = vpop.f32.mrf.mxu0  ;;  %v966_v45 = vpop.f32.mrf.mxu1 }
 0x1e6   :  { %v998_v49 = vpack.c.bf16 %v991_v43, %v978_v42 }
 0x1e8   :  { %v1008_v51 = vrot.slane %v998_v49, 2  ;;  %v1009_v52 = vrot.slane %v998_v49, 5 }
 0x1ea   :  { %v1027_v55 = vsel %vm1024_vm5, %v1008_v51, %v1009_v52 }
 0x1eb   :  { %v1029_v57 = vsel %vm1028_vm6, %v1023_v54, %v1027_v55  ;;  %v979_v58 = vpop.f32.mrf.mxu2  ;;  %v992_v59 = vpop.f32.mrf.mxu3 }
 0x1ec   :  { %v1031_v60 = vsel %vm1030_vm7, %v1019_v56, %v1029_v57 }
 0x1ed   :  { %1033 = vst [vmem:[%s1989_s7] sm:$0xff] %v1031_v60 }

// kernel: vae_forward.11
= control target key start
LH: loop header
LB: loop body
LE: loop exit
PB: predicated region body
PF: predicated region fallthrough
CT: control target
= control target key end

     0   :  { %vm376_vm0 = vcmask 261120   ;;  %vm21_vm1 = vcmask 7168   ;;  %vm812_vm15 = vcmask 257024   ;;  %s1462_s0 = inlined_call_operand.vmem [shape: bf16[256,32], index: 0, kind: input, shape index: {}]   ;;  %s1463_s1 = inlined_call_operand.vmem [shape: bf16[128,256], index: 1, kind: input, shape index: {}]   ;;  %s1464_s3 = inlined_call_operand.vmem [shape: f32[32,1], index: 3, kind: input, shape index: {}]   ;;  %s1465_s2 = inlined_call_operand.vmem [shape: f32[32,1], index: 2, kind: input, shape index: {}]   ;;  %s1466_s4 = inlined_call_operand.vmem [shape: bf16[128,32], index: 4, kind: output, shape index: {}]  }
   0x1   :  { %v985_v0 = vld [vmem:[%s1462_s0 + $0x38] sm:$0xff]  ;;  %v984_v2 = vld [vmem:[%s1462_s0 + $0x30] sm:$0xff]  ;;  %v983_v4 = vld [vmem:[%s1462_s0 + $0x28] sm:$0xff] }
   0x2   :  { %v993_v1 = vld [vmem:[%s1462_s0 + $0x78] sm:$0xff]  ;;  %262 = vmatpush.bf16.msra.mxu0 %v985_v0  ;;  %994 = vmatpush.bf16.msra.mxu2 %v985_v0  ;;  %v992_v3 = vld [vmem:[%s1462_s0 + $0x70] sm:$0xff]  ;;  %v991_v5 = vld [vmem:[%s1462_s0 + $0x68] sm:$0xff] }
   0x3   :  { %311 = vmatpush.bf16.msra.mxu1 %v993_v1  ;;  %1002 = vmatpush.bf16.msra.mxu3 %v993_v1  ;;  %v982_v6 = vld [vmem:[%s1462_s0 + $0x20] sm:$0xff]  ;;  %v981_v8 = vld [vmem:[%s1462_s0 + $0x18] sm:$0xff]  ;;  %v980_v10 = vld [vmem:[%s1462_s0 + $0x10] sm:$0xff] }
   0x4   :  { %v990_v7 = vld [vmem:[%s1462_s0 + $0x60] sm:$0xff]  ;;  %v989_v9 = vld [vmem:[%s1462_s0 + $0x58] sm:$0xff]  ;;  %v988_v11 = vld [vmem:[%s1462_s0 + $0x50] sm:$0xff] }
   0x5   :  { %v979_v12 = vld [vmem:[%s1462_s0 + $0x8] sm:$0xff]  ;;  %v978_v14 = vld [vmem:[%s1462_s0] sm:$0xff]  ;;  %v844_v28 = vld [vmem:[%s1463_s1 + $0x10] sm:$0xf] }
   0x6   :  { %263 = vmatpush.bf16.msra.mxu0 %v984_v2  ;;  %995 = vmatpush.bf16.msra.mxu2 %v984_v2  ;;  %v987_v13 = vld [vmem:[%s1462_s0 + $0x48] sm:$0xff]  ;;  %v986_v15 = vld [vmem:[%s1462_s0 + $0x40] sm:$0xff]  ;;  %v965_v29 = vld [vmem:[%s1463_s1 + $0x14] sm:$0xf0] }
   0x7   :  { %312 = vmatpush.bf16.msra.mxu1 %v992_v3  ;;  %1003 = vmatpush.bf16.msra.mxu3 %v992_v3  ;;  %v836_v16 = vld [vmem:[%s1463_s1] sm:$0xf]  ;;  %v963_v17 = vld [vmem:[%s1463_s1 + $0x4] sm:$0xf0]  ;;  %v962_v20 = vld [vmem:[%s1463_s1 + $0x4] sm:$0xf]  ;;  %v845_v36 = vor.u32 %v965_v29, %v844_v28 }
   0x8   :  { %v868_v18 = vld [vmem:[%s1463_s1 + $0x40] sm:$0xf]  ;;  %v971_v19 = vld [vmem:[%s1463_s1 + $0x44] sm:$0xf0]  ;;  %v838_v21 = vld [vmem:[%s1463_s1 + $0x8] sm:$0xf0]  ;;  %v837_v24 = vor.u32 %v963_v17, %v836_v16 }
   0x9   :  { %v970_v22 = vld [vmem:[%s1463_s1 + $0x44] sm:$0xf]  ;;  %v870_v23 = vld [vmem:[%s1463_s1 + $0x48] sm:$0xf0]  ;;  %v869_v25 = vor.u32 %v971_v19, %v868_v18  ;;  %v841_v26 = vor.u32 %v962_v20, %v838_v21  ;;  %v876_v30 = vld [vmem:[%s1463_s1 + $0x50] sm:$0xf] }
   0xa   :  { %264 = vmatpush.bf16.msra.mxu0 %v983_v4  ;;  %996 = vmatpush.bf16.msra.mxu2 %v983_v4  ;;  %v873_v27 = vor.u32 %v970_v22, %v870_v23  ;;  %v973_v31 = vld [vmem:[%s1463_s1 + $0x54] sm:$0xf0]  ;;  %v964_v32 = vld [vmem:[%s1463_s1 + $0x14] sm:$0xf]  ;;  %v846_v33 = vld [vmem:[%s1463_s1 + $0x18] sm:$0xf0] }
   0xb   :  { %313 = vmatpush.bf16.msra.mxu1 %v991_v5  ;;  %1004 = vmatpush.bf16.msra.mxu3 %v991_v5  ;;  %v972_v34 = vld [vmem:[%s1463_s1 + $0x54] sm:$0xf]  ;;  %v878_v35 = vld [vmem:[%s1463_s1 + $0x58] sm:$0xf0]  ;;  %v877_v37 = vor.u32 %v973_v31, %v876_v30  ;;  %v849_v38 = vor.u32 %v964_v32, %v846_v33  ;;  %v852_v40 = vld [vmem:[%s1463_s1 + $0x20] sm:$0xf] }
   0xc   :  { %v881_v39 = vor.u32 %v972_v34, %v878_v35  ;;  %v967_v41 = vld [vmem:[%s1463_s1 + $0x24] sm:$0xf0]  ;;  %v884_v42 = vld [vmem:[%s1463_s1 + $0x60] sm:$0xf]  ;;  %v966_v44 = vld [vmem:[%s1463_s1 + $0x24] sm:$0xf] }
   0xd   :  { %v975_v43 = vld [vmem:[%s1463_s1 + $0x64] sm:$0xf0]  ;;  %v854_v45 = vld [vmem:[%s1463_s1 + $0x28] sm:$0xf0]  ;;  %v974_v46 = vld [vmem:[%s1463_s1 + $0x64] sm:$0xf]  ;;  %v853_v48 = vor.u32 %v967_v41, %v852_v40 }
   0xe   :  { %265 = vmatpush.bf16.msra.mxu0 %v982_v6  ;;  %997 = vmatpush.bf16.msra.mxu2 %v982_v6  ;;  %v886_v47 = vld [vmem:[%s1463_s1 + $0x68] sm:$0xf0]  ;;  %v885_v49 = vor.u32 %v975_v43, %v884_v42  ;;  %v857_v50 = vor.u32 %v966_v44, %v854_v45  ;;  %v860_v52 = vld [vmem:[%s1463_s1 + $0x30] sm:$0xf]  ;;  %v969_v53 = vld [vmem:[%s1463_s1 + $0x34] sm:$0xf0] }
   0xf   :  { %314 = vmatpush.bf16.msra.mxu1 %v990_v7  ;;  %1005 = vmatpush.bf16.msra.mxu3 %v990_v7  ;;  %v889_v51 = vor.u32 %v974_v46, %v886_v47  ;;  %v892_v54 = vld [vmem:[%s1463_s1 + $0x70] sm:$0xf]  ;;  %v977_v55 = vld [vmem:[%s1463_s1 + $0x74] sm:$0xf0]  ;;  %v968_v56 = vld [vmem:[%s1463_s1 + $0x34] sm:$0xf]  ;;  %v861_v60 = vor.u32 %v969_v53, %v860_v52 }
  0x10   :  { %v862_v57 = vld [vmem:[%s1463_s1 + $0x38] sm:$0xf0]  ;;  %v976_v58 = vld [vmem:[%s1463_s1 + $0x74] sm:$0xf]  ;;  %v893_v61 = vor.u32 %v977_v55, %v892_v54  ;;  %v1026_v35 = vmov 0.0  }
  0x11   :  { %v894_v59 = vld [vmem:[%s1463_s1 + $0x78] sm:$0xf0]  ;;  %v865_v62 = vor.u32 %v968_v56, %v862_v57  ;;  %22 = vst.msk [vmem:[#allocation3] sm:$0xff] %vm21_vm1, %v1026_v35 }
  0x12   :  { %266 = vmatpush.bf16.msra.mxu0 %v981_v8  ;;  %998 = vmatpush.bf16.msra.mxu2 %v981_v8  ;;  %v897_v63 = vor.u32 %v976_v58, %v894_v59  ;;  %23 = vst.msk [vmem:[#allocation3 + $0x8] sm:$0xff] %vm21_vm1, %v1026_v35 }
  0x13   :  { %315 = vmatpush.bf16.msra.mxu1 %v989_v9  ;;  %1006 = vmatpush.bf16.msra.mxu3 %v989_v9  ;;  %24 = vst.msk [vmem:[#allocation3 + $0x10] sm:$0xff] %vm21_vm1, %v1026_v35 }
  0x14   :  { %25 = vst.msk [vmem:[#allocation3 + $0x18] sm:$0xff] %vm21_vm1, %v1026_v35 }
  0x15   :  { %26 = vst.msk [vmem:[#allocation3 + $0x20] sm:$0xff] %vm21_vm1, %v1026_v35 }
  0x16   :  { %267 = vmatpush.bf16.msra.mxu0 %v980_v10  ;;  %999 = vmatpush.bf16.msra.mxu2 %v980_v10  ;;  %27 = vst.msk [vmem:[#allocation3 + $0x28] sm:$0xff] %vm21_vm1, %v1026_v35 }
  0x17   :  { %316 = vmatpush.bf16.msra.mxu1 %v988_v11  ;;  %1007 = vmatpush.bf16.msra.mxu3 %v988_v11  ;;  %28 = vst.msk [vmem:[#allocation3 + $0x30] sm:$0xff] %vm21_vm1, %v1026_v35 }
  0x18   :  { %29 = vst.msk [vmem:[#allocation3 + $0x38] sm:$0xff] %vm21_vm1, %v1026_v35 }
  0x19   :  { %30 = vst.msk [vmem:[#allocation3 + $0x40] sm:$0xff] %vm21_vm1, %v1026_v35 }
  0x1a   :  { %268 = vmatpush.bf16.msra.mxu0 %v979_v12  ;;  %1000 = vmatpush.bf16.msra.mxu2 %v979_v12  ;;  %31 = vst.msk [vmem:[#allocation3 + $0x48] sm:$0xff] %vm21_vm1, %v1026_v35 }
  0x1b   :  { %317 = vmatpush.bf16.msra.mxu1 %v987_v13  ;;  %1008 = vmatpush.bf16.msra.mxu3 %v987_v13  ;;  %32 = vst.msk [vmem:[#allocation3 + $0x50] sm:$0xff] %vm21_vm1, %v1026_v35 }
  0x1c   :  { %33 = vst.msk [vmem:[#allocation3 + $0x58] sm:$0xff] %vm21_vm1, %v1026_v35 }
  0x1d   :  { %34 = vst.msk [vmem:[#allocation3 + $0x60] sm:$0xff] %vm21_vm1, %v1026_v35 }
  0x1e   :  { %269 = vmatpush.bf16.msra.mxu0 %v978_v14  ;;  %1001 = vmatpush.bf16.msra.mxu2 %v978_v14  ;;  %35 = vst.msk [vmem:[#allocation3 + $0x68] sm:$0xff] %vm21_vm1, %v1026_v35 }
  0x1f   :  { %318 = vmatpush.bf16.msra.mxu1 %v986_v15  ;;  %1009 = vmatpush.bf16.msra.mxu3 %v986_v15  ;;  %36 = vst.msk [vmem:[#allocation3 + $0x70] sm:$0xff] %vm21_vm1, %v1026_v35 }
  0x20   :  { %37 = vst.msk [vmem:[#allocation3 + $0x78] sm:$0xff] %vm21_vm1, %v1026_v35 }
  0x21   :  { %270 = vmatmul.bf16.vlgmr.msra.gmra.mxu0 %v837_v24  ;;  %290 = vmatmul.bf16.vlgmr.msra.gmra.mxu2 %v869_v25 }
  0x22   :  { %319 = vmatmul.bf16.vlgmr.msra.gmra.mxu1 %v841_v26  ;;  %339 = vmatmul.bf16.vlgmr.msra.gmra.mxu3 %v873_v27 }
  0x31   :  { %275 = vmatmul.bf16.gmra.mxu0 %v845_v36  ;;  %295 = vmatmul.bf16.gmra.mxu2 %v877_v37 }
  0x32   :  { %324 = vmatmul.bf16.gmra.mxu1 %v849_v38  ;;  %344 = vmatmul.bf16.gmra.mxu3 %v881_v39 }
  0x41   :  { %280 = vmatmul.bf16.gmra.mxu0 %v853_v48  ;;  %300 = vmatmul.bf16.gmra.mxu2 %v885_v49 }
  0x42   :  { %329 = vmatmul.bf16.gmra.mxu1 %v857_v50  ;;  %349 = vmatmul.bf16.gmra.mxu3 %v889_v51 }
  0x51   :  { %285 = vmatmul.bf16.gmra.mxu0 %v861_v60  ;;  %305 = vmatmul.bf16.gmra.mxu2 %v893_v61 }
  0x52   :  { %334 = vmatmul.bf16.gmra.mxu1 %v865_v62  ;;  %354 = vmatmul.bf16.gmra.mxu3 %v897_v63 }
  0x9e   :  { %v271_v0 = vpop.f32.mrf.mxu0 }
  0x9f   :  { %v320_v1 = vpop.f32.mrf.mxu1 }
  0xa0   :  { %v321_v2 = vadd.f32 %v320_v1, %v271_v0  ;;  %v360_v1 = vld [vmem:[#allocation3] sm:$0xff] }
  0xa2   :  { %462 = vst.msk [vmem:[#allocation2] sm:$0xff] %vm376_vm0, %v321_v2  ;;  %v377_v3 = vsel %vm376_vm0, %v321_v2, 0.0 }
  0xa3   :  { %378 = vadd.xlane.f32.xlu0 %v377_v3 }
  0xa4   :  { %v291_v4 = vpop.f32.mrf.mxu2 }
  0xa5   :  { %v340_v5 = vpop.f32.mrf.mxu3 }
  0xa6   :  { %v341_v6 = vadd.f32 %v340_v5, %v291_v4  ;;  %v273_v7 = vpop.f32.mrf.mxu0  ;;  %v368_v4 = vld [vmem:[#allocation3 + $0x40] sm:$0xff] }
  0xa7   :  { %v322_v8 = vpop.f32.mrf.mxu1 }
  0xa8   :  { %470 = vst.msk [vmem:[#allocation2 + $0x40] sm:$0xff] %vm376_vm0, %v341_v6  ;;  %v323_v9 = vadd.f32 %v322_v8, %v273_v7  ;;  %v401_v10 = vsel %vm376_vm0, %v341_v6, 0.0  ;;  %v361_v6 = vld [vmem:[#allocation3 + $0x8] sm:$0xff] }
  0xa9   :  { %402 = vadd.xlane.f32.xlu2 %v401_v10  ;;  %v369_v10 = vld [vmem:[#allocation3 + $0x48] sm:$0xff] }
  0xaa   :  { %463 = vst.msk [vmem:[#allocation2 + $0x8] sm:$0xff] %vm376_vm0, %v323_v9  ;;  %v380_v11 = vsel %vm376_vm0, %v323_v9, 0.0 }
  0xab   :  { %381 = vadd.xlane.f32.xlu0 %v380_v11  ;;  %v362_v11 = vld [vmem:[#allocation3 + $0x10] sm:$0xff] }
  0xac   :  { %v293_v12 = vpop.f32.mrf.mxu2 }
  0xad   :  { %v342_v13 = vpop.f32.mrf.mxu3 }
  0xae   :  { %v343_v14 = vadd.f32 %v342_v13, %v293_v12  ;;  %v276_v15 = vpop.f32.mrf.mxu0 }
  0xaf   :  { %v325_v16 = vpop.f32.mrf.mxu1 }
  0xb0   :  { %471 = vst.msk [vmem:[#allocation2 + $0x48] sm:$0xff] %vm376_vm0, %v343_v14  ;;  %v326_v17 = vadd.f32 %v325_v16, %v276_v15  ;;  %v404_v18 = vsel %vm376_vm0, %v343_v14, 0.0  ;;  %v370_v16 = vld [vmem:[#allocation3 + $0x50] sm:$0xff] }
  0xb2   :  { %464 = vst.msk [vmem:[#allocation2 + $0x10] sm:$0xff] %vm376_vm0, %v326_v17  ;;  %v383_v19 = vsel %vm376_vm0, %v326_v17, 0.0 }
  0xb3   :  { %405 = vadd.xlane.f32.xlu0 %v404_v18  ;;  %384 = vadd.xlane.f32.xlu1 %v383_v19  ;;  %v1027_v19 = vmov 0  }
  0xb4   :  { %v296_v20 = vpop.f32.mrf.mxu2  ;;  %1013 = vset.pattern.permute.xlu1 %v1027_v19  ;;  %1014 = vset.pattern.permute.xlu2 %v1027_v19 }
  0xb5   :  { %v345_v21 = vpop.f32.mrf.mxu3  ;;  %1015 = vset.pattern.permute.xlu0 %v1027_v19 }
  0xb6   :  { %v346_v22 = vadd.f32 %v345_v21, %v296_v20  ;;  %v278_v23 = vpop.f32.mrf.mxu0  ;;  %v1028_v20 = vmov 128.0   ;;  %v371_v21 = vld [vmem:[#allocation3 + $0x58] sm:$0xff] }
  0xb7   :  { %v327_v24 = vpop.f32.mrf.mxu1  ;;  %1016 = vrcp.f32 %v1028_v20 }
  0xb8   :  { %472 = vst.msk [vmem:[#allocation2 + $0x50] sm:$0xff] %vm376_vm0, %v346_v22  ;;  %v328_v25 = vadd.f32 %v327_v24, %v278_v23  ;;  %v407_v26 = vsel %vm376_vm0, %v346_v22, 0.0  ;;  %v363_v23 = vld [vmem:[#allocation3 + $0x18] sm:$0xff] }
  0xba   :  { %465 = vst.msk [vmem:[#allocation2 + $0x18] sm:$0xff] %vm376_vm0, %v328_v25  ;;  %v386_v34 = vsel %vm376_vm0, %v328_v25, 0.0 }
  0xbb   :  { %408 = vadd.xlane.f32.xlu1 %v407_v26 }
  0xbc   :  { %v298_v27 = vpop.f32.mrf.mxu2 }
  0xbd   :  { %v347_v28 = vpop.f32.mrf.mxu3  ;;  %v1017_v26 = vpop.eup %1016 }
  0xbe   :  { %v348_v29 = vadd.f32 %v347_v28, %v298_v27  ;;  %v281_v30 = vpop.f32.mrf.mxu0  ;;  %v364_v28 = vld [vmem:[#allocation3 + $0x20] sm:$0xff]  ;;  %vm514_vm2 = vweird.f32 %v1017_v26 }
  0xbf   :  { %v330_v31 = vpop.f32.mrf.mxu1 }
  0xc0   :  { %473 = vst.msk [vmem:[#allocation2 + $0x58] sm:$0xff] %vm376_vm0, %v348_v29  ;;  %v331_v32 = vadd.f32 %v330_v31, %v281_v30  ;;  %v410_v33 = vsel %vm376_vm0, %v348_v29, 0.0  ;;  %v372_v29 = vld [vmem:[#allocation3 + $0x60] sm:$0xff]  ;;  %v510_v30 = vmul.f32 128.0, %v1017_v26 }
  0xc1   :  { %411 = vadd.xlane.f32.xlu2 %v410_v33 }
  0xc2   :  { %466 = vst.msk [vmem:[#allocation2 + $0x20] sm:$0xff] %vm376_vm0, %v331_v32  ;;  %v389_v40 = vsel %vm376_vm0, %v331_v32, 0.0  ;;  %v511_v35 = vsub.f32 1.0, %v510_v30 }
  0xc3   :  { %387 = vadd.xlane.f32.xlu1 %v386_v34 }
  0xc4   :  { %v301_v36 = vpop.f32.mrf.mxu2 }
  0xc5   :  { %v350_v37 = vpop.f32.mrf.mxu3 }
  0xc6   :  { %v351_v38 = vadd.f32 %v350_v37, %v301_v36  ;;  %v283_v39 = vpop.f32.mrf.mxu0  ;;  %v373_v36 = vld [vmem:[#allocation3 + $0x68] sm:$0xff] }
  0xc7   :  { %v332_v41 = vpop.f32.mrf.mxu1  ;;  %v365_v37 = vld [vmem:[#allocation3 + $0x28] sm:$0xff] }
  0xc8   :  { %474 = vst.msk [vmem:[#allocation2 + $0x60] sm:$0xff] %vm376_vm0, %v351_v38  ;;  %v333_v42 = vadd.f32 %v332_v41, %v283_v39  ;;  %v413_v43 = vsel %vm376_vm0, %v351_v38, 0.0  ;;  %v512_v38 = vmul.f32 %v1017_v26, %v511_v35  ;;  %v366_v41 = vld [vmem:[#allocation3 + $0x30] sm:$0xff] }
  0xc9   :  { %390 = vadd.xlane.f32.xlu2 %v389_v40  ;;  %414 = vadd.xlane.f32.xlu0 %v413_v43 }
  0xca   :  { %467 = vst.msk [vmem:[#allocation2 + $0x28] sm:$0xff] %vm376_vm0, %v333_v42  ;;  %v392_v51 = vsel %vm376_vm0, %v333_v42, 0.0 }
  0xcc   :  { %v303_v44 = vpop.f32.mrf.mxu2 }
  0xcd   :  { %v352_v45 = vpop.f32.mrf.mxu3 }
  0xce   :  { %v353_v46 = vadd.f32 %v352_v45, %v303_v44  ;;  %v286_v47 = vpop.f32.mrf.mxu0 }
  0xcf   :  { %v335_v48 = vpop.f32.mrf.mxu1 }
  0xd0   :  { %475 = vst.msk [vmem:[#allocation2 + $0x68] sm:$0xff] %vm376_vm0, %v353_v46  ;;  %v336_v49 = vadd.f32 %v335_v48, %v286_v47  ;;  %v416_v50 = vsel %vm376_vm0, %v353_v46, 0.0  ;;  %v513_v47 = vadd.f32 %v1017_v26, %v512_v38  ;;  %v528_v38 = vld [vmem:[#allocation2 + $0x40] sm:$0xff] }
  0xd1   :  { %417 = vadd.xlane.f32.xlu1 %v416_v50  ;;  %393 = vadd.xlane.f32.xlu2 %v392_v51 }
  0xd2   :  { %468 = vst.msk [vmem:[#allocation2 + $0x30] sm:$0xff] %vm376_vm0, %v336_v49  ;;  %v395_v52 = vsel %vm376_vm0, %v336_v49, 0.0 }
  0xd3   :  { %396 = vadd.xlane.f32.xlu0 %v395_v52 }
  0xd4   :  { %v306_v53 = vpop.f32.mrf.mxu2 }
  0xd5   :  { %v355_v54 = vpop.f32.mrf.mxu3 }
  0xd6   :  { %v356_v55 = vadd.f32 %v355_v54, %v306_v53  ;;  %v288_v56 = vpop.f32.mrf.mxu0  ;;  %v374_v53 = vld [vmem:[#allocation3 + $0x70] sm:$0xff]  ;;  %v1259_v54 = vsel %vm514_vm2, %v1017_v26, %v513_v47  ;;  %v532_v26 = vld [vmem:[#allocation2 + $0x60] sm:$0xff] }
  0xd7   :  { %v337_v57 = vpop.f32.mrf.mxu1 }
  0xd8   :  { %476 = vst.msk [vmem:[#allocation2 + $0x70] sm:$0xff] %vm376_vm0, %v356_v55  ;;  %v338_v58 = vadd.f32 %v337_v57, %v288_v56  ;;  %v419_v59 = vsel %vm376_vm0, %v356_v55, 0.0  ;;  %v367_v57 = vld [vmem:[#allocation3 + $0x38] sm:$0xff] }
  0xd9   :  { %420 = vadd.xlane.f32.xlu2 %v419_v59 }
  0xda   :  { %469 = vst.msk [vmem:[#allocation2 + $0x38] sm:$0xff] %vm376_vm0, %v338_v58  ;;  %v398_v60 = vsel %vm376_vm0, %v338_v58, 0.0 }
  0xdb   :  { %399 = vadd.xlane.f32.xlu1 %v398_v60 }
  0xdc   :  { %v308_v61 = vpop.f32.mrf.mxu2 }
  0xdd   :  { %v357_v62 = vpop.f32.mrf.mxu3 }
  0xde   :  { %v358_v63 = vadd.f32 %v357_v62, %v308_v61 }
  0xe0   :  { %477 = vst.msk [vmem:[#allocation2 + $0x78] sm:$0xff] %vm376_vm0, %v358_v63  ;;  %v422_v0 = vsel %vm376_vm0, %v358_v63, 0.0 }
  0xe1   :  { %423 = vadd.xlane.f32.xlu0 %v422_v0 }
 0x116   :  { %v379_v2 = vpop.xlane.xlu0 %378 }
 0x117   :  { %v425_v3 = vadd.f32 %v379_v2, %v360_v1 }
 0x119   :  { %442 = vst.msk [vmem:[#allocation3] sm:$0xff] %vm21_vm1, %v425_v3 }
 0x11c   :  { %v403_v5 = vpop.xlane.xlu2 %402 }
 0x11d   :  { %v433_v7 = vadd.f32 %v403_v5, %v368_v4  ;;  %v375_v5 = vld [vmem:[#allocation3 + $0x78] sm:$0xff] }
 0x11e   :  { %v382_v8 = vpop.xlane.xlu0 %381 }
 0x11f   :  { %450 = vst.msk [vmem:[#allocation3 + $0x40] sm:$0xff] %vm21_vm1, %v433_v7  ;;  %v426_v9 = vadd.f32 %v382_v8, %v361_v6 }
 0x120   :  { %v481_v45 = vld [vmem:[#allocation3] sm:$0xff] }
 0x121   :  { %443 = vst.msk [vmem:[#allocation3 + $0x8] sm:$0xff] %vm21_vm1, %v426_v9 }
 0x126   :  { %v406_v12 = vpop.xlane.xlu0 %405  ;;  %v385_v13 = vpop.xlane.xlu1 %384  ;;  %v489_v50 = vld [vmem:[#allocation3 + $0x40] sm:$0xff] }
 0x127   :  { %v434_v14 = vadd.f32 %v406_v12, %v369_v10  ;;  %v427_v15 = vadd.f32 %v385_v13, %v362_v11 }
 0x128   :  { %v482_v62 = vld [vmem:[#allocation3 + $0x8] sm:$0xff] }
 0x129   :  { %451 = vst.msk [vmem:[#allocation3 + $0x48] sm:$0xff] %vm21_vm1, %v434_v14 }
 0x12a   :  { %444 = vst.msk [vmem:[#allocation3 + $0x10] sm:$0xff] %vm21_vm1, %v427_v15 }
 0x12e   :  { %v409_v17 = vpop.xlane.xlu1 %408 }
 0x12f   :  { %v435_v18 = vadd.f32 %v409_v17, %v370_v16 }
 0x130   :  { %v490_v3 = vld [vmem:[#allocation3 + $0x48] sm:$0xff] }
 0x131   :  { %452 = vst.msk [vmem:[#allocation3 + $0x50] sm:$0xff] %vm21_vm1, %v435_v18  ;;  %v483_v1 = vld [vmem:[#allocation3 + $0x10] sm:$0xff] }
 0x134   :  { %v412_v22 = vpop.xlane.xlu2 %411 }
 0x135   :  { %v436_v24 = vadd.f32 %v412_v22, %v371_v21 }
 0x136   :  { %v388_v25 = vpop.xlane.xlu1 %387 }
 0x137   :  { %453 = vst.msk [vmem:[#allocation3 + $0x58] sm:$0xff] %vm21_vm1, %v436_v24  ;;  %v428_v27 = vadd.f32 %v388_v25, %v363_v23 }
 0x138   :  { %v491_v10 = vld [vmem:[#allocation3 + $0x50] sm:$0xff] }
 0x139   :  { %445 = vst.msk [vmem:[#allocation3 + $0x18] sm:$0xff] %vm21_vm1, %v428_v27  ;;  %v524_v27 = vld [vmem:[#allocation2 + $0x20] sm:$0xff] }
 0x13c   :  { %v391_v31 = vpop.xlane.xlu2 %390  ;;  %v415_v32 = vpop.xlane.xlu0 %414 }
 0x13d   :  { %v429_v33 = vadd.f32 %v391_v31, %v364_v28  ;;  %v437_v34 = vadd.f32 %v415_v32, %v372_v29  ;;  %v520_v28 = vld [vmem:[#allocation2] sm:$0xff] }
 0x13e   :  { %v492_v20 = vld [vmem:[#allocation3 + $0x58] sm:$0xff] }
 0x13f   :  { %446 = vst.msk [vmem:[#allocation3 + $0x20] sm:$0xff] %vm21_vm1, %v429_v33 }
 0x140   :  { %454 = vst.msk [vmem:[#allocation3 + $0x60] sm:$0xff] %vm21_vm1, %v437_v34  ;;  %v484_v16 = vld [vmem:[#allocation3 + $0x18] sm:$0xff] }
 0x144   :  { %v418_v39 = vpop.xlane.xlu1 %417  ;;  %v394_v40 = vpop.xlane.xlu2 %393 }
 0x145   :  { %v438_v42 = vadd.f32 %v418_v39, %v373_v36  ;;  %v430_v43 = vadd.f32 %v394_v40, %v365_v37  ;;  %v529_v36 = vld [vmem:[#allocation2 + $0x48] sm:$0xff] }
 0x146   :  { %v397_v44 = vpop.xlane.xlu0 %396  ;;  %v485_v46 = vld [vmem:[#allocation3 + $0x20] sm:$0xff] }
 0x147   :  { %455 = vst.msk [vmem:[#allocation3 + $0x68] sm:$0xff] %vm21_vm1, %v438_v42  ;;  %v431_v48 = vadd.f32 %v397_v44, %v366_v41  ;;  %v497_v49 = vadd.f32 %v485_v46, %v481_v45  ;;  %v493_v51 = vld [vmem:[#allocation3 + $0x60] sm:$0xff] }
 0x148   :  { %447 = vst.msk [vmem:[#allocation3 + $0x28] sm:$0xff] %vm21_vm1, %v430_v43  ;;  %v525_v43 = vld [vmem:[#allocation2 + $0x28] sm:$0xff] }
 0x149   :  { %448 = vst.msk [vmem:[#allocation3 + $0x30] sm:$0xff] %vm21_vm1, %v431_v48  ;;  %v501_v52 = vadd.f32 %v497_v49, %v489_v50  ;;  %v522_v49 = vld [vmem:[#allocation2 + $0x10] sm:$0xff]  ;;  %v521_v50 = vld [vmem:[#allocation2 + $0x8] sm:$0xff] }
 0x14b   :  { %v505_v55 = vadd.f32 %v501_v52, %v493_v51 }
 0x14c   :  { %v421_v56 = vpop.xlane.xlu2 %420 }
 0x14d   :  { %v439_v58 = vadd.f32 %v421_v56, %v374_v53  ;;  %v516_v59 = vmul.f32 %v1259_v54, %v505_v55  ;;  %v530_v56 = vld [vmem:[#allocation2 + $0x50] sm:$0xff] }
 0x14e   :  { %v400_v60 = vpop.xlane.xlu1 %399  ;;  %v494_v7 = vld [vmem:[#allocation3 + $0x68] sm:$0xff] }
 0x14f   :  { %456 = vst.msk [vmem:[#allocation3 + $0x70] sm:$0xff] %vm21_vm1, %v439_v58  ;;  %v432_v61 = vadd.f32 %v400_v60, %v367_v57  ;;  %538 = vperm.xlu1 %1013, %v516_v59   ;;  %v486_v63 = vld [vmem:[#allocation3 + $0x28] sm:$0xff] }
 0x150   :  { %v498_v0 = vadd.f32 %v486_v63, %v482_v62  ;;  %v487_v2 = vld [vmem:[#allocation3 + $0x30] sm:$0xff]  ;;  %v535_v63 = vld [vmem:[#allocation2 + $0x78] sm:$0xff] }
 0x151   :  { %449 = vst.msk [vmem:[#allocation3 + $0x38] sm:$0xff] %vm21_vm1, %v432_v61  ;;  %v499_v4 = vadd.f32 %v487_v2, %v483_v1 }
 0x152   :  { %v502_v6 = vadd.f32 %v498_v0, %v490_v3  ;;  %v526_v0 = vld [vmem:[#allocation2 + $0x30] sm:$0xff] }
 0x153   :  { %v503_v12 = vadd.f32 %v499_v4, %v491_v10 }
 0x154   :  { %v424_v8 = vpop.xlane.xlu0 %423  ;;  %v506_v9 = vadd.f32 %v502_v6, %v494_v7 }
 0x155   :  { %v440_v11 = vadd.f32 %v424_v8, %v375_v5  ;;  %v523_v5 = vld [vmem:[#allocation2 + $0x18] sm:$0xff] }
 0x156   :  { %v517_v13 = vmul.f32 %v1259_v54, %v506_v9  ;;  %v495_v14 = vld [vmem:[#allocation3 + $0x70] sm:$0xff] }
 0x157   :  { %457 = vst.msk [vmem:[#allocation3 + $0x78] sm:$0xff] %vm21_vm1, %v440_v11  ;;  %v507_v15 = vadd.f32 %v503_v12, %v495_v14  ;;  %v531_v11 = vld [vmem:[#allocation2 + $0x58] sm:$0xff] }
 0x158   :  { %543 = vperm.xlu2 %1014, %v517_v13   ;;  %v488_v17 = vld [vmem:[#allocation3 + $0x38] sm:$0xff] }
 0x159   :  { %v518_v18 = vmul.f32 %v1259_v54, %v507_v15  ;;  %v500_v19 = vadd.f32 %v488_v17, %v484_v16  ;;  %v527_v15 = vld [vmem:[#allocation2 + $0x38] sm:$0xff] }
 0x15b   :  { %548 = vperm.xlu0 %1015, %v518_v18   ;;  %v504_v21 = vadd.f32 %v500_v19, %v492_v20  ;;  %v534_v20 = vld [vmem:[#allocation2 + $0x70] sm:$0xff] }
 0x15e   :  { %v496_v22 = vld [vmem:[#allocation3 + $0x78] sm:$0xff] }
 0x15f   :  { %v508_v23 = vadd.f32 %v504_v21, %v496_v22 }
 0x161   :  { %v519_v24 = vmul.f32 %v1259_v54, %v508_v23  ;;  %v533_v23 = vld [vmem:[#allocation2 + $0x68] sm:$0xff] }
 0x163   :  { %553 = vperm.xlu2 %1014, %v519_v24  }
 0x1b2   :  { %v1268_v29 = vpop.permute.xlu2 %543 }
 0x1b3   :  { %v1283_v37 = vsub.f32 %v529_v36, %v1268_v29  ;;  %v1291_v44 = vsub.f32 %v525_v43, %v1268_v29  ;;  %v1304_v55 = vsub.f32 %v521_v50, %v1268_v29 }
 0x1b5   :  { %v581_v45 = vmul.f32 %v1283_v37, %v1283_v37  ;;  %v577_v47 = vmul.f32 %v1291_v44, %v1291_v44  ;;  %v573_v60 = vmul.f32 %v1304_v55, %v1304_v55 }
 0x1b7   :  { %v615_v51 = vsel %vm376_vm0, %v581_v45, 0.0  ;;  %v603_v57 = vsel %vm376_vm0, %v577_v47, 0.0  ;;  %v591_v2 = vsel %vm376_vm0, %v573_v60, 0.0 }
 0x1bd   :  { %v554_v61 = vpop.permute.xlu2 %553 }
 0x1be   :  { %v1317_v3 = vsub.f32 %v535_v63, %v554_v61  ;;  %v1322_v7 = vsub.f32 %v523_v5, %v554_v61  ;;  %v1332_v14 = vsub.f32 %v531_v11, %v554_v61  ;;  %v1335_v17 = vsub.f32 %v527_v15, %v554_v61  ;;  %v652_v63 = vld [vmem:[%s1465_s2] sm:$0xff] }
 0x1c0   :  { %v587_v8 = vmul.f32 %v1317_v3, %v1317_v3  ;;  %v575_v10 = vmul.f32 %v1322_v7, %v1322_v7  ;;  %v583_v18 = vmul.f32 %v1332_v14, %v1332_v14  ;;  %v579_v19 = vmul.f32 %v1335_v17, %v1335_v17 }
 0x1c1   :  { %v539_v25 = vpop.permute.xlu1 %538 }
 0x1c2   :  { %v1270_v30 = vsub.f32 %v532_v26, %v539_v25  ;;  %v1272_v31 = vsub.f32 %v524_v27, %v539_v25  ;;  %v1274_v32 = vsub.f32 %v520_v28, %v539_v25  ;;  %v1288_v42 = vsub.f32 %v528_v38, %v539_v25 }
 0x1c3   :  { %v633_v12 = vsel %vm376_vm0, %v587_v8, 0.0  ;;  %v597_v16 = vsel %vm376_vm0, %v575_v10, 0.0  ;;  %v621_v21 = vsel %vm376_vm0, %v583_v18, 0.0  ;;  %v609_v24 = vsel %vm376_vm0, %v579_v19, 0.0 }
 0x1c4   :  { %v584_v33 = vmul.f32 %v1270_v30, %v1270_v30  ;;  %v576_v34 = vmul.f32 %v1272_v31, %v1272_v31  ;;  %v572_v35 = vmul.f32 %v1274_v32, %v1274_v32  ;;  %v580_v46 = vmul.f32 %v1288_v42, %v1288_v42 }
 0x1c5   :  { %v1346_v25 = vsub.f32 %v533_v23, %v1268_v29 }
 0x1c6   :  { %v624_v39 = vsel %vm376_vm0, %v584_v33, 0.0  ;;  %v600_v40 = vsel %vm376_vm0, %v576_v34, 0.0  ;;  %v588_v41 = vsel %vm376_vm0, %v572_v35, 0.0  ;;  %v612_v52 = vsel %vm376_vm0, %v580_v46, 0.0  ;;  %v740_v34 = vld [vmem:[%s1464_s3] sm:$0xff] }
 0x1c7   :  { %625 = vadd.xlane.f32.xlu0 %v624_v39  ;;  %601 = vadd.xlane.f32.xlu2 %v600_v40  ;;  %v585_v27 = vmul.f32 %v1346_v25, %v1346_v25 }
 0x1c8   :  { %589 = vadd.xlane.f32.xlu1 %v588_v41 }
 0x1c9   :  { %v627_v33 = vsel %vm376_vm0, %v585_v27, 0.0 }
 0x1cd   :  { %v549_v48 = vpop.permute.xlu0 %548 }
 0x1ce   :  { %v1301_v53 = vsub.f32 %v522_v49, %v549_v48  ;;  %v1307_v58 = vsub.f32 %v530_v56, %v549_v48  ;;  %v1319_v4 = vsub.f32 %v526_v0, %v549_v48  ;;  %v1342_v22 = vsub.f32 %v534_v20, %v549_v48 }
 0x1cf   :  { %616 = vadd.xlane.f32.xlu0 %v615_v51  ;;  %613 = vadd.xlane.f32.xlu2 %v612_v52 }
 0x1d0   :  { %604 = vadd.xlane.f32.xlu1 %v603_v57  ;;  %v574_v59 = vmul.f32 %v1301_v53, %v1301_v53  ;;  %v582_v62 = vmul.f32 %v1307_v58, %v1307_v58  ;;  %v578_v9 = vmul.f32 %v1319_v4, %v1319_v4  ;;  %v586_v26 = vmul.f32 %v1342_v22, %v1342_v22 }
 0x1d2   :  { %v594_v1 = vsel %vm376_vm0, %v574_v59, 0.0  ;;  %v618_v6 = vsel %vm376_vm0, %v582_v62, 0.0  ;;  %v606_v13 = vsel %vm376_vm0, %v578_v9, 0.0  ;;  %v630_v28 = vsel %vm376_vm0, %v586_v26, 0.0 }
 0x1d7   :  { %595 = vadd.xlane.f32.xlu0 %v594_v1  ;;  %592 = vadd.xlane.f32.xlu2 %v591_v2 }
 0x1d8   :  { %619 = vadd.xlane.f32.xlu1 %v618_v6 }
 0x1df   :  { %634 = vadd.xlane.f32.xlu0 %v633_v12  ;;  %607 = vadd.xlane.f32.xlu2 %v606_v13 }
 0x1e0   :  { %598 = vadd.xlane.f32.xlu1 %v597_v16 }
 0x1e7   :  { %622 = vadd.xlane.f32.xlu2 %v621_v21 }
 0x1e8   :  { %610 = vadd.xlane.f32.xlu1 %v609_v24 }
 0x1ef   :  { %631 = vadd.xlane.f32.xlu2 %v630_v28 }
 0x1f0   :  { %628 = vadd.xlane.f32.xlu1 %v627_v33 }
 0x1f3   :  { %746 = vperm.xlu0 %1015, %v740_v34  }
 0x23a   :  { %v602_v29 = vpop.xlane.xlu2 %601  ;;  %v626_v36 = vpop.xlane.xlu0 %625 }
 0x23b   :  { %v590_v35 = vpop.xlane.xlu1 %589 }
 0x23c   :  { %v636_v38 = vadd.f32 %v602_v29, %v590_v35 }
 0x242   :  { %v614_v39 = vpop.xlane.xlu2 %613  ;;  %v617_v48 = vpop.xlane.xlu0 %616 }
 0x243   :  { %v640_v40 = vadd.f32 %v636_v38, %v614_v39  ;;  %v605_v41 = vpop.xlane.xlu1 %604 }
 0x245   :  { %v644_v43 = vadd.f32 %v640_v40, %v626_v36 }
 0x247   :  { %v648_v45 = vmul.f32 %v644_v43, %v1259_v54 }
 0x249   :  { %v656_v46 = vadd.f32 1e-05, %v648_v45 }
 0x24a   :  { %v593_v47 = vpop.xlane.xlu2 %592  ;;  %v596_v59 = vpop.xlane.xlu0 %595 }
 0x24b   :  { %1018 = vrsqrt.f32 %v656_v46  ;;  %v620_v49 = vpop.xlane.xlu1 %619  ;;  %vm666_vm4 = vweird.f32 %v656_v46  ;;  %v637_v9 = vadd.f32 %v605_v41, %v593_v47 }
 0x24d   :  { %v641_v18 = vadd.f32 %v637_v9, %v617_v48 }
 0x251   :  { %v1019_v50 = vpop.eup %1018 }
 0x252   :  { %v661_v51 = vmul.f32 %v1019_v50, %v656_v46  ;;  %v608_v52 = vpop.xlane.xlu2 %607  ;;  %vm667_vm3 = vweird.f32 %v1019_v50  ;;  %v635_v11 = vpop.xlane.xlu0 %634 }
 0x253   :  { %v599_v56 = vpop.xlane.xlu1 %598  ;;  %vm668_vm5 = vmor %vm666_vm4, %vm667_vm3  ;;  %v638_v6 = vadd.f32 %v608_v52, %v596_v59  ;;  %v653_v59 = vld [vmem:[%s1465_s2 + $0x8] sm:$0xff] }
 0x254   :  { %v662_v57 = vmul.f32 %v1019_v50, %v661_v51 }
 0x255   :  { %v642_v13 = vadd.f32 %v638_v6, %v620_v49 }
 0x256   :  { %v663_v60 = vmul.f32 0.5, %v662_v57 }
 0x258   :  { %v664_v61 = vsub.f32 1.5, %v663_v60 }
 0x25a   :  { %v623_v62 = vpop.xlane.xlu2 %622  ;;  %v665_v0 = vmul.f32 %v1019_v50, %v664_v61 }
 0x25b   :  { %v611_v1 = vpop.xlane.xlu1 %610 }
 0x25c   :  { %v639_v2 = vadd.f32 %v611_v1, %v599_v56  ;;  %v669_v5 = vsel %vm668_vm5, %v1019_v50, %v665_v0  ;;  %v654_v56 = vld [vmem:[%s1465_s2 + $0x10] sm:$0xff] }
 0x25d   :  { %v700_v8 = vmul.f32 %v669_v5, %v652_v63  ;;  %v742_v1 = vld [vmem:[%s1464_s3 + $0x10] sm:$0xff]  ;;  %v741_v5 = vld [vmem:[%s1464_s3 + $0x8] sm:$0xff] }
 0x25e   :  { %v643_v10 = vadd.f32 %v639_v2, %v623_v62  ;;  %v743_v2 = vld [vmem:[%s1464_s3 + $0x18] sm:$0xff] }
 0x25f   :  { %706 = vperm.xlu1 %1013, %v700_v8  }
 0x260   :  { %v647_v12 = vadd.f32 %v643_v10, %v635_v11 }
 0x262   :  { %v651_v15 = vmul.f32 %v647_v12, %v1259_v54  ;;  %v632_v16 = vpop.xlane.xlu2 %631 }
 0x263   :  { %v646_v19 = vadd.f32 %v642_v13, %v632_v16  ;;  %v629_v20 = vpop.xlane.xlu1 %628 }
 0x264   :  { %v659_v21 = vadd.f32 1e-05, %v651_v15  ;;  %v645_v23 = vadd.f32 %v641_v18, %v629_v20 }
 0x265   :  { %v650_v24 = vmul.f32 %v646_v19, %v1259_v54  ;;  %v747_v12 = vpop.permute.xlu0 %746 }
 0x266   :  { %1020 = vrsqrt.f32 %v659_v21  ;;  %v649_v26 = vmul.f32 %v645_v23, %v1259_v54  ;;  %v655_v54 = vld [vmem:[%s1465_s2 + $0x18] sm:$0xff]  ;;  %vm696_vm7 = vweird.f32 %v659_v21 }
 0x267   :  { %v658_v27 = vadd.f32 1e-05, %v650_v24 }
 0x268   :  { %v657_v28 = vadd.f32 1e-05, %v649_v26 }
 0x269   :  { %1022 = vrsqrt.f32 %v658_v27  ;;  %vm686_vm11 = vweird.f32 %v658_v27 }
 0x26a   :  { %1024 = vrsqrt.f32 %v657_v28  ;;  %vm676_vm12 = vweird.f32 %v657_v28 }
 0x26c   :  { %v1021_v33 = vpop.eup %1020 }
 0x26d   :  { %v691_v34 = vmul.f32 %v1021_v33, %v659_v21  ;;  %vm697_vm6 = vweird.f32 %v1021_v33 }
 0x26e   :  { %vm698_vm8 = vmor %vm696_vm7, %vm697_vm6 }
 0x26f   :  { %v1023_v29 = vpop.eup %1022  ;;  %v692_v35 = vmul.f32 %v1021_v33, %v691_v34 }
 0x270   :  { %v1025_v36 = vpop.eup %1024  ;;  %v681_v38 = vmul.f32 %v1023_v29, %v658_v27  ;;  %vm687_vm9 = vweird.f32 %v1023_v29 }
 0x271   :  { %v671_v39 = vmul.f32 %v1025_v36, %v657_v28  ;;  %v693_v40 = vmul.f32 0.5, %v692_v35  ;;  %vm677_vm10 = vweird.f32 %v1025_v36  ;;  %vm688_vm13 = vmor %vm686_vm11, %vm687_vm9 }
 0x272   :  { %v682_v41 = vmul.f32 %v1023_v29, %v681_v38  ;;  %vm678_vm14 = vmor %vm676_vm12, %vm677_vm10 }
 0x273   :  { %v672_v43 = vmul.f32 %v1025_v36, %v671_v39  ;;  %v694_v45 = vsub.f32 1.5, %v693_v40 }
 0x274   :  { %v683_v46 = vmul.f32 0.5, %v682_v41 }
 0x275   :  { %v673_v47 = vmul.f32 0.5, %v672_v43  ;;  %v695_v48 = vmul.f32 %v1021_v33, %v694_v45 }
 0x276   :  { %v684_v49 = vsub.f32 1.5, %v683_v46 }
 0x277   :  { %v674_v50 = vsub.f32 1.5, %v673_v47  ;;  %v699_v51 = vsel %vm698_vm8, %v1021_v33, %v695_v48 }
 0x278   :  { %v703_v52 = vmul.f32 %v699_v51, %v655_v54  ;;  %v685_v57 = vmul.f32 %v1023_v29, %v684_v49 }
 0x279   :  { %v675_v60 = vmul.f32 %v1025_v36, %v674_v50 }
 0x27a   :  { %721 = vperm.xlu1 %1013, %v703_v52   ;;  %v689_v61 = vsel %vm688_vm13, %v1023_v29, %v685_v57 }
 0x27b   :  { %v702_v62 = vmul.f32 %v689_v61, %v654_v56  ;;  %v679_v63 = vsel %vm678_vm14, %v1025_v36, %v675_v60 }
 0x27c   :  { %v701_v0 = vmul.f32 %v679_v63, %v653_v59 }
 0x27d   :  { %716 = vperm.xlu0 %1015, %v702_v62  }
 0x27e   :  { %711 = vperm.xlu2 %1014, %v701_v0  }
 0x282   :  { %756 = vperm.xlu1 %1013, %v742_v1  }
 0x285   :  { %761 = vperm.xlu0 %1015, %v743_v2  }
 0x286   :  { %751 = vperm.xlu2 %1014, %v741_v5  }
 0x2d1   :  { %v707_v6 = vpop.permute.xlu1 %706 }
 0x2d2   :  { %v724_v8 = vmul.f32 %v707_v6, %v1274_v32  ;;  %v728_v9 = vmul.f32 %v707_v6, %v1272_v31  ;;  %v732_v10 = vmul.f32 %v707_v6, %v1288_v42  ;;  %v736_v11 = vmul.f32 %v707_v6, %v1270_v30 }
 0x2d4   :  { %v764_v13 = vadd.f32 %v747_v12, %v724_v8  ;;  %v768_v15 = vadd.f32 %v747_v12, %v728_v9  ;;  %v772_v16 = vadd.f32 %v747_v12, %v732_v10  ;;  %v776_v18 = vadd.f32 %v747_v12, %v736_v11 }
 0x2d6   :  { %v780_v19 = vmax.f32 %v764_v13, 0.0  ;;  %v784_v20 = vmax.f32 %v768_v15, 0.0  ;;  %v788_v21 = vmax.f32 %v772_v16, 0.0  ;;  %v792_v23 = vmax.f32 %v776_v18, 0.0 }
 0x2d8   :  { %v796_v24 = vpack.c.bf16 %v780_v19, %v780_v19  ;;  %v800_v26 = vpack.c.bf16 %v784_v20, %v784_v20  ;;  %v804_v27 = vpack.c.bf16 %v788_v21, %v788_v21  ;;  %v712_v32 = vpop.permute.xlu2 %711  ;;  %v808_v28 = vpack.c.bf16 %v792_v23, %v792_v23 }
 0x2d9   :  { %v725_v30 = vmul.f32 %v712_v32, %v1304_v55  ;;  %v729_v31 = vmul.f32 %v712_v32, %v1291_v44  ;;  %v733_v42 = vmul.f32 %v712_v32, %v1283_v37  ;;  %v737_v33 = vmul.f32 %v712_v32, %v1346_v25 }
 0x2da   :  { %813 = vst.msk [vmem:[%s1466_s4] sm:$0xf] %vm812_vm15, %v796_v24 }
 0x2db   :  { %817 = vst.msk [vmem:[%s1466_s4 + $0x10] sm:$0xf] %vm812_vm15, %v800_v26 }
 0x2dc   :  { %821 = vst.msk [vmem:[%s1466_s4 + $0x20] sm:$0xf] %vm812_vm15, %v804_v27 }
 0x2dd   :  { %825 = vst.msk [vmem:[%s1466_s4 + $0x30] sm:$0xf] %vm812_vm15, %v808_v28 }
 0x2e0   :  { %v752_v34 = vpop.permute.xlu2 %751 }
 0x2e1   :  { %v765_v29 = vadd.f32 %v752_v34, %v725_v30  ;;  %v769_v35 = vadd.f32 %v752_v34, %v729_v31  ;;  %v773_v36 = vadd.f32 %v752_v34, %v733_v42  ;;  %v777_v38 = vadd.f32 %v752_v34, %v737_v33 }
 0x2e3   :  { %v781_v39 = vmax.f32 %v765_v29, 0.0  ;;  %v785_v40 = vmax.f32 %v769_v35, 0.0  ;;  %v789_v41 = vmax.f32 %v773_v36, 0.0  ;;  %v793_v43 = vmax.f32 %v777_v38, 0.0 }
 0x2e5   :  { %v797_v45 = vpack.c.bf16 %v781_v39, %v781_v39  ;;  %v801_v46 = vpack.c.bf16 %v785_v40, %v785_v40  ;;  %v805_v47 = vpack.c.bf16 %v789_v41, %v789_v41  ;;  %v809_v54 = vpack.c.bf16 %v793_v43, %v793_v43 }
 0x2e7   :  { %814 = vst.msk [vmem:[%s1466_s4 + $0x4] sm:$0xf] %vm812_vm15, %v797_v45 }
 0x2e8   :  { %818 = vst.msk [vmem:[%s1466_s4 + $0x14] sm:$0xf] %vm812_vm15, %v801_v46 }
 0x2e9   :  { %822 = vst.msk [vmem:[%s1466_s4 + $0x24] sm:$0xf] %vm812_vm15, %v805_v47 }
 0x2ea   :  { %826 = vst.msk [vmem:[%s1466_s4 + $0x34] sm:$0xf] %vm812_vm15, %v809_v54 }
 0x2ec   :  { %v722_v37 = vpop.permute.xlu1 %721 }
 0x2ed   :  { %v727_v59 = vmul.f32 %v722_v37, %v1322_v7  ;;  %v731_v60 = vmul.f32 %v722_v37, %v1335_v17  ;;  %v735_v61 = vmul.f32 %v722_v37, %v1332_v14  ;;  %v739_v62 = vmul.f32 %v722_v37, %v1317_v3 }
 0x2ef   :  { %v717_v44 = vpop.permute.xlu0 %716 }
 0x2f0   :  { %v726_v55 = vmul.f32 %v717_v44, %v1301_v53  ;;  %v730_v25 = vmul.f32 %v717_v44, %v1319_v4  ;;  %v734_v48 = vmul.f32 %v717_v44, %v1307_v58  ;;  %v738_v49 = vmul.f32 %v717_v44, %v1342_v22 }
 0x2f4   :  { %v757_v50 = vpop.permute.xlu1 %756 }
 0x2f5   :  { %v766_v51 = vadd.f32 %v757_v50, %v726_v55  ;;  %v770_v52 = vadd.f32 %v757_v50, %v730_v25  ;;  %v774_v56 = vadd.f32 %v757_v50, %v734_v48  ;;  %v778_v57 = vadd.f32 %v757_v50, %v738_v49 }
 0x2f7   :  { %v782_v53 = vmax.f32 %v766_v51, 0.0  ;;  %v786_v63 = vmax.f32 %v770_v52, 0.0  ;;  %v790_v4 = vmax.f32 %v774_v56, 0.0  ;;  %v794_v0 = vmax.f32 %v778_v57, 0.0  ;;  %v762_v58 = vpop.permute.xlu0 %761 }
 0x2f8   :  { %v767_v1 = vadd.f32 %v762_v58, %v727_v59  ;;  %v771_v22 = vadd.f32 %v762_v58, %v731_v60  ;;  %v775_v2 = vadd.f32 %v762_v58, %v735_v61  ;;  %v779_v5 = vadd.f32 %v762_v58, %v739_v62 }
 0x2f9   :  { %v798_v6 = vpack.c.bf16 %v782_v53, %v782_v53  ;;  %v802_v8 = vpack.c.bf16 %v786_v63, %v786_v63  ;;  %v806_v9 = vpack.c.bf16 %v790_v4, %v790_v4  ;;  %v810_v10 = vpack.c.bf16 %v794_v0, %v794_v0 }
 0x2fa   :  { %v783_v7 = vmax.f32 %v767_v1, 0.0  ;;  %v787_v11 = vmax.f32 %v771_v22, 0.0  ;;  %v791_v17 = vmax.f32 %v775_v2, 0.0  ;;  %v795_v12 = vmax.f32 %v779_v5, 0.0 }
 0x2fb   :  { %815 = vst.msk [vmem:[%s1466_s4 + $0x8] sm:$0xf] %vm812_vm15, %v798_v6 }
 0x2fc   :  { %819 = vst.msk [vmem:[%s1466_s4 + $0x18] sm:$0xf] %vm812_vm15, %v802_v8  ;;  %v799_v3 = vpack.c.bf16 %v783_v7, %v783_v7  ;;  %v803_v14 = vpack.c.bf16 %v787_v11, %v787_v11  ;;  %v807_v13 = vpack.c.bf16 %v791_v17, %v791_v17  ;;  %v811_v15 = vpack.c.bf16 %v795_v12, %v795_v12 }
 0x2fd   :  { %823 = vst.msk [vmem:[%s1466_s4 + $0x28] sm:$0xf] %vm812_vm15, %v806_v9 }
 0x2fe   :  { %827 = vst.msk [vmem:[%s1466_s4 + $0x38] sm:$0xf] %vm812_vm15, %v810_v10 }
 0x2ff   :  { %816 = vst.msk [vmem:[%s1466_s4 + $0xc] sm:$0xf] %vm812_vm15, %v799_v3 }
 0x300   :  { %820 = vst.msk [vmem:[%s1466_s4 + $0x1c] sm:$0xf] %vm812_vm15, %v803_v14 }
 0x301   :  { %824 = vst.msk [vmem:[%s1466_s4 + $0x2c] sm:$0xf] %vm812_vm15, %v807_v13 }
 0x302   :  { %828 = vst.msk [vmem:[%s1466_s4 + $0x3c] sm:$0xf] %vm812_vm15, %v811_v15 }

// kernel: vae_forward.12
= control target key start
LH: loop header
LB: loop body
LE: loop exit
PB: predicated region body
PF: predicated region fallthrough
CT: control target
= control target key end

     0   :  { %vm21_vm0 = vcmask 7168   ;;  %v504_v12 = vmov 0.0   ;;  %v505_v21 = vmov 0   ;;  %v506_v28 = vmov 512.0   ;;  %s680_s0 = inlined_call_operand.vmem [shape: bf16[128,128], index: 0, kind: input, shape index: {}]   ;;  %s681_s1 = inlined_call_operand.vmem [shape: bf16[64,128], index: 1, kind: input, shape index: {}]   ;;  %s682_s2 = inlined_call_operand.vmem [shape: f32[16,1], index: 2, kind: input, shape index: {}]   ;;  %s683_s3 = inlined_call_operand.vmem [shape: f32[16,1], index: 3, kind: input, shape index: {}]   ;;  %s684_s4 = inlined_call_operand.vmem [shape: bf16[64,128], index: 4, kind: output, shape index: {}]  }
   0x1   :  { %v444_v0 = vld [vmem:[%s680_s0 + $0x38] sm:$0xff]  ;;  %v443_v1 = vld [vmem:[%s680_s0 + $0x30] sm:$0xff]  ;;  %v442_v2 = vld [vmem:[%s680_s0 + $0x28] sm:$0xff]  ;;  %24 = vst.msk [vmem:[#allocation3 + $0x10] sm:$0xff] %vm21_vm0, %v504_v12  ;;  %496 = vset.pattern.permute.xlu0 %v505_v21  ;;  %495 = vset.pattern.permute.xlu2 %v505_v21  ;;  %498 = vrcp.f32 %v506_v28 }
   0x2   :  { %126 = vmatpush.bf16.msra.mxu0 %v444_v0  ;;  %468 = vmatpush.bf16.msra.mxu1 %v444_v0  ;;  %v441_v3 = vld [vmem:[%s680_s0 + $0x20] sm:$0xff]  ;;  %v440_v4 = vld [vmem:[%s680_s0 + $0x18] sm:$0xff]  ;;  %v439_v5 = vld [vmem:[%s680_s0 + $0x10] sm:$0xff]  ;;  %22 = vst.msk [vmem:[#allocation3] sm:$0xff] %vm21_vm0, %v504_v12 }
   0x3   :  { %469 = vmatpush.bf16.msra.mxu2 %v444_v0  ;;  %470 = vmatpush.bf16.msra.mxu3 %v444_v0  ;;  %v438_v6 = vld [vmem:[%s680_s0 + $0x8] sm:$0xff]  ;;  %v437_v7 = vld [vmem:[%s680_s0] sm:$0xff]  ;;  %v435_v10 = vld [vmem:[%s681_s1 + $0x10] sm:$0xff]  ;;  %23 = vst.msk [vmem:[#allocation3 + $0x8] sm:$0xff] %vm21_vm0, %v504_v12 }
   0x4   :  { %v433_v8 = vld [vmem:[%s681_s1] sm:$0xff]  ;;  %v434_v9 = vld [vmem:[%s681_s1 + $0x8] sm:$0xff]  ;;  %v436_v11 = vld [vmem:[%s681_s1 + $0x18] sm:$0xff]  ;;  %25 = vst.msk [vmem:[#allocation3 + $0x18] sm:$0xff] %vm21_vm0, %v504_v12  ;;  %497 = vset.pattern.permute.xlu1 %v505_v21 }
   0x5   :  { %26 = vst.msk [vmem:[#allocation3 + $0x20] sm:$0xff] %vm21_vm0, %v504_v12 }
   0x6   :  { %127 = vmatpush.bf16.msra.mxu0 %v443_v1  ;;  %471 = vmatpush.bf16.msra.mxu1 %v443_v1  ;;  %27 = vst.msk [vmem:[#allocation3 + $0x28] sm:$0xff] %vm21_vm0, %v504_v12 }
   0x7   :  { %472 = vmatpush.bf16.msra.mxu2 %v443_v1  ;;  %473 = vmatpush.bf16.msra.mxu3 %v443_v1  ;;  %28 = vst.msk [vmem:[#allocation3 + $0x30] sm:$0xff] %vm21_vm0, %v504_v12  ;;  %v499_v33 = vpop.eup %498 }
   0x8   :  { %29 = vst.msk [vmem:[#allocation3 + $0x38] sm:$0xff] %vm21_vm0, %v504_v12  ;;  %v157_v22 = vld [vmem:[#allocation3 + $0x10] sm:$0xff]  ;;  %v226_v39 = vmul.f32 512.0, %v499_v33  ;;  %vm230_vm1 = vweird.f32 %v499_v33 }
   0x9   :  { %v155_v23 = vld [vmem:[#allocation3] sm:$0xff] }
   0xa   :  { %128 = vmatpush.bf16.msra.mxu0 %v442_v2  ;;  %474 = vmatpush.bf16.msra.mxu1 %v442_v2  ;;  %v156_v31 = vld [vmem:[#allocation3 + $0x8] sm:$0xff]  ;;  %v227_v44 = vsub.f32 1.0, %v226_v39 }
   0xb   :  { %475 = vmatpush.bf16.msra.mxu2 %v442_v2  ;;  %476 = vmatpush.bf16.msra.mxu3 %v442_v2  ;;  %v158_v30 = vld [vmem:[#allocation3 + $0x18] sm:$0xff] }
   0xc   :  { %v159_v29 = vld [vmem:[#allocation3 + $0x20] sm:$0xff]  ;;  %v228_v50 = vmul.f32 %v499_v33, %v227_v44 }
   0xd   :  { %v160_v40 = vld [vmem:[#allocation3 + $0x28] sm:$0xff] }
   0xe   :  { %129 = vmatpush.bf16.msra.mxu0 %v441_v3  ;;  %477 = vmatpush.bf16.msra.mxu1 %v441_v3  ;;  %v161_v42 = vld [vmem:[#allocation3 + $0x30] sm:$0xff]  ;;  %v229_v55 = vadd.f32 %v499_v33, %v228_v50 }
   0xf   :  { %478 = vmatpush.bf16.msra.mxu2 %v441_v3  ;;  %479 = vmatpush.bf16.msra.mxu3 %v441_v3  ;;  %v162_v41 = vld [vmem:[#allocation3 + $0x38] sm:$0xff] }
  0x10   :  { %v231_v63 = vsel %vm230_vm1, %v499_v33, %v229_v55 }
  0x12   :  { %130 = vmatpush.bf16.msra.mxu0 %v440_v4  ;;  %480 = vmatpush.bf16.msra.mxu1 %v440_v4 }
  0x13   :  { %481 = vmatpush.bf16.msra.mxu2 %v440_v4  ;;  %482 = vmatpush.bf16.msra.mxu3 %v440_v4 }
  0x16   :  { %131 = vmatpush.bf16.msra.mxu0 %v439_v5  ;;  %483 = vmatpush.bf16.msra.mxu1 %v439_v5 }
  0x17   :  { %484 = vmatpush.bf16.msra.mxu2 %v439_v5  ;;  %485 = vmatpush.bf16.msra.mxu3 %v439_v5 }
  0x1a   :  { %132 = vmatpush.bf16.msra.mxu0 %v438_v6  ;;  %486 = vmatpush.bf16.msra.mxu1 %v438_v6 }
  0x1b   :  { %487 = vmatpush.bf16.msra.mxu2 %v438_v6  ;;  %488 = vmatpush.bf16.msra.mxu3 %v438_v6 }
  0x1e   :  { %133 = vmatpush.bf16.msra.mxu0 %v437_v7  ;;  %489 = vmatpush.bf16.msra.mxu1 %v437_v7 }
  0x1f   :  { %490 = vmatpush.bf16.msra.mxu2 %v437_v7  ;;  %491 = vmatpush.bf16.msra.mxu3 %v437_v7 }
  0x21   :  { %134 = vmatmul.bf16.vlgmr.msra.gmra.mxu0 %v433_v8  ;;  %139 = vmatmul.bf16.vlgmr.msra.gmra.mxu1 %v434_v9 }
  0x22   :  { %144 = vmatmul.bf16.vlgmr.msra.gmra.mxu2 %v435_v10  ;;  %149 = vmatmul.bf16.vlgmr.msra.gmra.mxu3 %v436_v11 }
  0x9e   :  { %v576_v13 = vpop.f32.mrf.mxu0  ;;  %v578_v14 = vpop.f32.mrf.mxu1 }
  0x9f   :  { %167 = vadd.xlane.f32.xlu1 %v578_v14  ;;  %163 = vadd.xlane.f32.xlu0 %v576_v13 }
  0xa5   :  { %v582_v15 = vpop.f32.mrf.mxu2  ;;  %v584_v16 = vpop.f32.mrf.mxu3 }
  0xa6   :  { %171 = vadd.xlane.f32.xlu2 %v582_v15  ;;  %v587_v17 = vpop.f32.mrf.mxu0  ;;  %v589_v18 = vpop.f32.mrf.mxu1 }
  0xa7   :  { %169 = vadd.xlane.f32.xlu1 %v589_v18  ;;  %165 = vadd.xlane.f32.xlu0 %v587_v17 }
  0xad   :  { %v593_v19 = vpop.f32.mrf.mxu2  ;;  %v595_v20 = vpop.f32.mrf.mxu3 }
  0xae   :  { %173 = vadd.xlane.f32.xlu2 %v593_v19 }
  0xaf   :  { %177 = vadd.xlane.f32.xlu1 %v595_v20  ;;  %175 = vadd.xlane.f32.xlu0 %v584_v16 }
 0x112   :  { %v168_v24 = vpop.xlane.xlu1 %167  ;;  %v164_v25 = vpop.xlane.xlu0 %163 }
 0x113   :  { %v181_v26 = vadd.f32 %v168_v24, %v157_v22  ;;  %v179_v27 = vadd.f32 %v164_v25, %v155_v23 }
 0x115   :  { %190 = vst.msk [vmem:[#allocation3 + $0x10] sm:$0xff] %vm21_vm0, %v181_v26 }
 0x116   :  { %188 = vst.msk [vmem:[#allocation3] sm:$0xff] %vm21_vm0, %v179_v27 }
 0x119   :  { %v172_v32 = vpop.xlane.xlu2 %171 }
 0x11a   :  { %v183_v34 = vadd.f32 %v172_v32, %v159_v29  ;;  %v170_v35 = vpop.xlane.xlu1 %169  ;;  %v166_v36 = vpop.xlane.xlu0 %165 }
 0x11b   :  { %v182_v37 = vadd.f32 %v170_v35, %v158_v30  ;;  %v180_v38 = vadd.f32 %v166_v36, %v156_v31 }
 0x11c   :  { %192 = vst.msk [vmem:[#allocation3 + $0x20] sm:$0xff] %vm21_vm0, %v183_v34  ;;  %v213_v51 = vld [vmem:[#allocation3 + $0x10] sm:$0xff] }
 0x11d   :  { %191 = vst.msk [vmem:[#allocation3 + $0x18] sm:$0xff] %vm21_vm0, %v182_v37  ;;  %v211_v54 = vld [vmem:[#allocation3] sm:$0xff] }
 0x11e   :  { %189 = vst.msk [vmem:[#allocation3 + $0x8] sm:$0xff] %vm21_vm0, %v180_v38  ;;  %v219_v58 = vadd.f32 %v213_v51, %v211_v54  ;;  %v336_v54 = vld [vmem:[%s683_s3] sm:$0xff] }
 0x121   :  { %v174_v43 = vpop.xlane.xlu2 %173 }
 0x122   :  { %v184_v45 = vadd.f32 %v174_v43, %v160_v40  ;;  %v178_v46 = vpop.xlane.xlu1 %177  ;;  %v176_v47 = vpop.xlane.xlu0 %175 }
 0x123   :  { %v186_v48 = vadd.f32 %v178_v46, %v162_v41  ;;  %v185_v49 = vadd.f32 %v176_v47, %v161_v42  ;;  %v215_v56 = vld [vmem:[#allocation3 + $0x20] sm:$0xff] }
 0x124   :  { %193 = vst.msk [vmem:[#allocation3 + $0x28] sm:$0xff] %vm21_vm0, %v184_v45  ;;  %v214_v53 = vld [vmem:[#allocation3 + $0x18] sm:$0xff]  ;;  %v221_v62 = vadd.f32 %v219_v58, %v215_v56  ;;  %v292_v46 = vld [vmem:[%s682_s2] sm:$0xff]  ;;  %v293_v56 = vld [vmem:[%s682_s2 + $0x8] sm:$0xff] }
 0x125   :  { %195 = vst.msk [vmem:[#allocation3 + $0x38] sm:$0xff] %vm21_vm0, %v186_v48  ;;  %v212_v52 = vld [vmem:[#allocation3 + $0x8] sm:$0xff] }
 0x126   :  { %194 = vst.msk [vmem:[#allocation3 + $0x30] sm:$0xff] %vm21_vm0, %v185_v49  ;;  %v220_v57 = vadd.f32 %v214_v53, %v212_v52 }
 0x12b   :  { %v216_v59 = vld [vmem:[#allocation3 + $0x28] sm:$0xff] }
 0x12c   :  { %v218_v60 = vld [vmem:[#allocation3 + $0x38] sm:$0xff]  ;;  %v222_v61 = vadd.f32 %v220_v57, %v216_v59 }
 0x12d   :  { %v217_v0 = vld [vmem:[#allocation3 + $0x30] sm:$0xff] }
 0x12e   :  { %v224_v1 = vadd.f32 %v222_v61, %v218_v60  ;;  %v223_v2 = vadd.f32 %v221_v62, %v217_v0  ;;  %v337_v60 = vld [vmem:[%s683_s3 + $0x8] sm:$0xff] }
 0x130   :  { %v233_v3 = vmul.f32 %v231_v63, %v224_v1  ;;  %v232_v4 = vmul.f32 %v231_v63, %v223_v2 }
 0x132   :  { %249 = vperm.xlu0 %496, %v233_v3   ;;  %244 = vperm.xlu2 %495, %v232_v4  }
 0x18c   :  { %v245_v5 = vpop.permute.xlu2 %244 }
 0x18d   :  { %v609_v6 = vsub.f32 %v584_v16, %v245_v5  ;;  %v612_v7 = vsub.f32 %v576_v13, %v245_v5  ;;  %v619_v10 = vsub.f32 %v578_v14, %v245_v5  ;;  %v634_v14 = vsub.f32 %v582_v15, %v245_v5 }
 0x18f   :  { %v266_v8 = vmul.f32 %v609_v6, %v609_v6  ;;  %v260_v9 = vmul.f32 %v612_v7, %v612_v7  ;;  %v262_v11 = vmul.f32 %v619_v10, %v619_v10  ;;  %v264_v23 = vmul.f32 %v634_v14, %v634_v14 }
 0x191   :  { %280 = vadd.xlane.f32.xlu0 %v266_v8  ;;  %268 = vadd.xlane.f32.xlu1 %v260_v9 }
 0x199   :  { %272 = vadd.xlane.f32.xlu1 %v262_v11 }
 0x1a4   :  { %v250_v12 = vpop.permute.xlu0 %249 }
 0x1a5   :  { %v624_v16 = vsub.f32 %v589_v18, %v250_v12  ;;  %v627_v13 = vsub.f32 %v587_v17, %v250_v12  ;;  %v639_v18 = vsub.f32 %v593_v19, %v250_v12  ;;  %v644_v24 = vsub.f32 %v595_v20, %v250_v12 }
 0x1a7   :  { %v263_v21 = vmul.f32 %v624_v16, %v624_v16  ;;  %v261_v22 = vmul.f32 %v627_v13, %v627_v13  ;;  %v265_v17 = vmul.f32 %v639_v18, %v639_v18  ;;  %v267_v25 = vmul.f32 %v644_v24, %v644_v24 }
 0x1a9   :  { %274 = vadd.xlane.f32.xlu2 %v263_v21  ;;  %270 = vadd.xlane.f32.xlu1 %v261_v22 }
 0x1b1   :  { %276 = vadd.xlane.f32.xlu1 %v264_v23 }
 0x1b9   :  { %278 = vadd.xlane.f32.xlu1 %v265_v17 }
 0x1c1   :  { %282 = vadd.xlane.f32.xlu1 %v267_v25 }
 0x204   :  { %v269_v15 = vpop.xlane.xlu1 %268  ;;  %v281_v31 = vpop.xlane.xlu0 %280 }
 0x20c   :  { %v273_v26 = vpop.xlane.xlu1 %272 }
 0x20d   :  { %v284_v28 = vadd.f32 %v273_v26, %v269_v15 }
 0x21c   :  { %v271_v27 = vpop.xlane.xlu1 %270  ;;  %v275_v35 = vpop.xlane.xlu2 %274 }
 0x21d   :  { %v285_v36 = vadd.f32 %v275_v35, %v271_v27 }
 0x224   :  { %v277_v29 = vpop.xlane.xlu1 %276 }
 0x225   :  { %v286_v30 = vadd.f32 %v284_v28, %v277_v29 }
 0x227   :  { %v288_v19 = vadd.f32 %v286_v30, %v281_v31 }
 0x229   :  { %v290_v32 = vmul.f32 %v288_v19, %v231_v63 }
 0x22b   :  { %v294_v33 = vadd.f32 1e-05, %v290_v32 }
 0x22c   :  { %v279_v34 = vpop.xlane.xlu1 %278 }
 0x22d   :  { %500 = vrsqrt.f32 %v294_v33  ;;  %v287_v37 = vadd.f32 %v285_v36, %v279_v34  ;;  %vm302_vm3 = vweird.f32 %v294_v33 }
 0x233   :  { %v501_v20 = vpop.eup %500 }
 0x234   :  { %v297_v38 = vmul.f32 %v501_v20, %v294_v33  ;;  %v283_v39 = vpop.xlane.xlu1 %282  ;;  %vm303_vm2 = vweird.f32 %v501_v20 }
 0x235   :  { %v289_v40 = vadd.f32 %v287_v37, %v283_v39  ;;  %vm304_vm4 = vmor %vm302_vm3, %vm303_vm2 }
 0x236   :  { %v298_v41 = vmul.f32 %v501_v20, %v297_v38 }
 0x237   :  { %v291_v42 = vmul.f32 %v289_v40, %v231_v63 }
 0x238   :  { %v299_v43 = vmul.f32 0.5, %v298_v41 }
 0x239   :  { %v295_v44 = vadd.f32 1e-05, %v291_v42 }
 0x23a   :  { %v300_v45 = vsub.f32 1.5, %v299_v43 }
 0x23b   :  { %502 = vrsqrt.f32 %v295_v44  ;;  %vm312_vm6 = vweird.f32 %v295_v44 }
 0x23c   :  { %v301_v47 = vmul.f32 %v501_v20, %v300_v45 }
 0x23e   :  { %v305_v48 = vsel %vm304_vm4, %v501_v20, %v301_v47 }
 0x23f   :  { %v316_v49 = vmul.f32 %v305_v48, %v292_v46 }
 0x241   :  { %v503_v50 = vpop.eup %502  ;;  %320 = vperm.xlu1 %497, %v316_v49  }
 0x242   :  { %v307_v51 = vmul.f32 %v503_v50, %v295_v44  ;;  %vm313_vm5 = vweird.f32 %v503_v50 }
 0x243   :  { %vm314_vm7 = vmor %vm312_vm6, %vm313_vm5 }
 0x244   :  { %v308_v52 = vmul.f32 %v503_v50, %v307_v51 }
 0x246   :  { %v309_v53 = vmul.f32 0.5, %v308_v52 }
 0x248   :  { %v310_v55 = vsub.f32 1.5, %v309_v53 }
 0x249   :  { %340 = vperm.xlu1 %497, %v336_v54  }
 0x24a   :  { %v311_v57 = vmul.f32 %v503_v50, %v310_v55 }
 0x24c   :  { %v315_v58 = vsel %vm314_vm7, %v503_v50, %v311_v57 }
 0x24d   :  { %v317_v59 = vmul.f32 %v315_v58, %v293_v56 }
 0x24f   :  { %325 = vperm.xlu2 %495, %v317_v59  }
 0x251   :  { %345 = vperm.xlu1 %497, %v337_v60  }
 0x2a9   :  { %v326_v63 = vpop.permute.xlu2 %325 }
 0x2aa   :  { %v329_v9 = vmul.f32 %v326_v63, %v627_v13  ;;  %v331_v11 = vmul.f32 %v326_v63, %v624_v16  ;;  %v333_v12 = vmul.f32 %v326_v63, %v639_v18  ;;  %v335_v21 = vmul.f32 %v326_v63, %v644_v24 }
 0x2b3   :  { %v321_v61 = vpop.permute.xlu1 %320 }
 0x2b4   :  { %v328_v0 = vmul.f32 %v321_v61, %v612_v7  ;;  %v330_v1 = vmul.f32 %v321_v61, %v619_v10  ;;  %v332_v2 = vmul.f32 %v321_v61, %v634_v14  ;;  %v334_v3 = vmul.f32 %v321_v61, %v609_v6 }
 0x2bb   :  { %v341_v62 = vpop.permute.xlu1 %340 }
 0x2bc   :  { %v348_v4 = vadd.f32 %v341_v62, %v328_v0  ;;  %v350_v5 = vadd.f32 %v341_v62, %v330_v1  ;;  %v352_v8 = vadd.f32 %v341_v62, %v332_v2  ;;  %v354_v22 = vadd.f32 %v341_v62, %v334_v3 }
 0x2be   :  { %v356_v14 = vmax.f32 %v348_v4, 0.0  ;;  %v358_v15 = vmax.f32 %v350_v5, 0.0  ;;  %v360_v6 = vmax.f32 %v352_v8, 0.0  ;;  %v362_v13 = vmax.f32 %v354_v22, 0.0 }
 0x2c3   :  { %v346_v23 = vpop.permute.xlu1 %345 }
 0x2c4   :  { %v349_v7 = vadd.f32 %v346_v23, %v329_v9  ;;  %v351_v17 = vadd.f32 %v346_v23, %v331_v11  ;;  %v353_v10 = vadd.f32 %v346_v23, %v333_v12  ;;  %v355_v25 = vadd.f32 %v346_v23, %v335_v21 }
 0x2c6   :  { %v357_v26 = vmax.f32 %v349_v7, 0.0  ;;  %v359_v27 = vmax.f32 %v351_v17, 0.0  ;;  %v361_v28 = vmax.f32 %v353_v10, 0.0  ;;  %v363_v29 = vmax.f32 %v355_v25, 0.0 }
 0x2c8   :  { %v448_v30 = vpack.c.bf16 %v357_v26, %v356_v14  ;;  %v453_v16 = vpack.c.bf16 %v359_v27, %v358_v15  ;;  %v458_v31 = vpack.c.bf16 %v361_v28, %v360_v6  ;;  %v463_v18 = vpack.c.bf16 %v363_v29, %v362_v13 }
 0x2ca   :  { %449 = vst [vmem:[%s684_s4] sm:$0xff] %v448_v30  }
 0x2cb   :  { %465 = vst [vmem:[%s684_s4 + $0x8] sm:$0xff] %v453_v16  }
 0x2cc   :  { %466 = vst [vmem:[%s684_s4 + $0x10] sm:$0xff] %v458_v31  }
 0x2cd   :  { %467 = vst [vmem:[%s684_s4 + $0x18] sm:$0xff] %v463_v18  }

// kernel: vae_forward.13
= control target key start
LH: loop header
LB: loop body
LE: loop exit
PB: predicated region body
PF: predicated region fallthrough
CT: control target
= control target key end

     0   :  { %v485_v3 = vmov 0   ;;  %vm130_vm0 = vcmask 523264   ;;  %s699_s0 = inlined_call_operand.vmem [shape: bf16[64,512], index: 0, kind: input, shape index: {}]   ;;  %s700_s1 = inlined_call_operand.vmem [shape: bf16[12,64], index: 1, kind: input, shape index: {}]   ;;  %s701_s2 = inlined_call_operand.vmem [shape: f32[12,1], index: 2, kind: input, shape index: {}]   ;;  %s702_s3 = inlined_call_operand.vmem [shape: f32[12,512], index: 3, kind: output, shape index: {}]  }
   0x1   :  { %v408_v0 = vld [vmem:[%s699_s0 + $0x60] sm:$0xf]  ;;  %v449_v1 = vld [vmem:[%s699_s0 + $0x6c] sm:$0xf0]  ;;  %v447_v2 = vld [vmem:[%s699_s0 + $0x64] sm:$0xf]  ;;  %452 = vset.pattern.permute.xlu0 %v485_v3 }
   0x2   :  { %v409_v4 = vor.u32 %v449_v1, %v408_v0  ;;  %v410_v5 = vld [vmem:[%s699_s0 + $0x70] sm:$0xf0]  ;;  %v416_v6 = vld [vmem:[%s699_s0 + $0x68] sm:$0xf]  ;;  %v450_v7 = vld [vmem:[%s699_s0 + $0x74] sm:$0xf0] }
   0x3   :  { %v413_v8 = vor.u32 %v447_v2, %v410_v5  ;;  %v417_v9 = vor.u32 %v450_v7, %v416_v6  ;;  %v448_v10 = vld [vmem:[%s699_s0 + $0x6c] sm:$0xf]  ;;  %v418_v11 = vld [vmem:[%s699_s0 + $0x78] sm:$0xf0]  ;;  %v392_v12 = vld [vmem:[%s699_s0 + $0x40] sm:$0xf] }
   0x4   :  { %138 = vmatpush.bf16.msra.mxu0 %v409_v4  ;;  %v421_v13 = vor.u32 %v448_v10, %v418_v11  ;;  %v445_v14 = vld [vmem:[%s699_s0 + $0x4c] sm:$0xf0]  ;;  %v443_v15 = vld [vmem:[%s699_s0 + $0x44] sm:$0xf]  ;;  %v394_v16 = vld [vmem:[%s699_s0 + $0x50] sm:$0xf0] }
   0x5   :  { %152 = vmatpush.bf16.msra.mxu1 %v413_v8  ;;  %166 = vmatpush.bf16.msra.mxu2 %v417_v9  ;;  %v393_v17 = vor.u32 %v445_v14, %v392_v12  ;;  %v397_v18 = vor.u32 %v443_v15, %v394_v16  ;;  %v400_v19 = vld [vmem:[%s699_s0 + $0x48] sm:$0xf]  ;;  %v446_v20 = vld [vmem:[%s699_s0 + $0x54] sm:$0xf0]  ;;  %v444_v21 = vld [vmem:[%s699_s0 + $0x4c] sm:$0xf] }
   0x6   :  { %180 = vmatpush.bf16.msra.mxu3 %v421_v13  ;;  %v401_v22 = vor.u32 %v446_v20, %v400_v19  ;;  %v402_v23 = vld [vmem:[%s699_s0 + $0x58] sm:$0xf0]  ;;  %v376_v24 = vld [vmem:[%s699_s0 + $0x20] sm:$0xf]  ;;  %v441_v25 = vld [vmem:[%s699_s0 + $0x2c] sm:$0xf0] }
   0x7   :  { %v405_v26 = vor.u32 %v444_v21, %v402_v23  ;;  %v439_v27 = vld [vmem:[%s699_s0 + $0x24] sm:$0xf]  ;;  %v378_v28 = vld [vmem:[%s699_s0 + $0x30] sm:$0xf0]  ;;  %v384_v29 = vld [vmem:[%s699_s0 + $0x28] sm:$0xf]  ;;  %v377_v30 = vor.u32 %v441_v25, %v376_v24 }
   0x8   :  { %139 = vmatpush.bf16.msra.mxu0 %v393_v17  ;;  %v442_v31 = vld [vmem:[%s699_s0 + $0x34] sm:$0xf0]  ;;  %v440_v32 = vld [vmem:[%s699_s0 + $0x2c] sm:$0xf]  ;;  %v386_v33 = vld [vmem:[%s699_s0 + $0x38] sm:$0xf0]  ;;  %v381_v34 = vor.u32 %v439_v27, %v378_v28 }
   0x9   :  { %153 = vmatpush.bf16.msra.mxu1 %v397_v18  ;;  %167 = vmatpush.bf16.msra.mxu2 %v401_v22  ;;  %v385_v35 = vor.u32 %v442_v31, %v384_v29  ;;  %v360_v36 = vld [vmem:[%s699_s0] sm:$0xf]  ;;  %v437_v37 = vld [vmem:[%s699_s0 + $0xc] sm:$0xf0]  ;;  %v435_v38 = vld [vmem:[%s699_s0 + $0x4] sm:$0xf]  ;;  %v389_v39 = vor.u32 %v440_v32, %v386_v33 }
   0xa   :  { %181 = vmatpush.bf16.msra.mxu3 %v405_v26  ;;  %v362_v40 = vld [vmem:[%s699_s0 + $0x10] sm:$0xf0]  ;;  %v368_v41 = vld [vmem:[%s699_s0 + $0x8] sm:$0xf]  ;;  %v438_v42 = vld [vmem:[%s699_s0 + $0x14] sm:$0xf0]  ;;  %v361_v45 = vor.u32 %v437_v37, %v360_v36 }
   0xb   :  { %v436_v43 = vld [vmem:[%s699_s0 + $0xc] sm:$0xf]  ;;  %v370_v44 = vld [vmem:[%s699_s0 + $0x18] sm:$0xf0]  ;;  %v356_v46 = vld [vmem:[%s700_s1] sm:$0xf]  ;;  %v365_v49 = vor.u32 %v435_v38, %v362_v40  ;;  %v369_v50 = vor.u32 %v438_v42, %v368_v41 }
   0xc   :  { %140 = vmatpush.bf16.msra.mxu0 %v377_v30  ;;  %v434_v47 = vld [vmem:[%s700_s1] sm:$0x30]  ;;  %v373_v51 = vor.u32 %v436_v43, %v370_v44  ;;  %v34_v53 = vld [vmem:[%s701_s2 + $0x8] sm:$0xf] }
   0xd   :  { %v33_v48 = vld [vmem:[%s701_s2] sm:$0xff]  ;;  %154 = vmatpush.bf16.msra.mxu1 %v381_v34  ;;  %168 = vmatpush.bf16.msra.mxu2 %v385_v35  ;;  %v357_v52 = vor.u32 %v434_v47, %v356_v46 }
   0xe   :  { %182 = vmatpush.bf16.msra.mxu3 %v389_v39  ;;  %37 = vperm.xlu0 %452, %v33_v48  }
  0x10   :  { %141 = vmatpush.bf16.msra.mxu0 %v361_v45 }
  0x11   :  { %155 = vmatpush.bf16.msra.mxu1 %v365_v49  ;;  %169 = vmatpush.bf16.msra.mxu2 %v369_v50 }
  0x12   :  { %183 = vmatpush.bf16.msra.mxu3 %v373_v51 }
  0x13   :  { %422 = vmatmul.msk.bf16.vlgmr.msra.gmra.mxu0 %vm130_vm0, %v357_v52 }
  0x14   :  { %423 = vmatmul.msk.bf16.vlgmr.msra.gmra.mxu1 %vm130_vm0, %v357_v52  ;;  %424 = vmatmul.msk.bf16.vlgmr.msra.gmra.mxu2 %vm130_vm0, %v357_v52 }
  0x15   :  { %425 = vmatmul.msk.bf16.vlgmr.msra.gmra.mxu3 %vm130_vm0, %v357_v52 }
  0x16   :  { %42 = vperm.xlu0 %452, %v34_v53  }
  0x80   :  { %v38_v54 = vpop.permute.xlu0 %37 }
  0x88   :  { %v43_v61 = vpop.permute.xlu0 %42 }
  0x90   :  { %v143_v55 = vpop.f32.mrf.mxu0 }
  0x91   :  { %v144_v56 = vadd.f32 %v143_v55, %v38_v54  ;;  %v157_v57 = vpop.f32.mrf.mxu1 }
  0x92   :  { %v158_v58 = vadd.f32 %v157_v57, %v38_v54 }
  0x93   :  { %v426_v59 = vmul.f32 -1.442695, %v144_v56 }
  0x94   :  { %v427_v60 = vmul.f32 -1.442695, %v158_v58 }
  0x95   :  { %453 = vpow2.f32 %v426_v59 }
  0x96   :  { %455 = vpow2.f32 %v427_v60 }
  0x97   :  { %v171_v62 = vpop.f32.mrf.mxu2 }
  0x98   :  { %v172_v63 = vadd.f32 %v171_v62, %v38_v54  ;;  %v185_v0 = vpop.f32.mrf.mxu3  ;;  %v145_v1 = vpop.f32.mrf.mxu0 }
  0x99   :  { %v186_v2 = vadd.f32 %v185_v0, %v38_v54  ;;  %v146_v3 = vadd.f32 %v145_v1, %v43_v61  ;;  %v159_v4 = vpop.f32.mrf.mxu1 }
  0x9a   :  { %v428_v5 = vmul.f32 -1.442695, %v172_v63  ;;  %v160_v6 = vadd.f32 %v159_v4, %v43_v61 }
  0x9b   :  { %v454_v7 = vpop.eup %453  ;;  %v429_v8 = vmul.f32 -1.442695, %v186_v2  ;;  %v430_v11 = vmul.f32 -1.442695, %v146_v3 }
  0x9c   :  { %v456_v9 = vpop.eup %455  ;;  %v214_v10 = vadd.f32 1.0, %v454_v7  ;;  %457 = vpow2.f32 %v428_v5  ;;  %v431_v13 = vmul.f32 -1.442695, %v160_v6 }
  0x9d   :  { %v215_v12 = vadd.f32 1.0, %v456_v9  ;;  %459 = vpow2.f32 %v429_v8 }
  0x9e   :  { %461 = vrcp.f32 %v214_v10  ;;  %vm227_vm1 = vweird.f32 %v214_v10  ;;  %v231_v31 = vand.u32 2147483647, %v214_v10  ;;  %v233_v32 = vand.u32 2147483648, %v214_v10 }
  0x9f   :  { %463 = vrcp.f32 %v215_v12  ;;  %v173_v14 = vpop.f32.mrf.mxu2  ;;  %v246_v34 = vand.u32 2147483647, %v215_v12  ;;  %v248_v35 = vand.u32 2147483648, %v215_v12  ;;  %vm242_vm3 = vweird.f32 %v215_v12 }
  0xa0   :  { %465 = vpow2.f32 %v430_v11  ;;  %v174_v15 = vadd.f32 %v173_v14, %v43_v61  ;;  %v187_v16 = vpop.f32.mrf.mxu3  ;;  %vm232_vm5 = vcmp.eq.f32.partialorder %v231_v31, 8.507059e+37  ;;  %v234_v43 = vor.u32 1.1754944e-38, %v233_v32 }
  0xa1   :  { %467 = vpow2.f32 %v431_v13  ;;  %v188_v19 = vadd.f32 %v187_v16, %v43_v61  ;;  %vm247_vm7 = vcmp.eq.f32.partialorder %v246_v34, 8.507059e+37  ;;  %v249_v48 = vor.u32 1.1754944e-38, %v248_v35 }
  0xa2   :  { %v458_v17 = vpop.eup %457  ;;  %v432_v18 = vmul.f32 -1.442695, %v174_v15 }
  0xa3   :  { %v460_v20 = vpop.eup %459  ;;  %v614_v21 = vadd.f32 1.0, %v458_v17  ;;  %v433_v28 = vmul.f32 -1.442695, %v188_v19 }
  0xa4   :  { %v462_v22 = vpop.eup %461  ;;  %v616_v23 = vadd.f32 1.0, %v460_v20 }
  0xa5   :  { %v464_v24 = vpop.eup %463  ;;  %v223_v25 = vmul.f32 %v462_v22, %v214_v10  ;;  %469 = vrcp.f32 %v614_v21  ;;  %vm228_vm2 = vweird.f32 %v462_v22  ;;  %v261_v49 = vand.u32 2147483647, %v614_v21 }
  0xa6   :  { %v466_v26 = vpop.eup %465  ;;  %v238_v27 = vmul.f32 %v464_v24, %v215_v12  ;;  %471 = vpow2.f32 %v432_v18  ;;  %vm243_vm4 = vweird.f32 %v464_v24  ;;  %vm229_vm6 = vmor %vm227_vm1, %vm228_vm2  ;;  %v263_v55 = vand.u32 2147483648, %v614_v21 }
  0xa7   :  { %v468_v29 = vpop.eup %467  ;;  %v224_v30 = vsub.f32 1.0, %v223_v25  ;;  %473 = vrcp.f32 %v616_v23  ;;  %v620_v37 = vadd.f32 1.0, %v466_v26  ;;  %vm244_vm8 = vmor %vm242_vm3, %vm243_vm4  ;;  %v276_v56 = vand.u32 2147483647, %v616_v23 }
  0xa8   :  { %v239_v33 = vsub.f32 1.0, %v238_v27  ;;  %v622_v38 = vadd.f32 1.0, %v468_v29  ;;  %475 = vpow2.f32 %v433_v28  ;;  %v278_v57 = vand.u32 2147483648, %v616_v23 }
  0xa9   :  { %v225_v36 = vmul.f32 %v462_v22, %v224_v30  ;;  %477 = vrcp.f32 %v620_v37  ;;  %vm257_vm10 = vweird.f32 %v614_v21  ;;  %vm644_vm11 = vcmp.eq.f32.partialorder %v261_v49, 8.507059e+37 }
  0xaa   :  { %v240_v39 = vmul.f32 %v464_v24, %v239_v33  ;;  %479 = vrcp.f32 %v622_v38  ;;  %vm272_vm12 = vweird.f32 %v616_v23  ;;  %v264_v5 = vor.u32 1.1754944e-38, %v263_v55 }
  0xab   :  { %v470_v40 = vpop.eup %469  ;;  %v226_v41 = vadd.f32 %v462_v22, %v225_v36  ;;  %vm652_vm15 = vcmp.eq.f32.partialorder %v276_v56, 8.507059e+37  ;;  %v279_v7 = vor.u32 1.1754944e-38, %v278_v57  ;;  %v291_v13 = vand.u32 2147483647, %v620_v37 }
  0xac   :  { %v472_v42 = vpop.eup %471  ;;  %v241_v44 = vadd.f32 %v464_v24, %v240_v39  ;;  %v253_v45 = vmul.f32 %v470_v40, %v614_v21  ;;  %vm258_vm9 = vweird.f32 %v470_v40  ;;  %v293_v14 = vand.u32 2147483648, %v620_v37 }
  0xad   :  { %v474_v46 = vpop.eup %473  ;;  %v230_v47 = vsel %vm229_vm6, %v462_v22, %v226_v41  ;;  %v641_v61 = vadd.f32 1.0, %v472_v42  ;;  %vm259_vm14 = vmor %vm257_vm10, %vm258_vm9  ;;  %vm287_vm2 = vweird.f32 %v620_v37  ;;  %v308_v19 = vand.u32 2147483648, %v622_v38 }
  0xae   :  { %v235_v50 = vsel %vm232_vm5, %v234_v43, %v230_v47  ;;  %v245_v51 = vsel %vm244_vm8, %v464_v24, %v241_v44  ;;  %v254_v52 = vsub.f32 1.0, %v253_v45  ;;  %v268_v53 = vmul.f32 %v474_v46, %v616_v23  ;;  %v476_v58 = vpop.eup %475 }
  0xaf   :  { %342 = vst [vmem:[%s702_s3] sm:$0xff] %v235_v50  ;;  %v250_v54 = vsel %vm247_vm7, %v249_v48, %v245_v51  ;;  %v478_v62 = vpop.eup %477  ;;  %vm273_vm13 = vweird.f32 %v474_v46  ;;  %v650_v3 = vadd.f32 1.0, %v476_v58  ;;  %481 = vrcp.f32 %v641_v61 }
  0xb0   :  { %343 = vst [vmem:[%s702_s3 + $0x8] sm:$0xff] %v250_v54  ;;  %v255_v59 = vmul.f32 %v470_v40, %v254_v52  ;;  %v269_v60 = vsub.f32 1.0, %v268_v53  ;;  %v283_v2 = vmul.f32 %v478_v62, %v620_v37  ;;  %v480_v4 = vpop.eup %479  ;;  %vm274_vm0 = vmor %vm272_vm12, %vm273_vm13  ;;  %vm288_vm1 = vweird.f32 %v478_v62 }
  0xb1   :  { %v298_v11 = vmul.f32 %v480_v4, %v622_v38  ;;  %483 = vrcp.f32 %v650_v3  ;;  %vm303_vm3 = vweird.f32 %v480_v4  ;;  %v306_v22 = vand.u32 2147483647, %v622_v38  ;;  %vm289_vm4 = vmor %vm287_vm2, %vm288_vm1 }
  0xb2   :  { %v256_v0 = vadd.f32 %v470_v40, %v255_v59  ;;  %v270_v1 = vmul.f32 %v474_v46, %v269_v60  ;;  %v284_v10 = vsub.f32 1.0, %v283_v2  ;;  %vm292_vm5 = vcmp.eq.f32.partialorder %v291_v13, 8.507059e+37 }
  0xb3   :  { %v299_v17 = vsub.f32 1.0, %v298_v11  ;;  %v294_v24 = vor.u32 1.1754944e-38, %v293_v14  ;;  %vm302_vm6 = vweird.f32 %v622_v38  ;;  %v309_v29 = vor.u32 1.1754944e-38, %v308_v19 }
  0xb4   :  { %v260_v8 = vsel %vm259_vm14, %v470_v40, %v256_v0  ;;  %v271_v9 = vadd.f32 %v474_v46, %v270_v1  ;;  %v285_v16 = vmul.f32 %v478_v62, %v284_v10  ;;  %vm304_vm7 = vmor %vm302_vm6, %vm303_vm3  ;;  %vm307_vm8 = vcmp.eq.f32.partialorder %v306_v22, 8.507059e+37 }
  0xb5   :  { %v265_v12 = vsel %vm644_vm11, %v264_v5, %v260_v8  ;;  %v300_v21 = vmul.f32 %v480_v4, %v299_v17  ;;  %v482_v23 = vpop.eup %481  ;;  %v323_v34 = vand.u32 2147483648, %v641_v61  ;;  %v321_v37 = vand.u32 2147483647, %v641_v61 }
  0xb6   :  { %344 = vst [vmem:[%s702_s3 + $0x10] sm:$0xff] %v265_v12  ;;  %v275_v15 = vsel %vm274_vm0, %v474_v46, %v271_v9  ;;  %v286_v20 = vadd.f32 %v478_v62, %v285_v16  ;;  %v313_v27 = vmul.f32 %v482_v23, %v641_v61  ;;  %vm318_vm9 = vweird.f32 %v482_v23 }
  0xb7   :  { %v280_v18 = vsel %vm652_vm15, %v279_v7, %v275_v15  ;;  %v301_v26 = vadd.f32 %v480_v4, %v300_v21  ;;  %v484_v30 = vpop.eup %483  ;;  %vm317_vm10 = vweird.f32 %v641_v61  ;;  %v338_v40 = vand.u32 2147483648, %v650_v3 }
  0xb8   :  { %345 = vst [vmem:[%s702_s3 + $0x18] sm:$0xff] %v280_v18  ;;  %v290_v25 = vsel %vm289_vm4, %v478_v62, %v286_v20  ;;  %v314_v32 = vsub.f32 1.0, %v313_v27  ;;  %v328_v35 = vmul.f32 %v484_v30, %v650_v3  ;;  %vm319_vm11 = vmor %vm317_vm10, %vm318_vm9  ;;  %v324_v41 = vor.u32 1.1754944e-38, %v323_v34 }
  0xb9   :  { %v295_v28 = vsel %vm292_vm5, %v294_v24, %v290_v25  ;;  %v305_v31 = vsel %vm304_vm7, %v480_v4, %v301_v26  ;;  %vm333_vm12 = vweird.f32 %v484_v30  ;;  %v336_v43 = vand.u32 2147483647, %v650_v3 }
  0xba   :  { %346 = vst [vmem:[%s702_s3 + $0x20] sm:$0xf] %v295_v28  ;;  %v310_v33 = vsel %vm307_vm8, %v309_v29, %v305_v31  ;;  %v315_v36 = vmul.f32 %v482_v23, %v314_v32  ;;  %v329_v38 = vsub.f32 1.0, %v328_v35  ;;  %vm322_vm13 = vcmp.eq.f32.partialorder %v321_v37, 8.507059e+37 }
  0xbb   :  { %347 = vst [vmem:[%s702_s3 + $0x28] sm:$0xf] %v310_v33  ;;  %vm332_vm14 = vweird.f32 %v650_v3  ;;  %v339_v47 = vor.u32 1.1754944e-38, %v338_v40  ;;  %vm337_vm0 = vcmp.eq.f32.partialorder %v336_v43, 8.507059e+37 }
  0xbc   :  { %v316_v39 = vadd.f32 %v482_v23, %v315_v36  ;;  %v330_v42 = vmul.f32 %v484_v30, %v329_v38  ;;  %vm334_vm15 = vmor %vm332_vm14, %vm333_vm12 }
  0xbe   :  { %v320_v44 = vsel %vm319_vm11, %v482_v23, %v316_v39  ;;  %v331_v46 = vadd.f32 %v484_v30, %v330_v42 }
  0xbf   :  { %v325_v45 = vsel %vm322_vm13, %v324_v41, %v320_v44 }
  0xc0   :  { %348 = vst [vmem:[%s702_s3 + $0x30] sm:$0xf] %v325_v45  ;;  %v335_v48 = vsel %vm334_vm15, %v484_v30, %v331_v46 }
  0xc1   :  { %v340_v49 = vsel %vm337_vm0, %v339_v47, %v335_v48 }
  0xc2   :  { %349 = vst [vmem:[%s702_s3 + $0x38] sm:$0xf] %v340_v49 }

</bundles_post_ra>
